<compile_context>
chip_gen: v7x
topology: tpu7x:2x2x1
jax: 0.10.0
libtpu: 0.0.40
codegen_flags: <defaults>
</compile_context>

<pallas_src>
import functools

import jax
import jax.numpy as jnp
from jax import lax
from jax.experimental import pallas as pl
from jax.experimental.pallas import tpu as pltpu

# Make the pure-JAX reference and the kernel use full-f32 matmuls so the
# correctness check is not dominated by XLA's default bf16 matmul truncation.
jax.config.update("jax_default_matmul_precision", "highest")


def _round_up(x, m):
    return ((x + m - 1) // m) * m


def _bilstm_head_kernel(x_ref, len_ref, wif_ref, wib_ref, bif_ref, bib_ref,
                        whf_ref, whb_ref, wo_ref, bo_ref, out_ref,
                        gxf_ref, gxb_ref):
    """Bi-LSTM recurrence + output projection for one batch tile.

    Gate column order inside the kernel is [i, f, o, g] (the wrapper permutes the
    PyTorch [i, f, g, o] layout), so sigmoid covers the first 3H lanes and tanh the
    last H lanes.
    """
    TB, _ = x_ref.shape                      # (T*Bt, E)
    Bt = out_ref.shape[0]
    T = TB // Bt
    H4 = whf_ref.shape[1]
    H = H4 // 4

    # ---- hoisted input projections: one matmul per direction, biases fused ----
    x = x_ref[...]
    gxf_ref[...] = (jnp.dot(x, wif_ref[...], preferred_element_type=jnp.float32)
                    + bif_ref[...])                           # (T*Bt, 4H) f32
    gxb_ref[...] = (jnp.dot(x, wib_ref[...], preferred_element_type=jnp.float32)
                    + bib_ref[...])

    lengths = len_ref[...]                                    # (Bt, 1) int32, hoisted
    wh_f = whf_ref[...]                                       # (H, 4H), hoisted
    wh_b = whb_ref[...]

    aligned = (H % 128 == 0)                                  # lane-aligned sig/tanh split?
    if aligned:
        g_mask = None
    else:
        lane = lax.broadcasted_iota(jnp.int32, (Bt, H4), 1)
        g_mask = lane >= 3 * H                                # hoisted out of the loop

    def lstm_gates(pre, h, c, wh):
        # pre already contains x@W_ih + (b_ih + b_hh); only the recurrent dot is on
        # the serial critical path.
        gates = pre + jnp.dot(h.astype(wh.dtype), wh,
                              preferred_element_type=jnp.float32)        # (Bt, 4H)
        if aligned:
            # Halved EUP work: sigmoid on the contiguous [0, 3H) lanes, tanh on [3H, 4H).
            sig = jax.nn.sigmoid(gates[:, :3 * H])
            g = jnp.tanh(gates[:, 3 * H:])
            i = sig[:, 0:H]
            f = sig[:, H:2 * H]
            o = sig[:, 2 * H:3 * H]
        else:
            # Unaligned fallback: full-slab passes + lane-mask select (no relayouts).
            act = jnp.where(g_mask, jnp.tanh(gates), jax.nn.sigmoid(gates))
            i = act[:, 0:H]
            f = act[:, H:2 * H]
            o = act[:, 2 * H:3 * H]
            g = act[:, 3 * H:4 * H]
        c_new = f * c + i * g
        h_new = o * jnp.tanh(c_new)
        return h_new, c_new

    zeros_h = jnp.zeros((Bt, H), jnp.float32)

    # ---- fused fwd/bwd recurrence: both directions per iteration ----
    def step(s, carry):
        hf, cf, hb, cb = carry
        t_f = s
        t_b = T - 1 - s
        row_f = pl.multiple_of(t_f * Bt, Bt)
        row_b = pl.multiple_of(t_b * Bt, Bt)
        pre_f = gxf_ref[pl.ds(row_f, Bt), :]                  # only this dir's 4H cols
        pre_b = gxb_ref[pl.ds(row_b, Bt), :]
        hf_new, cf_new = lstm_gates(pre_f, hf, cf, wh_f)
        hb_new, cb_new = lstm_gates(pre_b, hb, cb, wh_b)
        vf = t_f < lengths        # fwd: freeze state once past sequence end
        vb = t_b < lengths        # bwd: state stays at init until t == len-1
        hf = jnp.where(vf, hf_new, hf)
        cf = jnp.where(vf, cf_new, cf)
        hb = jnp.where(vb, hb_new, hb)
        cb = jnp.where(vb, cb_new, cb)
        return hf, cf, hb, cb

    # Unroll vs vreg pressure: one f32 gate slab per direction is Bt*4H*4 bytes.
    slab_bytes = Bt * H4 * 4
    if T <= 16:
        unroll = True
    elif slab_bytes <= 16 * 1024:
        unroll = 4
    elif slab_bytes <= 48 * 1024:
        unroll = 2
    else:
        unroll = 1

    hf, _, hb, _ = lax.fori_loop(0, T, step,
                                 (zeros_h, zeros_h, zeros_h, zeros_h),
                                 unroll=unroll)

    # ---- concat final hidden states, (eval) dropout = identity, linear head ----
    hidden = jnp.concatenate([hf, hb], axis=1)                # (Bt, 2H)
    out = jnp.dot(hidden, wo_ref[...], preferred_element_type=jnp.float32) + bo_ref[...]
    out_ref[...] = out.astype(out_ref.dtype)                  # lane-dense (Bt, Cp) store


def init_params(key, vocab_size, embedding_dim, hidden_dim, num_class):
    ks = jax.random.split(key, 12)
    H, E, C = hidden_dim, embedding_dim, num_class
    s_lstm = 1.0 / jnp.sqrt(jnp.float32(H))
    s_lin = 1.0 / jnp.sqrt(jnp.float32(2 * H))
    u = lambda k, shape, s: jax.random.uniform(k, shape, jnp.float32, -s, s)
    return {
        "emb":      jax.random.normal(ks[0], (vocab_size, E), jnp.float32),
        # PyTorch layout: weight_ih (4H, E), weight_hh (4H, H), biases (4H,), gate order [i,f,g,o]
        "w_ih_f":   u(ks[1], (4 * H, E), s_lstm),
        "w_hh_f":   u(ks[2], (4 * H, H), s_lstm),
        "b_ih_f":   u(ks[3], (4 * H,), s_lstm),
        "b_hh_f":   u(ks[4], (4 * H,), s_lstm),
        "w_ih_b":   u(ks[5], (4 * H, E), s_lstm),
        "w_hh_b":   u(ks[6], (4 * H, H), s_lstm),
        "b_ih_b":   u(ks[7], (4 * H,), s_lstm),
        "b_hh_b":   u(ks[8], (4 * H,), s_lstm),
        "w_out":    u(ks[9], (C, 2 * H), s_lin),
        "b_out":    u(ks[10], (C,), s_lin),
    }


@functools.partial(jax.jit, static_argnames=("batch_tile", "matmul_dtype"))
def lstm_forward(token_ids, lengths, params, *, batch_tile=128,
                 matmul_dtype=jnp.float32):
    """token_ids: (B, T) int32, lengths: (B,) int32 -> logits (B, num_class) float32."""
    B, T = token_ids.shape
    E = params["emb"].shape[1]
    H = params["w_hh_f"].shape[1]
    C = params["w_out"].shape[0]
    H4 = 4 * H
    Cp = _round_up(C, 128)                       # lane-dense output width
    md = matmul_dtype
    md_size = jnp.dtype(md).itemsize

    # ---- VMEM budget (generation-aware: v7x has 64 MiB, v5e/v6e 128 MiB) ----
    try:
        vmem_cap = int(pltpu.get_tpu_info().vmem_capacity_bytes)
    except Exception:
        vmem_cap = 64 * 1024 * 1024              # conservative (v7x) fallback
    budget = int(vmem_cap * 0.55)
    vmem_limit = min(int(vmem_cap * 0.75), 96 * 1024 * 1024)

    def vmem_need(bt):
        gx = 2 * T * bt * H4 * 4                              # per-direction f32 gate slabs
        xb = 2 * T * bt * E * md_size                         # double-buffered x block
        wts = 2 * ((2 * E * H4 + 2 * H * H4) * md_size + (2 * H * Cp + Cp) * 4)
        ob = 2 * bt * Cp * 4
        return gx + xb + wts + ob

    # ---- batch tile: as big as the MXU wants, clamped by batch and VMEM budget ----
    Bt = max(8, (min(batch_tile, _round_up(B, 8)) // 8) * 8)
    while Bt > 8 and vmem_need(Bt) > budget:
        Bt = max(8, ((Bt // 2) // 8) * 8)
    # TODO(synk): for very long T at the minimum Bt=8 the gate slabs can still exceed
    # the budget; chunking the input projection over time (pltpu.emit_pipeline) would
    # make the footprint O(T_chunk) instead of O(T).
    B_pad = _round_up(B, Bt)
    n_tiles = B_pad // Bt
    # v7x megacore: prefer >= 2 grid tiles so the "parallel" axis feeds both TensorCores.
    if n_tiles == 1 and B_pad >= 16:
        Bt = max(8, _round_up(B_pad // 2, 8))
        B_pad = _round_up(B, Bt)
        n_tiles = B_pad // Bt

    ids = jnp.pad(token_ids.astype(jnp.int32), ((0, B_pad - B), (0, 0)))
    lens = jnp.pad(lengths.astype(jnp.int32), (0, B_pad - B)).reshape(B_pad, 1)

    # Gather embeddings directly into the (n_tiles, T*Bt, E) layout the kernel consumes
    # (time-major within each batch tile); the transpose happens on the tiny id array.
    ids_tiled = ids.reshape(n_tiles, Bt, T).transpose(0, 2, 1).reshape(n_tiles, T * Bt)
    x = jnp.take(params["emb"], ids_tiled, axis=0).astype(md)
    # TODO(synk): embedding gather still runs in XLA; fusing it into the kernel
    # (scalar-prefetched ids + HBM row gather) would cut input-path HBM traffic,
    # biggest win on v5e.

    # Permute gate columns [i, f, g, o] (PyTorch) -> [i, f, o, g] so sigmoid covers a
    # contiguous 3H block and tanh the trailing H block inside the kernel.
    def reorder(w4h):
        return jnp.concatenate([w4h[..., 0:H], w4h[..., H:2 * H],
                                w4h[..., 3 * H:4 * H], w4h[..., 2 * H:3 * H]], axis=-1)

    w_if = reorder(params["w_ih_f"].T).astype(md)             # (E, 4H)
    w_ib = reorder(params["w_ih_b"].T).astype(md)
    w_hf = reorder(params["w_hh_f"].T).astype(md)             # (H, 4H)
    w_hb = reorder(params["w_hh_b"].T).astype(md)
    b_if = reorder((params["b_ih_f"] + params["b_hh_f"]).reshape(1, H4)).astype(jnp.float32)
    b_ib = reorder((params["b_ih_b"] + params["b_hh_b"]).reshape(1, H4)).astype(jnp.float32)
    w_o = jnp.zeros((2 * H, Cp), jnp.float32).at[:, :C].set(params["w_out"].T)
    b_o = jnp.zeros((1, Cp), jnp.float32).at[:, :C].set(params["b_out"])

    out = pl.pallas_call(
        _bilstm_head_kernel,
        out_shape=jax.ShapeDtypeStruct((B_pad, Cp), jnp.float32),
        grid=(n_tiles,),
        in_specs=[
            pl.BlockSpec((None, T * Bt, E), lambda b: (b, 0, 0)),   # x (batch tile)
            pl.BlockSpec((Bt, 1),           lambda b: (b, 0)),      # lengths
            pl.BlockSpec((E, H4),           lambda b: (0, 0)),      # W_ih fwd
            pl.BlockSpec((E, H4),           lambda b: (0, 0)),      # W_ih bwd
            pl.BlockSpec((1, H4),           lambda b: (0, 0)),      # fused bias fwd
            pl.BlockSpec((1, H4),           lambda b: (0, 0)),      # fused bias bwd
            pl.BlockSpec((H, H4),           lambda b: (0, 0)),      # W_hh fwd
            pl.BlockSpec((H, H4),           lambda b: (0, 0)),      # W_hh bwd
            pl.BlockSpec((2 * H, Cp),       lambda b: (0, 0)),      # W_out (lane-padded)
            pl.BlockSpec((1, Cp),           lambda b: (0, 0)),      # b_out
        ],
        out_specs=pl.BlockSpec((Bt, Cp), lambda b: (b, 0)),
        scratch_shapes=[pltpu.VMEM((T * Bt, H4), jnp.float32),      # fwd gate slab
                        pltpu.VMEM((T * Bt, H4), jnp.float32)],     # bwd gate slab
        compiler_params=pltpu.CompilerParams(
            dimension_semantics=("parallel",),
            vmem_limit_bytes=vmem_limit),
    )(x, lens, w_if, w_ib, b_if, b_ib, w_hf, w_hb, w_o, b_o)

    return out[:B, :C]


def _reference_forward(token_ids, lengths, params):
    """Pure-JAX reference mirroring PyTorch packed bi-LSTM semantics."""
    B, T = token_ids.shape
    H = params["w_hh_f"].shape[1]
    emb = jnp.take(params["emb"], token_ids, axis=0)          # (B, T, E)

    def run_dir(w_ih, w_hh, b_ih, b_hh, reverse):
        def cell(x_t, h, c):
            g = x_t @ w_ih.T + h @ w_hh.T + b_ih + b_hh
            i, f, gg, o = jnp.split(g, 4, axis=1)
            c_new = jax.nn.sigmoid(f) * c + jax.nn.sigmoid(i) * jnp.tanh(gg)
            h_new = jax.nn.sigmoid(o) * jnp.tanh(c_new)
            return h_new, c_new

        h = jnp.zeros((B, H), jnp.float32)
        c = jnp.zeros((B, H), jnp.float32)
        ts = range(T - 1, -1, -1) if reverse else range(T)
        for t in ts:
            h_new, c_new = cell(emb[:, t, :], h, c)
            valid = (t < lengths)[:, None]
            h = jnp.where(valid, h_new, h)
            c = jnp.where(valid, c_new, c)
        return h

    h_f = run_dir(params["w_ih_f"], params["w_hh_f"], params["b_ih_f"], params["b_hh_f"], False)
    h_b = run_dir(params["w_ih_b"], params["w_hh_b"], params["b_ih_b"], params["b_hh_b"], True)
    hidden = jnp.concatenate([h_f, h_b], axis=1)
    return hidden @ params["w_out"].T + params["b_out"]


if __name__ == "__main__":
    key = jax.random.PRNGKey(0)
    kp, ki = jax.random.split(key)

    VOCAB, EMB, NCLASS = 100, 32, 4
    B, T = 2, 8
    token_ids = jax.random.randint(ki, (B, T), 0, VOCAB, dtype=jnp.int32)
    lengths = jnp.array([8, 5], dtype=jnp.int32)

    # ---- small hidden (H=32): exercises the lane-mask activation fallback ----
    params = init_params(kp, VOCAB, EMB, 32, NCLASS)
    out = jax.block_until_ready(lstm_forward(token_ids, lengths, params))
    ref = _reference_forward(token_ids, lengths, params)
    assert out.shape == (B, NCLASS)
    assert jnp.allclose(out, ref, atol=2e-3, rtol=2e-3), (out, ref)

    # ---- lane-aligned hidden (H=128): exercises the halved-EUP sigmoid/tanh split ----
    params2 = init_params(kp, VOCAB, EMB, 128, NCLASS)
    out2 = jax.block_until_ready(lstm_forward(token_ids, lengths, params2))
    ref2 = _reference_forward(token_ids, lengths, params2)
    assert out2.shape == (B, NCLASS)
    assert jnp.allclose(out2, ref2, atol=2e-3, rtol=2e-3), (out2, ref2)

    print("KERNEL_OK")
</pallas_src>

<mosaic_0001>
module attributes {stable_mosaic.version = 11 : i64} {
  func.func @_bilstm_head_kernel(%arg0: i32, %arg1: memref<1x64x32xf32, #tpu.memory_space<vmem>>, %arg2: memref<8x1xi32, #tpu.memory_space<vmem>>, %arg3: memref<32x128xf32, #tpu.memory_space<vmem>>, %arg4: memref<32x128xf32, #tpu.memory_space<vmem>>, %arg5: memref<1x128xf32, #tpu.memory_space<vmem>>, %arg6: memref<1x128xf32, #tpu.memory_space<vmem>>, %arg7: memref<32x128xf32, #tpu.memory_space<vmem>>, %arg8: memref<32x128xf32, #tpu.memory_space<vmem>>, %arg9: memref<64x128xf32, #tpu.memory_space<vmem>>, %arg10: memref<1x128xf32, #tpu.memory_space<vmem>>, %arg11: memref<8x128xf32, #tpu.memory_space<vmem>>, %arg12: memref<64x128xf32, #tpu.memory_space<vmem>>, %arg13: memref<64x128xf32, #tpu.memory_space<vmem>>) attributes {dimension_semantics = [#tpu.dimension_semantics<parallel>], iteration_bounds = array<i64: 1>, scalar_prefetch = 0 : i64, scratch_operands = 2 : i64, tpu.core_type = #tpu.core_type<tc>, window_params = [{transform_indices = @transform_0, window_bounds = array<i64: 1, 64, 32>}, {transform_indices = @transform_1, window_bounds = array<i64: 8, 1>}, {pipeline_mode = #tpu.pipeline_mode<synchronous>, transform_indices = @transform_2, window_bounds = array<i64: 32, 128>}, {pipeline_mode = #tpu.pipeline_mode<synchronous>, transform_indices = @transform_3, window_bounds = array<i64: 32, 128>}, {pipeline_mode = #tpu.pipeline_mode<synchronous>, transform_indices = @transform_4, window_bounds = array<i64: 1, 128>}, {pipeline_mode = #tpu.pipeline_mode<synchronous>, transform_indices = @transform_5, window_bounds = array<i64: 1, 128>}, {pipeline_mode = #tpu.pipeline_mode<synchronous>, transform_indices = @transform_6, window_bounds = array<i64: 32, 128>}, {pipeline_mode = #tpu.pipeline_mode<synchronous>, transform_indices = @transform_7, window_bounds = array<i64: 32, 128>}, {pipeline_mode = #tpu.pipeline_mode<synchronous>, transform_indices = @transform_8, window_bounds = array<i64: 64, 128>}, {pipeline_mode = #tpu.pipeline_mode<synchronous>, transform_indices = @transform_9, window_bounds = array<i64: 1, 128>}, {transform_indices = @transform_10, window_bounds = array<i64: 8, 128>}]} {
    %c0 = arith.constant 0 : index
    %c0_0 = arith.constant 0 : index
    %c0_1 = arith.constant 0 : index
    %0 = vector.load %arg1[%c0, %c0_0, %c0_1] : memref<1x64x32xf32, #tpu.memory_space<vmem>>, vector<1x64x32xf32>
    %1 = vector.shape_cast %0 : vector<1x64x32xf32> to vector<64x32xf32>
    %c0_2 = arith.constant 0 : index
    %c0_3 = arith.constant 0 : index
    %2 = vector.load %arg3[%c0_2, %c0_3] : memref<32x128xf32, #tpu.memory_space<vmem>>, vector<32x128xf32>
    %cst = arith.constant dense<0.000000e+00> : vector<64x128xf32>
    %3 = tpu.matmul %1, %2, %cst {dimension_numbers = #tpu.dot_dimension_numbers<[1], [0], [0], [1], [0, 0, 1, 1], [], []>, precision = #tpu.contract_precision<fp32>} : vector<64x32xf32>, vector<32x128xf32>, vector<64x128xf32> -> vector<64x128xf32>
    %c0_4 = arith.constant 0 : index
    %c0_5 = arith.constant 0 : index
    %4 = vector.load %arg5[%c0_4, %c0_5] : memref<1x128xf32, #tpu.memory_space<vmem>>, vector<1x128xf32>
    %5 = vector.broadcast %4 : vector<1x128xf32> to vector<64x128xf32>
    %6 = arith.addf %3, %5 : vector<64x128xf32>
    %c0_6 = arith.constant 0 : index
    %c0_7 = arith.constant 0 : index
    %7 = vector.load %arg12[%c0_6, %c0_7] : memref<64x128xf32, #tpu.memory_space<vmem>>, vector<64x128xf32>
    tpu.vector_store %arg12[%c0_6, %c0_7], %6 {strides = array<i32>} : memref<64x128xf32, #tpu.memory_space<vmem>>, vector<64x128xf32>,
    %c0_8 = arith.constant 0 : index
    %c0_9 = arith.constant 0 : index
    %8 = vector.load %arg4[%c0_8, %c0_9] : memref<32x128xf32, #tpu.memory_space<vmem>>, vector<32x128xf32>
    %cst_10 = arith.constant dense<0.000000e+00> : vector<64x128xf32>
    %9 = tpu.matmul %1, %8, %cst_10 {dimension_numbers = #tpu.dot_dimension_numbers<[1], [0], [0], [1], [0, 0, 1, 1], [], []>, precision = #tpu.contract_precision<fp32>} : vector<64x32xf32>, vector<32x128xf32>, vector<64x128xf32> -> vector<64x128xf32>
    %c0_11 = arith.constant 0 : index
    %c0_12 = arith.constant 0 : index
    %10 = vector.load %arg6[%c0_11, %c0_12] : memref<1x128xf32, #tpu.memory_space<vmem>>, vector<1x128xf32>
    %11 = vector.broadcast %10 : vector<1x128xf32> to vector<64x128xf32>
    %12 = arith.addf %9, %11 : vector<64x128xf32>
    %c0_13 = arith.constant 0 : index
    %c0_14 = arith.constant 0 : index
    %13 = vector.load %arg13[%c0_13, %c0_14] : memref<64x128xf32, #tpu.memory_space<vmem>>, vector<64x128xf32>
    tpu.vector_store %arg13[%c0_13, %c0_14], %12 {strides = array<i32>} : memref<64x128xf32, #tpu.memory_space<vmem>>, vector<64x128xf32>,
    %c0_15 = arith.constant 0 : index
    %c0_16 = arith.constant 0 : index
    %14 = vector.load %arg2[%c0_15, %c0_16] : memref<8x1xi32, #tpu.memory_space<vmem>>, vector<8x1xi32>
    %c0_17 = arith.constant 0 : index
    %c0_18 = arith.constant 0 : index
    %15 = vector.load %arg7[%c0_17, %c0_18] : memref<32x128xf32, #tpu.memory_space<vmem>>, vector<32x128xf32>
    %c0_19 = arith.constant 0 : index
    %c0_20 = arith.constant 0 : index
    %16 = vector.load %arg8[%c0_19, %c0_20] : memref<32x128xf32, #tpu.memory_space<vmem>>, vector<32x128xf32>
    %17 = tpu.iota {dimensions = array<i32: 1>} : vector<8x128xi32>
    %c96_i32 = arith.constant 96 : i32
    %18 = vector.broadcast %c96_i32 : i32 to vector<8x128xi32>
    %19 = arith.cmpi sge, %17, %18 : vector<8x128xi32>
    %cst_21 = arith.constant 0.000000e+00 : f32
    %20 = vector.broadcast %cst_21 : f32 to vector<8x32xf32>
    %c0_i32 = arith.constant 0 : i32
    %c7_i32 = arith.constant 7 : i32
    %21 = arith.subi %c7_i32, %c0_i32 : i32
    %c8_i32 = arith.constant 8 : i32
    %22 = arith.muli %c0_i32, %c8_i32 : i32
    %23 = tpu.assume_multiple %22, 8 : i32
    %c8_i32_22 = arith.constant 8 : i32
    %24 = arith.muli %21, %c8_i32_22 : i32
    %25 = tpu.assume_multiple %24, 8 : i32
    %26 = arith.index_cast %23 : i32 to index
    %c0_23 = arith.constant 0 : index
    %27 = vector.load %arg12[%26, %c0_23] : memref<64x128xf32, #tpu.memory_space<vmem>>, vector<8x128xf32>
    %28 = arith.index_cast %25 : i32 to index
    %c0_24 = arith.constant 0 : index
    %29 = vector.load %arg13[%28, %c0_24] : memref<64x128xf32, #tpu.memory_space<vmem>>, vector<8x128xf32>
    %cst_25 = arith.constant dense<0.000000e+00> : vector<8x128xf32>
    %30 = tpu.matmul %20, %15, %cst_25 {dimension_numbers = #tpu.dot_dimension_numbers<[1], [0], [0], [1], [0, 0, 1, 1], [], []>, precision = #tpu.contract_precision<fp32>} : vector<8x32xf32>, vector<32x128xf32>, vector<8x128xf32> -> vector<8x128xf32>
    %31 = arith.addf %27, %30 : vector<8x128xf32>
    %32 = math.tanh %31 : vector<8x128xf32>
    %33 = arith.negf %31 : vector<8x128xf32>
    %34 = math.exp %33 : vector<8x128xf32>
    %cst_26 = arith.constant 1.000000e+00 : f32
    %35 = vector.broadcast %cst_26 : f32 to vector<8x128xf32>
    %36 = arith.addf %35, %34 : vector<8x128xf32>
    %37 = arith.divf %35, %36 : vector<8x128xf32>
    %38 = arith.select %19, %32, %37 : vector<8x128xi1>, vector<8x128xf32>
    %39 = vector.extract_strided_slice %38 {offsets = [0, 0], sizes = [8, 32], strides = [1, 1]} : vector<8x128xf32> to vector<8x32xf32>
    %40 = vector.extract_strided_slice %38 {offsets = [0, 32], sizes = [8, 32], strides = [1, 1]} : vector<8x128xf32> to vector<8x32xf32>
    %41 = vector.extract_strided_slice %38 {offsets = [0, 64], sizes = [8, 32], strides = [1, 1]} : vector<8x128xf32> to vector<8x32xf32>
    %42 = vector.extract_strided_slice %38 {offsets = [0, 96], sizes = [8, 32], strides = [1, 1]} : vector<8x128xf32> to vector<8x32xf32>
    %43 = arith.mulf %40, %20 : vector<8x32xf32>
    %44 = arith.mulf %39, %42 : vector<8x32xf32>
    %45 = arith.addf %43, %44 : vector<8x32xf32>
    %46 = math.tanh %45 : vector<8x32xf32>
    %47 = arith.mulf %41, %46 : vector<8x32xf32>
    %cst_27 = arith.constant dense<0.000000e+00> : vector<8x128xf32>
    %48 = tpu.matmul %20, %16, %cst_27 {dimension_numbers = #tpu.dot_dimension_numbers<[1], [0], [0], [1], [0, 0, 1, 1], [], []>, precision = #tpu.contract_precision<fp32>} : vector<8x32xf32>, vector<32x128xf32>, vector<8x128xf32> -> vector<8x128xf32>
    %49 = arith.addf %29, %48 : vector<8x128xf32>
    %50 = math.tanh %49 : vector<8x128xf32>
    %51 = arith.negf %49 : vector<8x128xf32>
    %52 = math.exp %51 : vector<8x128xf32>
    %cst_28 = arith.constant 1.000000e+00 : f32
    %53 = vector.broadcast %cst_28 : f32 to vector<8x128xf32>
    %54 = arith.addf %53, %52 : vector<8x128xf32>
    %55 = arith.divf %53, %54 : vector<8x128xf32>
    %56 = arith.select %19, %50, %55 : vector<8x128xi1>, vector<8x128xf32>
    %57 = vector.extract_strided_slice %56 {offsets = [0, 0], sizes = [8, 32], strides = [1, 1]} : vector<8x128xf32> to vector<8x32xf32>
    %58 = vector.extract_strided_slice %56 {offsets = [0, 32], sizes = [8, 32], strides = [1, 1]} : vector<8x128xf32> to vector<8x32xf32>
    %59 = vector.extract_strided_slice %56 {offsets = [0, 64], sizes = [8, 32], strides = [1, 1]} : vector<8x128xf32> to vector<8x32xf32>
    %60 = vector.extract_strided_slice %56 {offsets = [0, 96], sizes = [8, 32], strides = [1, 1]} : vector<8x128xf32> to vector<8x32xf32>
    %61 = arith.mulf %58, %20 : vector<8x32xf32>
    %62 = arith.mulf %57, %60 : vector<8x32xf32>
    %63 = arith.addf %61, %62 : vector<8x32xf32>
    %64 = math.tanh %63 : vector<8x32xf32>
    %65 = arith.mulf %59, %64 : vector<8x32xf32>
    %66 = vector.broadcast %c0_i32 : i32 to vector<8x1xi32>
    %67 = arith.cmpi slt, %66, %14 : vector<8x1xi32>
    %68 = vector.broadcast %21 : i32 to vector<8x1xi32>
    %69 = arith.cmpi slt, %68, %14 : vector<8x1xi32>
    %70 = vector.shape_cast %67 : vector<8x1xi1> to vector<8x1xi1>
    %71 = vector.broadcast %70 : vector<8x1xi1> to vector<8x32xi1>
    %72 = arith.select %71, %47, %20 : vector<8x32xi1>, vector<8x32xf32>
    %73 = vector.shape_cast %67 : vector<8x1xi1> to vector<8x1xi1>
    %74 = vector.broadcast %73 : vector<8x1xi1> to vector<8x32xi1>
    %75 = arith.select %74, %45, %20 : vector<8x32xi1>, vector<8x32xf32>
    %76 = vector.shape_cast %69 : vector<8x1xi1> to vector<8x1xi1>
    %77 = vector.broadcast %76 : vector<8x1xi1> to vector<8x32xi1>
    %78 = arith.select %77, %65, %20 : vector<8x32xi1>, vector<8x32xf32>
    %79 = vector.shape_cast %69 : vector<8x1xi1> to vector<8x1xi1>
    %80 = vector.broadcast %79 : vector<8x1xi1> to vector<8x32xi1>
    %81 = arith.select %80, %63, %20 : vector<8x32xi1>, vector<8x32xf32>
    %c1_i32 = arith.constant 1 : i32
    %c7_i32_29 = arith.constant 7 : i32
    %82 = arith.subi %c7_i32_29, %c1_i32 : i32
    %c8_i32_30 = arith.constant 8 : i32
    %83 = arith.muli %c1_i32, %c8_i32_30 : i32
    %84 = tpu.assume_multiple %83, 8 : i32
    %c8_i32_31 = arith.constant 8 : i32
    %85 = arith.muli %82, %c8_i32_31 : i32
    %86 = tpu.assume_multiple %85, 8 : i32
    %87 = arith.index_cast %84 : i32 to index
    %c0_32 = arith.constant 0 : index
    %88 = vector.load %arg12[%87, %c0_32] : memref<64x128xf32, #tpu.memory_space<vmem>>, vector<8x128xf32>
    %89 = arith.index_cast %86 : i32 to index
    %c0_33 = arith.constant 0 : index
    %90 = vector.load %arg13[%89, %c0_33] : memref<64x128xf32, #tpu.memory_space<vmem>>, vector<8x128xf32>
    %cst_34 = arith.constant dense<0.000000e+00> : vector<8x128xf32>
    %91 = tpu.matmul %72, %15, %cst_34 {dimension_numbers = #tpu.dot_dimension_numbers<[1], [0], [0], [1], [0, 0, 1, 1], [], []>, precision = #tpu.contract_precision<fp32>} : vector<8x32xf32>, vector<32x128xf32>, vector<8x128xf32> -> vector<8x128xf32>
    %92 = arith.addf %88, %91 : vector<8x128xf32>
    %93 = math.tanh %92 : vector<8x128xf32>
    %94 = arith.negf %92 : vector<8x128xf32>
    %95 = math.exp %94 : vector<8x128xf32>
    %cst_35 = arith.constant 1.000000e+00 : f32
    %96 = vector.broadcast %cst_35 : f32 to vector<8x128xf32>
    %97 = arith.addf %96, %95 : vector<8x128xf32>
    %98 = arith.divf %96, %97 : vector<8x128xf32>
    %99 = arith.select %19, %93, %98 : vector<8x128xi1>, vector<8x128xf32>
    %100 = vector.extract_strided_slice %99 {offsets = [0, 0], sizes = [8, 32], strides = [1, 1]} : vector<8x128xf32> to vector<8x32xf32>
    %101 = vector.extract_strided_slice %99 {offsets = [0, 32], sizes = [8, 32], strides = [1, 1]} : vector<8x128xf32> to vector<8x32xf32>
    %102 = vector.extract_strided_slice %99 {offsets = [0, 64], sizes = [8, 32], strides = [1, 1]} : vector<8x128xf32> to vector<8x32xf32>
    %103 = vector.extract_strided_slice %99 {offsets = [0, 96], sizes = [8, 32], strides = [1, 1]} : vector<8x128xf32> to vector<8x32xf32>
    %104 = arith.mulf %101, %75 : vector<8x32xf32>
    %105 = arith.mulf %100, %103 : vector<8x32xf32>
    %106 = arith.addf %104, %105 : vector<8x32xf32>
    %107 = math.tanh %106 : vector<8x32xf32>
    %108 = arith.mulf %102, %107 : vector<8x32xf32>
    %cst_36 = arith.constant dense<0.000000e+00> : vector<8x128xf32>
    %109 = tpu.matmul %78, %16, %cst_36 {dimension_numbers = #tpu.dot_dimension_numbers<[1], [0], [0], [1], [0, 0, 1, 1], [], []>, precision = #tpu.contract_precision<fp32>} : vector<8x32xf32>, vector<32x128xf32>, vector<8x128xf32> -> vector<8x128xf32>
    %110 = arith.addf %90, %109 : vector<8x128xf32>
    %111 = math.tanh %110 : vector<8x128xf32>
    %112 = arith.negf %110 : vector<8x128xf32>
    %113 = math.exp %112 : vector<8x128xf32>
    %cst_37 = arith.constant 1.000000e+00 : f32
    %114 = vector.broadcast %cst_37 : f32 to vector<8x128xf32>
    %115 = arith.addf %114, %113 : vector<8x128xf32>
    %116 = arith.divf %114, %115 : vector<8x128xf32>
    %117 = arith.select %19, %111, %116 : vector<8x128xi1>, vector<8x128xf32>
    %118 = vector.extract_strided_slice %117 {offsets = [0, 0], sizes = [8, 32], strides = [1, 1]} : vector<8x128xf32> to vector<8x32xf32>
    %119 = vector.extract_strided_slice %117 {offsets = [0, 32], sizes = [8, 32], strides = [1, 1]} : vector<8x128xf32> to vector<8x32xf32>
    %120 = vector.extract_strided_slice %117 {offsets = [0, 64], sizes = [8, 32], strides = [1, 1]} : vector<8x128xf32> to vector<8x32xf32>
    %121 = vector.extract_strided_slice %117 {offsets = [0, 96], sizes = [8, 32], strides = [1, 1]} : vector<8x128xf32> to vector<8x32xf32>
    %122 = arith.mulf %119, %81 : vector<8x32xf32>
    %123 = arith.mulf %118, %121 : vector<8x32xf32>
    %124 = arith.addf %122, %123 : vector<8x32xf32>
    %125 = math.tanh %124 : vector<8x32xf32>
    %126 = arith.mulf %120, %125 : vector<8x32xf32>
    %127 = vector.broadcast %c1_i32 : i32 to vector<8x1xi32>
    %128 = arith.cmpi slt, %127, %14 : vector<8x1xi32>
    %129 = vector.broadcast %82 : i32 to vector<8x1xi32>
    %130 = arith.cmpi slt, %129, %14 : vector<8x1xi32>
    %131 = vector.shape_cast %128 : vector<8x1xi1> to vector<8x1xi1>
    %132 = vector.broadcast %131 : vector<8x1xi1> to vector<8x32xi1>
    %133 = arith.select %132, %108, %72 : vector<8x32xi1>, vector<8x32xf32>
    %134 = vector.shape_cast %128 : vector<8x1xi1> to vector<8x1xi1>
    %135 = vector.broadcast %134 : vector<8x1xi1> to vector<8x32xi1>
    %136 = arith.select %135, %106, %75 : vector<8x32xi1>, vector<8x32xf32>
    %137 = vector.shape_cast %130 : vector<8x1xi1> to vector<8x1xi1>
    %138 = vector.broadcast %137 : vector<8x1xi1> to vector<8x32xi1>
    %139 = arith.select %138, %126, %78 : vector<8x32xi1>, vector<8x32xf32>
    %140 = vector.shape_cast %130 : vector<8x1xi1> to vector<8x1xi1>
    %141 = vector.broadcast %140 : vector<8x1xi1> to vector<8x32xi1>
    %142 = arith.select %141, %124, %81 : vector<8x32xi1>, vector<8x32xf32>
    %c2_i32 = arith.constant 2 : i32
    %c7_i32_38 = arith.constant 7 : i32
    %143 = arith.subi %c7_i32_38, %c2_i32 : i32
    %c8_i32_39 = arith.constant 8 : i32
    %144 = arith.muli %c2_i32, %c8_i32_39 : i32
    %145 = tpu.assume_multiple %144, 8 : i32
    %c8_i32_40 = arith.constant 8 : i32
    %146 = arith.muli %143, %c8_i32_40 : i32
    %147 = tpu.assume_multiple %146, 8 : i32
    %148 = arith.index_cast %145 : i32 to index
    %c0_41 = arith.constant 0 : index
    %149 = vector.load %arg12[%148, %c0_41] : memref<64x128xf32, #tpu.memory_space<vmem>>, vector<8x128xf32>
    %150 = arith.index_cast %147 : i32 to index
    %c0_42 = arith.constant 0 : index
    %151 = vector.load %arg13[%150, %c0_42] : memref<64x128xf32, #tpu.memory_space<vmem>>, vector<8x128xf32>
    %cst_43 = arith.constant dense<0.000000e+00> : vector<8x128xf32>
    %152 = tpu.matmul %133, %15, %cst_43 {dimension_numbers = #tpu.dot_dimension_numbers<[1], [0], [0], [1], [0, 0, 1, 1], [], []>, precision = #tpu.contract_precision<fp32>} : vector<8x32xf32>, vector<32x128xf32>, vector<8x128xf32> -> vector<8x128xf32>
    %153 = arith.addf %149, %152 : vector<8x128xf32>
    %154 = math.tanh %153 : vector<8x128xf32>
    %155 = arith.negf %153 : vector<8x128xf32>
    %156 = math.exp %155 : vector<8x128xf32>
    %cst_44 = arith.constant 1.000000e+00 : f32
    %157 = vector.broadcast %cst_44 : f32 to vector<8x128xf32>
    %158 = arith.addf %157, %156 : vector<8x128xf32>
    %159 = arith.divf %157, %158 : vector<8x128xf32>
    %160 = arith.select %19, %154, %159 : vector<8x128xi1>, vector<8x128xf32>
    %161 = vector.extract_strided_slice %160 {offsets = [0, 0], sizes = [8, 32], strides = [1, 1]} : vector<8x128xf32> to vector<8x32xf32>
    %162 = vector.extract_strided_slice %160 {offsets = [0, 32], sizes = [8, 32], strides = [1, 1]} : vector<8x128xf32> to vector<8x32xf32>
    %163 = vector.extract_strided_slice %160 {offsets = [0, 64], sizes = [8, 32], strides = [1, 1]} : vector<8x128xf32> to vector<8x32xf32>
    %164 = vector.extract_strided_slice %160 {offsets = [0, 96], sizes = [8, 32], strides = [1, 1]} : vector<8x128xf32> to vector<8x32xf32>
    %165 = arith.mulf %162, %136 : vector<8x32xf32>
    %166 = arith.mulf %161, %164 : vector<8x32xf32>
    %167 = arith.addf %165, %166 : vector<8x32xf32>
    %168 = math.tanh %167 : vector<8x32xf32>
    %169 = arith.mulf %163, %168 : vector<8x32xf32>
    %cst_45 = arith.constant dense<0.000000e+00> : vector<8x128xf32>
    %170 = tpu.matmul %139, %16, %cst_45 {dimension_numbers = #tpu.dot_dimension_numbers<[1], [0], [0], [1], [0, 0, 1, 1], [], []>, precision = #tpu.contract_precision<fp32>} : vector<8x32xf32>, vector<32x128xf32>, vector<8x128xf32> -> vector<8x128xf32>
    %171 = arith.addf %151, %170 : vector<8x128xf32>
    %172 = math.tanh %171 : vector<8x128xf32>
    %173 = arith.negf %171 : vector<8x128xf32>
    %174 = math.exp %173 : vector<8x128xf32>
    %cst_46 = arith.constant 1.000000e+00 : f32
    %175 = vector.broadcast %cst_46 : f32 to vector<8x128xf32>
    %176 = arith.addf %175, %174 : vector<8x128xf32>
    %177 = arith.divf %175, %176 : vector<8x128xf32>
    %178 = arith.select %19, %172, %177 : vector<8x128xi1>, vector<8x128xf32>
    %179 = vector.extract_strided_slice %178 {offsets = [0, 0], sizes = [8, 32], strides = [1, 1]} : vector<8x128xf32> to vector<8x32xf32>
    %180 = vector.extract_strided_slice %178 {offsets = [0, 32], sizes = [8, 32], strides = [1, 1]} : vector<8x128xf32> to vector<8x32xf32>
    %181 = vector.extract_strided_slice %178 {offsets = [0, 64], sizes = [8, 32], strides = [1, 1]} : vector<8x128xf32> to vector<8x32xf32>
    %182 = vector.extract_strided_slice %178 {offsets = [0, 96], sizes = [8, 32], strides = [1, 1]} : vector<8x128xf32> to vector<8x32xf32>
    %183 = arith.mulf %180, %142 : vector<8x32xf32>
    %184 = arith.mulf %179, %182 : vector<8x32xf32>
    %185 = arith.addf %183, %184 : vector<8x32xf32>
    %186 = math.tanh %185 : vector<8x32xf32>
    %187 = arith.mulf %181, %186 : vector<8x32xf32>
    %188 = vector.broadcast %c2_i32 : i32 to vector<8x1xi32>
    %189 = arith.cmpi slt, %188, %14 : vector<8x1xi32>
    %190 = vector.broadcast %143 : i32 to vector<8x1xi32>
    %191 = arith.cmpi slt, %190, %14 : vector<8x1xi32>
    %192 = vector.shape_cast %189 : vector<8x1xi1> to vector<8x1xi1>
    %193 = vector.broadcast %192 : vector<8x1xi1> to vector<8x32xi1>
    %194 = arith.select %193, %169, %133 : vector<8x32xi1>, vector<8x32xf32>
    %195 = vector.shape_cast %189 : vector<8x1xi1> to vector<8x1xi1>
    %196 = vector.broadcast %195 : vector<8x1xi1> to vector<8x32xi1>
    %197 = arith.select %196, %167, %136 : vector<8x32xi1>, vector<8x32xf32>
    %198 = vector.shape_cast %191 : vector<8x1xi1> to vector<8x1xi1>
    %199 = vector.broadcast %198 : vector<8x1xi1> to vector<8x32xi1>
    %200 = arith.select %199, %187, %139 : vector<8x32xi1>, vector<8x32xf32>
    %201 = vector.shape_cast %191 : vector<8x1xi1> to vector<8x1xi1>
    %202 = vector.broadcast %201 : vector<8x1xi1> to vector<8x32xi1>
    %203 = arith.select %202, %185, %142 : vector<8x32xi1>, vector<8x32xf32>
    %c3_i32 = arith.constant 3 : i32
    %c7_i32_47 = arith.constant 7 : i32
    %204 = arith.subi %c7_i32_47, %c3_i32 : i32
    %c8_i32_48 = arith.constant 8 : i32
    %205 = arith.muli %c3_i32, %c8_i32_48 : i32
    %206 = tpu.assume_multiple %205, 8 : i32
    %c8_i32_49 = arith.constant 8 : i32
    %207 = arith.muli %204, %c8_i32_49 : i32
    %208 = tpu.assume_multiple %207, 8 : i32
    %209 = arith.index_cast %206 : i32 to index
    %c0_50 = arith.constant 0 : index
    %210 = vector.load %arg12[%209, %c0_50] : memref<64x128xf32, #tpu.memory_space<vmem>>, vector<8x128xf32>
    %211 = arith.index_cast %208 : i32 to index
    %c0_51 = arith.constant 0 : index
    %212 = vector.load %arg13[%211, %c0_51] : memref<64x128xf32, #tpu.memory_space<vmem>>, vector<8x128xf32>
    %cst_52 = arith.constant dense<0.000000e+00> : vector<8x128xf32>
    %213 = tpu.matmul %194, %15, %cst_52 {dimension_numbers = #tpu.dot_dimension_numbers<[1], [0], [0], [1], [0, 0, 1, 1], [], []>, precision = #tpu.contract_precision<fp32>} : vector<8x32xf32>, vector<32x128xf32>, vector<8x128xf32> -> vector<8x128xf32>
    %214 = arith.addf %210, %213 : vector<8x128xf32>
    %215 = math.tanh %214 : vector<8x128xf32>
    %216 = arith.negf %214 : vector<8x128xf32>
    %217 = math.exp %216 : vector<8x128xf32>
    %cst_53 = arith.constant 1.000000e+00 : f32
    %218 = vector.broadcast %cst_53 : f32 to vector<8x128xf32>
    %219 = arith.addf %218, %217 : vector<8x128xf32>
    %220 = arith.divf %218, %219 : vector<8x128xf32>
    %221 = arith.select %19, %215, %220 : vector<8x128xi1>, vector<8x128xf32>
    %222 = vector.extract_strided_slice %221 {offsets = [0, 0], sizes = [8, 32], strides = [1, 1]} : vector<8x128xf32> to vector<8x32xf32>
    %223 = vector.extract_strided_slice %221 {offsets = [0, 32], sizes = [8, 32], strides = [1, 1]} : vector<8x128xf32> to vector<8x32xf32>
    %224 = vector.extract_strided_slice %221 {offsets = [0, 64], sizes = [8, 32], strides = [1, 1]} : vector<8x128xf32> to vector<8x32xf32>
    %225 = vector.extract_strided_slice %221 {offsets = [0, 96], sizes = [8, 32], strides = [1, 1]} : vector<8x128xf32> to vector<8x32xf32>
    %226 = arith.mulf %223, %197 : vector<8x32xf32>
    %227 = arith.mulf %222, %225 : vector<8x32xf32>
    %228 = arith.addf %226, %227 : vector<8x32xf32>
    %229 = math.tanh %228 : vector<8x32xf32>
    %230 = arith.mulf %224, %229 : vector<8x32xf32>
    %cst_54 = arith.constant dense<0.000000e+00> : vector<8x128xf32>
    %231 = tpu.matmul %200, %16, %cst_54 {dimension_numbers = #tpu.dot_dimension_numbers<[1], [0], [0], [1], [0, 0, 1, 1], [], []>, precision = #tpu.contract_precision<fp32>} : vector<8x32xf32>, vector<32x128xf32>, vector<8x128xf32> -> vector<8x128xf32>
    %232 = arith.addf %212, %231 : vector<8x128xf32>
    %233 = math.tanh %232 : vector<8x128xf32>
    %234 = arith.negf %232 : vector<8x128xf32>
    %235 = math.exp %234 : vector<8x128xf32>
    %cst_55 = arith.constant 1.000000e+00 : f32
    %236 = vector.broadcast %cst_55 : f32 to vector<8x128xf32>
    %237 = arith.addf %236, %235 : vector<8x128xf32>
    %238 = arith.divf %236, %237 : vector<8x128xf32>
    %239 = arith.select %19, %233, %238 : vector<8x128xi1>, vector<8x128xf32>
    %240 = vector.extract_strided_slice %239 {offsets = [0, 0], sizes = [8, 32], strides = [1, 1]} : vector<8x128xf32> to vector<8x32xf32>
    %241 = vector.extract_strided_slice %239 {offsets = [0, 32], sizes = [8, 32], strides = [1, 1]} : vector<8x128xf32> to vector<8x32xf32>
    %242 = vector.extract_strided_slice %239 {offsets = [0, 64], sizes = [8, 32], strides = [1, 1]} : vector<8x128xf32> to vector<8x32xf32>
    %243 = vector.extract_strided_slice %239 {offsets = [0, 96], sizes = [8, 32], strides = [1, 1]} : vector<8x128xf32> to vector<8x32xf32>
    %244 = arith.mulf %241, %203 : vector<8x32xf32>
    %245 = arith.mulf %240, %243 : vector<8x32xf32>
    %246 = arith.addf %244, %245 : vector<8x32xf32>
    %247 = math.tanh %246 : vector<8x32xf32>
    %248 = arith.mulf %242, %247 : vector<8x32xf32>
    %249 = vector.broadcast %c3_i32 : i32 to vector<8x1xi32>
    %250 = arith.cmpi slt, %249, %14 : vector<8x1xi32>
    %251 = vector.broadcast %204 : i32 to vector<8x1xi32>
    %252 = arith.cmpi slt, %251, %14 : vector<8x1xi32>
    %253 = vector.shape_cast %250 : vector<8x1xi1> to vector<8x1xi1>
    %254 = vector.broadcast %253 : vector<8x1xi1> to vector<8x32xi1>
    %255 = arith.select %254, %230, %194 : vector<8x32xi1>, vector<8x32xf32>
    %256 = vector.shape_cast %250 : vector<8x1xi1> to vector<8x1xi1>
    %257 = vector.broadcast %256 : vector<8x1xi1> to vector<8x32xi1>
    %258 = arith.select %257, %228, %197 : vector<8x32xi1>, vector<8x32xf32>
    %259 = vector.shape_cast %252 : vector<8x1xi1> to vector<8x1xi1>
    %260 = vector.broadcast %259 : vector<8x1xi1> to vector<8x32xi1>
    %261 = arith.select %260, %248, %200 : vector<8x32xi1>, vector<8x32xf32>
    %262 = vector.shape_cast %252 : vector<8x1xi1> to vector<8x1xi1>
    %263 = vector.broadcast %262 : vector<8x1xi1> to vector<8x32xi1>
    %264 = arith.select %263, %246, %203 : vector<8x32xi1>, vector<8x32xf32>
    %c4_i32 = arith.constant 4 : i32
    %c7_i32_56 = arith.constant 7 : i32
    %265 = arith.subi %c7_i32_56, %c4_i32 : i32
    %c8_i32_57 = arith.constant 8 : i32
    %266 = arith.muli %c4_i32, %c8_i32_57 : i32
    %267 = tpu.assume_multiple %266, 8 : i32
    %c8_i32_58 = arith.constant 8 : i32
    %268 = arith.muli %265, %c8_i32_58 : i32
    %269 = tpu.assume_multiple %268, 8 : i32
    %270 = arith.index_cast %267 : i32 to index
    %c0_59 = arith.constant 0 : index
    %271 = vector.load %arg12[%270, %c0_59] : memref<64x128xf32, #tpu.memory_space<vmem>>, vector<8x128xf32>
    %272 = arith.index_cast %269 : i32 to index
    %c0_60 = arith.constant 0 : index
    %273 = vector.load %arg13[%272, %c0_60] : memref<64x128xf32, #tpu.memory_space<vmem>>, vector<8x128xf32>
    %cst_61 = arith.constant dense<0.000000e+00> : vector<8x128xf32>
    %274 = tpu.matmul %255, %15, %cst_61 {dimension_numbers = #tpu.dot_dimension_numbers<[1], [0], [0], [1], [0, 0, 1, 1], [], []>, precision = #tpu.contract_precision<fp32>} : vector<8x32xf32>, vector<32x128xf32>, vector<8x128xf32> -> vector<8x128xf32>
    %275 = arith.addf %271, %274 : vector<8x128xf32>
    %276 = math.tanh %275 : vector<8x128xf32>
    %277 = arith.negf %275 : vector<8x128xf32>
    %278 = math.exp %277 : vector<8x128xf32>
    %cst_62 = arith.constant 1.000000e+00 : f32
    %279 = vector.broadcast %cst_62 : f32 to vector<8x128xf32>
    %280 = arith.addf %279, %278 : vector<8x128xf32>
    %281 = arith.divf %279, %280 : vector<8x128xf32>
    %282 = arith.select %19, %276, %281 : vector<8x128xi1>, vector<8x128xf32>
    %283 = vector.extract_strided_slice %282 {offsets = [0, 0], sizes = [8, 32], strides = [1, 1]} : vector<8x128xf32> to vector<8x32xf32>
    %284 = vector.extract_strided_slice %282 {offsets = [0, 32], sizes = [8, 32], strides = [1, 1]} : vector<8x128xf32> to vector<8x32xf32>
    %285 = vector.extract_strided_slice %282 {offsets = [0, 64], sizes = [8, 32], strides = [1, 1]} : vector<8x128xf32> to vector<8x32xf32>
    %286 = vector.extract_strided_slice %282 {offsets = [0, 96], sizes = [8, 32], strides = [1, 1]} : vector<8x128xf32> to vector<8x32xf32>
    %287 = arith.mulf %284, %258 : vector<8x32xf32>
    %288 = arith.mulf %283, %286 : vector<8x32xf32>
    %289 = arith.addf %287, %288 : vector<8x32xf32>
    %290 = math.tanh %289 : vector<8x32xf32>
    %291 = arith.mulf %285, %290 : vector<8x32xf32>
    %cst_63 = arith.constant dense<0.000000e+00> : vector<8x128xf32>
    %292 = tpu.matmul %261, %16, %cst_63 {dimension_numbers = #tpu.dot_dimension_numbers<[1], [0], [0], [1], [0, 0, 1, 1], [], []>, precision = #tpu.contract_precision<fp32>} : vector<8x32xf32>, vector<32x128xf32>, vector<8x128xf32> -> vector<8x128xf32>
    %293 = arith.addf %273, %292 : vector<8x128xf32>
    %294 = math.tanh %293 : vector<8x128xf32>
    %295 = arith.negf %293 : vector<8x128xf32>
    %296 = math.exp %295 : vector<8x128xf32>
    %cst_64 = arith.constant 1.000000e+00 : f32
    %297 = vector.broadcast %cst_64 : f32 to vector<8x128xf32>
    %298 = arith.addf %297, %296 : vector<8x128xf32>
    %299 = arith.divf %297, %298 : vector<8x128xf32>
    %300 = arith.select %19, %294, %299 : vector<8x128xi1>, vector<8x128xf32>
    %301 = vector.extract_strided_slice %300 {offsets = [0, 0], sizes = [8, 32], strides = [1, 1]} : vector<8x128xf32> to vector<8x32xf32>
    %302 = vector.extract_strided_slice %300 {offsets = [0, 32], sizes = [8, 32], strides = [1, 1]} : vector<8x128xf32> to vector<8x32xf32>
    %303 = vector.extract_strided_slice %300 {offsets = [0, 64], sizes = [8, 32], strides = [1, 1]} : vector<8x128xf32> to vector<8x32xf32>
    %304 = vector.extract_strided_slice %300 {offsets = [0, 96], sizes = [8, 32], strides = [1, 1]} : vector<8x128xf32> to vector<8x32xf32>
    %305 = arith.mulf %302, %264 : vector<8x32xf32>
    %306 = arith.mulf %301, %304 : vector<8x32xf32>
    %307 = arith.addf %305, %306 : vector<8x32xf32>
    %308 = math.tanh %307 : vector<8x32xf32>
    %309 = arith.mulf %303, %308 : vector<8x32xf32>
    %310 = vector.broadcast %c4_i32 : i32 to vector<8x1xi32>
    %311 = arith.cmpi slt, %310, %14 : vector<8x1xi32>
    %312 = vector.broadcast %265 : i32 to vector<8x1xi32>
    %313 = arith.cmpi slt, %312, %14 : vector<8x1xi32>
    %314 = vector.shape_cast %311 : vector<8x1xi1> to vector<8x1xi1>
    %315 = vector.broadcast %314 : vector<8x1xi1> to vector<8x32xi1>
    %316 = arith.select %315, %291, %255 : vector<8x32xi1>, vector<8x32xf32>
    %317 = vector.shape_cast %311 : vector<8x1xi1> to vector<8x1xi1>
    %318 = vector.broadcast %317 : vector<8x1xi1> to vector<8x32xi1>
    %319 = arith.select %318, %289, %258 : vector<8x32xi1>, vector<8x32xf32>
    %320 = vector.shape_cast %313 : vector<8x1xi1> to vector<8x1xi1>
    %321 = vector.broadcast %320 : vector<8x1xi1> to vector<8x32xi1>
    %322 = arith.select %321, %309, %261 : vector<8x32xi1>, vector<8x32xf32>
    %323 = vector.shape_cast %313 : vector<8x1xi1> to vector<8x1xi1>
    %324 = vector.broadcast %323 : vector<8x1xi1> to vector<8x32xi1>
    %325 = arith.select %324, %307, %264 : vector<8x32xi1>, vector<8x32xf32>
    %c5_i32 = arith.constant 5 : i32
    %c7_i32_65 = arith.constant 7 : i32
    %326 = arith.subi %c7_i32_65, %c5_i32 : i32
    %c8_i32_66 = arith.constant 8 : i32
    %327 = arith.muli %c5_i32, %c8_i32_66 : i32
    %328 = tpu.assume_multiple %327, 8 : i32
    %c8_i32_67 = arith.constant 8 : i32
    %329 = arith.muli %326, %c8_i32_67 : i32
    %330 = tpu.assume_multiple %329, 8 : i32
    %331 = arith.index_cast %328 : i32 to index
    %c0_68 = arith.constant 0 : index
    %332 = vector.load %arg12[%331, %c0_68] : memref<64x128xf32, #tpu.memory_space<vmem>>, vector<8x128xf32>
    %333 = arith.index_cast %330 : i32 to index
    %c0_69 = arith.constant 0 : index
    %334 = vector.load %arg13[%333, %c0_69] : memref<64x128xf32, #tpu.memory_space<vmem>>, vector<8x128xf32>
    %cst_70 = arith.constant dense<0.000000e+00> : vector<8x128xf32>
    %335 = tpu.matmul %316, %15, %cst_70 {dimension_numbers = #tpu.dot_dimension_numbers<[1], [0], [0], [1], [0, 0, 1, 1], [], []>, precision = #tpu.contract_precision<fp32>} : vector<8x32xf32>, vector<32x128xf32>, vector<8x128xf32> -> vector<8x128xf32>
    %336 = arith.addf %332, %335 : vector<8x128xf32>
    %337 = math.tanh %336 : vector<8x128xf32>
    %338 = arith.negf %336 : vector<8x128xf32>
    %339 = math.exp %338 : vector<8x128xf32>
    %cst_71 = arith.constant 1.000000e+00 : f32
    %340 = vector.broadcast %cst_71 : f32 to vector<8x128xf32>
    %341 = arith.addf %340, %339 : vector<8x128xf32>
    %342 = arith.divf %340, %341 : vector<8x128xf32>
    %343 = arith.select %19, %337, %342 : vector<8x128xi1>, vector<8x128xf32>
    %344 = vector.extract_strided_slice %343 {offsets = [0, 0], sizes = [8, 32], strides = [1, 1]} : vector<8x128xf32> to vector<8x32xf32>
    %345 = vector.extract_strided_slice %343 {offsets = [0, 32], sizes = [8, 32], strides = [1, 1]} : vector<8x128xf32> to vector<8x32xf32>
    %346 = vector.extract_strided_slice %343 {offsets = [0, 64], sizes = [8, 32], strides = [1, 1]} : vector<8x128xf32> to vector<8x32xf32>
    %347 = vector.extract_strided_slice %343 {offsets = [0, 96], sizes = [8, 32], strides = [1, 1]} : vector<8x128xf32> to vector<8x32xf32>
    %348 = arith.mulf %345, %319 : vector<8x32xf32>
    %349 = arith.mulf %344, %347 : vector<8x32xf32>
    %350 = arith.addf %348, %349 : vector<8x32xf32>
    %351 = math.tanh %350 : vector<8x32xf32>
    %352 = arith.mulf %346, %351 : vector<8x32xf32>
    %cst_72 = arith.constant dense<0.000000e+00> : vector<8x128xf32>
    %353 = tpu.matmul %322, %16, %cst_72 {dimension_numbers = #tpu.dot_dimension_numbers<[1], [0], [0], [1], [0, 0, 1, 1], [], []>, precision = #tpu.contract_precision<fp32>} : vector<8x32xf32>, vector<32x128xf32>, vector<8x128xf32> -> vector<8x128xf32>
    %354 = arith.addf %334, %353 : vector<8x128xf32>
    %355 = math.tanh %354 : vector<8x128xf32>
    %356 = arith.negf %354 : vector<8x128xf32>
    %357 = math.exp %356 : vector<8x128xf32>
    %cst_73 = arith.constant 1.000000e+00 : f32
    %358 = vector.broadcast %cst_73 : f32 to vector<8x128xf32>
    %359 = arith.addf %358, %357 : vector<8x128xf32>
    %360 = arith.divf %358, %359 : vector<8x128xf32>
    %361 = arith.select %19, %355, %360 : vector<8x128xi1>, vector<8x128xf32>
    %362 = vector.extract_strided_slice %361 {offsets = [0, 0], sizes = [8, 32], strides = [1, 1]} : vector<8x128xf32> to vector<8x32xf32>
    %363 = vector.extract_strided_slice %361 {offsets = [0, 32], sizes = [8, 32], strides = [1, 1]} : vector<8x128xf32> to vector<8x32xf32>
    %364 = vector.extract_strided_slice %361 {offsets = [0, 64], sizes = [8, 32], strides = [1, 1]} : vector<8x128xf32> to vector<8x32xf32>
    %365 = vector.extract_strided_slice %361 {offsets = [0, 96], sizes = [8, 32], strides = [1, 1]} : vector<8x128xf32> to vector<8x32xf32>
    %366 = arith.mulf %363, %325 : vector<8x32xf32>
    %367 = arith.mulf %362, %365 : vector<8x32xf32>
    %368 = arith.addf %366, %367 : vector<8x32xf32>
    %369 = math.tanh %368 : vector<8x32xf32>
    %370 = arith.mulf %364, %369 : vector<8x32xf32>
    %371 = vector.broadcast %c5_i32 : i32 to vector<8x1xi32>
    %372 = arith.cmpi slt, %371, %14 : vector<8x1xi32>
    %373 = vector.broadcast %326 : i32 to vector<8x1xi32>
    %374 = arith.cmpi slt, %373, %14 : vector<8x1xi32>
    %375 = vector.shape_cast %372 : vector<8x1xi1> to vector<8x1xi1>
    %376 = vector.broadcast %375 : vector<8x1xi1> to vector<8x32xi1>
    %377 = arith.select %376, %352, %316 : vector<8x32xi1>, vector<8x32xf32>
    %378 = vector.shape_cast %372 : vector<8x1xi1> to vector<8x1xi1>
    %379 = vector.broadcast %378 : vector<8x1xi1> to vector<8x32xi1>
    %380 = arith.select %379, %350, %319 : vector<8x32xi1>, vector<8x32xf32>
    %381 = vector.shape_cast %374 : vector<8x1xi1> to vector<8x1xi1>
    %382 = vector.broadcast %381 : vector<8x1xi1> to vector<8x32xi1>
    %383 = arith.select %382, %370, %322 : vector<8x32xi1>, vector<8x32xf32>
    %384 = vector.shape_cast %374 : vector<8x1xi1> to vector<8x1xi1>
    %385 = vector.broadcast %384 : vector<8x1xi1> to vector<8x32xi1>
    %386 = arith.select %385, %368, %325 : vector<8x32xi1>, vector<8x32xf32>
    %c6_i32 = arith.constant 6 : i32
    %c7_i32_74 = arith.constant 7 : i32
    %387 = arith.subi %c7_i32_74, %c6_i32 : i32
    %c8_i32_75 = arith.constant 8 : i32
    %388 = arith.muli %c6_i32, %c8_i32_75 : i32
    %389 = tpu.assume_multiple %388, 8 : i32
    %c8_i32_76 = arith.constant 8 : i32
    %390 = arith.muli %387, %c8_i32_76 : i32
    %391 = tpu.assume_multiple %390, 8 : i32
    %392 = arith.index_cast %389 : i32 to index
    %c0_77 = arith.constant 0 : index
    %393 = vector.load %arg12[%392, %c0_77] : memref<64x128xf32, #tpu.memory_space<vmem>>, vector<8x128xf32>
    %394 = arith.index_cast %391 : i32 to index
    %c0_78 = arith.constant 0 : index
    %395 = vector.load %arg13[%394, %c0_78] : memref<64x128xf32, #tpu.memory_space<vmem>>, vector<8x128xf32>
    %cst_79 = arith.constant dense<0.000000e+00> : vector<8x128xf32>
    %396 = tpu.matmul %377, %15, %cst_79 {dimension_numbers = #tpu.dot_dimension_numbers<[1], [0], [0], [1], [0, 0, 1, 1], [], []>, precision = #tpu.contract_precision<fp32>} : vector<8x32xf32>, vector<32x128xf32>, vector<8x128xf32> -> vector<8x128xf32>
    %397 = arith.addf %393, %396 : vector<8x128xf32>
    %398 = math.tanh %397 : vector<8x128xf32>
    %399 = arith.negf %397 : vector<8x128xf32>
    %400 = math.exp %399 : vector<8x128xf32>
    %cst_80 = arith.constant 1.000000e+00 : f32
    %401 = vector.broadcast %cst_80 : f32 to vector<8x128xf32>
    %402 = arith.addf %401, %400 : vector<8x128xf32>
    %403 = arith.divf %401, %402 : vector<8x128xf32>
    %404 = arith.select %19, %398, %403 : vector<8x128xi1>, vector<8x128xf32>
    %405 = vector.extract_strided_slice %404 {offsets = [0, 0], sizes = [8, 32], strides = [1, 1]} : vector<8x128xf32> to vector<8x32xf32>
    %406 = vector.extract_strided_slice %404 {offsets = [0, 32], sizes = [8, 32], strides = [1, 1]} : vector<8x128xf32> to vector<8x32xf32>
    %407 = vector.extract_strided_slice %404 {offsets = [0, 64], sizes = [8, 32], strides = [1, 1]} : vector<8x128xf32> to vector<8x32xf32>
    %408 = vector.extract_strided_slice %404 {offsets = [0, 96], sizes = [8, 32], strides = [1, 1]} : vector<8x128xf32> to vector<8x32xf32>
    %409 = arith.mulf %406, %380 : vector<8x32xf32>
    %410 = arith.mulf %405, %408 : vector<8x32xf32>
    %411 = arith.addf %409, %410 : vector<8x32xf32>
    %412 = math.tanh %411 : vector<8x32xf32>
    %413 = arith.mulf %407, %412 : vector<8x32xf32>
    %cst_81 = arith.constant dense<0.000000e+00> : vector<8x128xf32>
    %414 = tpu.matmul %383, %16, %cst_81 {dimension_numbers = #tpu.dot_dimension_numbers<[1], [0], [0], [1], [0, 0, 1, 1], [], []>, precision = #tpu.contract_precision<fp32>} : vector<8x32xf32>, vector<32x128xf32>, vector<8x128xf32> -> vector<8x128xf32>
    %415 = arith.addf %395, %414 : vector<8x128xf32>
    %416 = math.tanh %415 : vector<8x128xf32>
    %417 = arith.negf %415 : vector<8x128xf32>
    %418 = math.exp %417 : vector<8x128xf32>
    %cst_82 = arith.constant 1.000000e+00 : f32
    %419 = vector.broadcast %cst_82 : f32 to vector<8x128xf32>
    %420 = arith.addf %419, %418 : vector<8x128xf32>
    %421 = arith.divf %419, %420 : vector<8x128xf32>
    %422 = arith.select %19, %416, %421 : vector<8x128xi1>, vector<8x128xf32>
    %423 = vector.extract_strided_slice %422 {offsets = [0, 0], sizes = [8, 32], strides = [1, 1]} : vector<8x128xf32> to vector<8x32xf32>
    %424 = vector.extract_strided_slice %422 {offsets = [0, 32], sizes = [8, 32], strides = [1, 1]} : vector<8x128xf32> to vector<8x32xf32>
    %425 = vector.extract_strided_slice %422 {offsets = [0, 64], sizes = [8, 32], strides = [1, 1]} : vector<8x128xf32> to vector<8x32xf32>
    %426 = vector.extract_strided_slice %422 {offsets = [0, 96], sizes = [8, 32], strides = [1, 1]} : vector<8x128xf32> to vector<8x32xf32>
    %427 = arith.mulf %424, %386 : vector<8x32xf32>
    %428 = arith.mulf %423, %426 : vector<8x32xf32>
    %429 = arith.addf %427, %428 : vector<8x32xf32>
    %430 = math.tanh %429 : vector<8x32xf32>
    %431 = arith.mulf %425, %430 : vector<8x32xf32>
    %432 = vector.broadcast %c6_i32 : i32 to vector<8x1xi32>
    %433 = arith.cmpi slt, %432, %14 : vector<8x1xi32>
    %434 = vector.broadcast %387 : i32 to vector<8x1xi32>
    %435 = arith.cmpi slt, %434, %14 : vector<8x1xi32>
    %436 = vector.shape_cast %433 : vector<8x1xi1> to vector<8x1xi1>
    %437 = vector.broadcast %436 : vector<8x1xi1> to vector<8x32xi1>
    %438 = arith.select %437, %413, %377 : vector<8x32xi1>, vector<8x32xf32>
    %439 = vector.shape_cast %433 : vector<8x1xi1> to vector<8x1xi1>
    %440 = vector.broadcast %439 : vector<8x1xi1> to vector<8x32xi1>
    %441 = arith.select %440, %411, %380 : vector<8x32xi1>, vector<8x32xf32>
    %442 = vector.shape_cast %435 : vector<8x1xi1> to vector<8x1xi1>
    %443 = vector.broadcast %442 : vector<8x1xi1> to vector<8x32xi1>
    %444 = arith.select %443, %431, %383 : vector<8x32xi1>, vector<8x32xf32>
    %445 = vector.shape_cast %435 : vector<8x1xi1> to vector<8x1xi1>
    %446 = vector.broadcast %445 : vector<8x1xi1> to vector<8x32xi1>
    %447 = arith.select %446, %429, %386 : vector<8x32xi1>, vector<8x32xf32>
    %c7_i32_83 = arith.constant 7 : i32
    %c7_i32_84 = arith.constant 7 : i32
    %448 = arith.subi %c7_i32_84, %c7_i32_83 : i32
    %c8_i32_85 = arith.constant 8 : i32
    %449 = arith.muli %c7_i32_83, %c8_i32_85 : i32
    %450 = tpu.assume_multiple %449, 8 : i32
    %c8_i32_86 = arith.constant 8 : i32
    %451 = arith.muli %448, %c8_i32_86 : i32
    %452 = tpu.assume_multiple %451, 8 : i32
    %453 = arith.index_cast %450 : i32 to index
    %c0_87 = arith.constant 0 : index
    %454 = vector.load %arg12[%453, %c0_87] : memref<64x128xf32, #tpu.memory_space<vmem>>, vector<8x128xf32>
    %455 = arith.index_cast %452 : i32 to index
    %c0_88 = arith.constant 0 : index
    %456 = vector.load %arg13[%455, %c0_88] : memref<64x128xf32, #tpu.memory_space<vmem>>, vector<8x128xf32>
    %cst_89 = arith.constant dense<0.000000e+00> : vector<8x128xf32>
    %457 = tpu.matmul %438, %15, %cst_89 {dimension_numbers = #tpu.dot_dimension_numbers<[1], [0], [0], [1], [0, 0, 1, 1], [], []>, precision = #tpu.contract_precision<fp32>} : vector<8x32xf32>, vector<32x128xf32>, vector<8x128xf32> -> vector<8x128xf32>
    %458 = arith.addf %454, %457 : vector<8x128xf32>
    %459 = math.tanh %458 : vector<8x128xf32>
    %460 = arith.negf %458 : vector<8x128xf32>
    %461 = math.exp %460 : vector<8x128xf32>
    %cst_90 = arith.constant 1.000000e+00 : f32
    %462 = vector.broadcast %cst_90 : f32 to vector<8x128xf32>
    %463 = arith.addf %462, %461 : vector<8x128xf32>
    %464 = arith.divf %462, %463 : vector<8x128xf32>
    %465 = arith.select %19, %459, %464 : vector<8x128xi1>, vector<8x128xf32>
    %466 = vector.extract_strided_slice %465 {offsets = [0, 0], sizes = [8, 32], strides = [1, 1]} : vector<8x128xf32> to vector<8x32xf32>
    %467 = vector.extract_strided_slice %465 {offsets = [0, 32], sizes = [8, 32], strides = [1, 1]} : vector<8x128xf32> to vector<8x32xf32>
    %468 = vector.extract_strided_slice %465 {offsets = [0, 64], sizes = [8, 32], strides = [1, 1]} : vector<8x128xf32> to vector<8x32xf32>
    %469 = vector.extract_strided_slice %465 {offsets = [0, 96], sizes = [8, 32], strides = [1, 1]} : vector<8x128xf32> to vector<8x32xf32>
    %470 = arith.mulf %467, %441 : vector<8x32xf32>
    %471 = arith.mulf %466, %469 : vector<8x32xf32>
    %472 = arith.addf %470, %471 : vector<8x32xf32>
    %473 = math.tanh %472 : vector<8x32xf32>
    %474 = arith.mulf %468, %473 : vector<8x32xf32>
    %cst_91 = arith.constant dense<0.000000e+00> : vector<8x128xf32>
    %475 = tpu.matmul %444, %16, %cst_91 {dimension_numbers = #tpu.dot_dimension_numbers<[1], [0], [0], [1], [0, 0, 1, 1], [], []>, precision = #tpu.contract_precision<fp32>} : vector<8x32xf32>, vector<32x128xf32>, vector<8x128xf32> -> vector<8x128xf32>
    %476 = arith.addf %456, %475 : vector<8x128xf32>
    %477 = math.tanh %476 : vector<8x128xf32>
    %478 = arith.negf %476 : vector<8x128xf32>
    %479 = math.exp %478 : vector<8x128xf32>
    %cst_92 = arith.constant 1.000000e+00 : f32
    %480 = vector.broadcast %cst_92 : f32 to vector<8x128xf32>
    %481 = arith.addf %480, %479 : vector<8x128xf32>
    %482 = arith.divf %480, %481 : vector<8x128xf32>
    %483 = arith.select %19, %477, %482 : vector<8x128xi1>, vector<8x128xf32>
    %484 = vector.extract_strided_slice %483 {offsets = [0, 0], sizes = [8, 32], strides = [1, 1]} : vector<8x128xf32> to vector<8x32xf32>
    %485 = vector.extract_strided_slice %483 {offsets = [0, 32], sizes = [8, 32], strides = [1, 1]} : vector<8x128xf32> to vector<8x32xf32>
    %486 = vector.extract_strided_slice %483 {offsets = [0, 64], sizes = [8, 32], strides = [1, 1]} : vector<8x128xf32> to vector<8x32xf32>
    %487 = vector.extract_strided_slice %483 {offsets = [0, 96], sizes = [8, 32], strides = [1, 1]} : vector<8x128xf32> to vector<8x32xf32>
    %488 = arith.mulf %485, %447 : vector<8x32xf32>
    %489 = arith.mulf %484, %487 : vector<8x32xf32>
    %490 = arith.addf %488, %489 : vector<8x32xf32>
    %491 = math.tanh %490 : vector<8x32xf32>
    %492 = arith.mulf %486, %491 : vector<8x32xf32>
    %493 = vector.broadcast %c7_i32_83 : i32 to vector<8x1xi32>
    %494 = arith.cmpi slt, %493, %14 : vector<8x1xi32>
    %495 = vector.broadcast %448 : i32 to vector<8x1xi32>
    %496 = arith.cmpi slt, %495, %14 : vector<8x1xi32>
    %497 = vector.shape_cast %494 : vector<8x1xi1> to vector<8x1xi1>
    %498 = vector.broadcast %497 : vector<8x1xi1> to vector<8x32xi1>
    %499 = arith.select %498, %474, %438 : vector<8x32xi1>, vector<8x32xf32>
    %500 = vector.shape_cast %494 : vector<8x1xi1> to vector<8x1xi1>
    %501 = vector.broadcast %500 : vector<8x1xi1> to vector<8x32xi1>
    %502 = arith.select %501, %472, %441 : vector<8x32xi1>, vector<8x32xf32>
    %503 = vector.shape_cast %496 : vector<8x1xi1> to vector<8x1xi1>
    %504 = vector.broadcast %503 : vector<8x1xi1> to vector<8x32xi1>
    %505 = arith.select %504, %492, %444 : vector<8x32xi1>, vector<8x32xf32>
    %506 = vector.shape_cast %496 : vector<8x1xi1> to vector<8x1xi1>
    %507 = vector.broadcast %506 : vector<8x1xi1> to vector<8x32xi1>
    %508 = arith.select %507, %490, %447 : vector<8x32xi1>, vector<8x32xf32>
    %c8_i32_93 = arith.constant 8 : i32
    %509 = tpu.concatenate %499, %505 in 1 : vector<8x32xf32>, vector<8x32xf32> -> vector<8x64xf32>
    %c0_94 = arith.constant 0 : index
    %c0_95 = arith.constant 0 : index
    %510 = vector.load %arg9[%c0_94, %c0_95] : memref<64x128xf32, #tpu.memory_space<vmem>>, vector<64x128xf32>
    %cst_96 = arith.constant dense<0.000000e+00> : vector<8x128xf32>
    %511 = tpu.matmul %509, %510, %cst_96 {dimension_numbers = #tpu.dot_dimension_numbers<[1], [0], [0], [1], [0, 0, 1, 1], [], []>, precision = #tpu.contract_precision<fp32>} : vector<8x64xf32>, vector<64x128xf32>, vector<8x128xf32> -> vector<8x128xf32>
    %c0_97 = arith.constant 0 : index
    %c0_98 = arith.constant 0 : index
    %512 = vector.load %arg10[%c0_97, %c0_98] : memref<1x128xf32, #tpu.memory_space<vmem>>, vector<1x128xf32>
    %513 = vector.broadcast %512 : vector<1x128xf32> to vector<8x128xf32>
    %514 = arith.addf %511, %513 : vector<8x128xf32>
    %c0_99 = arith.constant 0 : index
    %c0_100 = arith.constant 0 : index
    %515 = vector.load %arg11[%c0_99, %c0_100] : memref<8x128xf32, #tpu.memory_space<vmem>>, vector<8x128xf32>
    tpu.vector_store %arg11[%c0_99, %c0_100], %514 {strides = array<i32>} : memref<8x128xf32, #tpu.memory_space<vmem>>, vector<8x128xf32>,
    return
  }
  func.func @transform_0(%arg0: i32) -> (i32, i32, i32) {
    %c0_i32 = arith.constant 0 : i32
    %c0_i32_0 = arith.constant 0 : i32
    %c0_i32_1 = arith.constant 0 : i32
    return %arg0, %c0_i32, %c0_i32_0 : i32, i32, i32
  }
  func.func @transform_1(%arg0: i32) -> (i32, i32) {
    %c0_i32 = arith.constant 0 : i32
    %c0_i32_0 = arith.constant 0 : i32
    return %arg0, %c0_i32 : i32, i32
  }
  func.func @transform_2(%arg0: i32) -> (i32, i32) {
    %c0_i32 = arith.constant 0 : i32
    %c0_i32_0 = arith.constant 0 : i32
    %c0_i32_1 = arith.constant 0 : i32
    return %c0_i32, %c0_i32_0 : i32, i32
  }
  func.func @transform_3(%arg0: i32) -> (i32, i32) {
    %c0_i32 = arith.constant 0 : i32
    %c0_i32_0 = arith.constant 0 : i32
    %c0_i32_1 = arith.constant 0 : i32
    return %c0_i32, %c0_i32_0 : i32, i32
  }
  func.func @transform_4(%arg0: i32) -> (i32, i32) {
    %c0_i32 = arith.constant 0 : i32
    %c0_i32_0 = arith.constant 0 : i32
    %c0_i32_1 = arith.constant 0 : i32
    return %c0_i32, %c0_i32_0 : i32, i32
  }
  func.func @transform_5(%arg0: i32) -> (i32, i32) {
    %c0_i32 = arith.constant 0 : i32
    %c0_i32_0 = arith.constant 0 : i32
    %c0_i32_1 = arith.constant 0 : i32
    return %c0_i32, %c0_i32_0 : i32, i32
  }
  func.func @transform_6(%arg0: i32) -> (i32, i32) {
    %c0_i32 = arith.constant 0 : i32
    %c0_i32_0 = arith.constant 0 : i32
    %c0_i32_1 = arith.constant 0 : i32
    return %c0_i32, %c0_i32_0 : i32, i32
  }
  func.func @transform_7(%arg0: i32) -> (i32, i32) {
    %c0_i32 = arith.constant 0 : i32
    %c0_i32_0 = arith.constant 0 : i32
    %c0_i32_1 = arith.constant 0 : i32
    return %c0_i32, %c0_i32_0 : i32, i32
  }
  func.func @transform_8(%arg0: i32) -> (i32, i32) {
    %c0_i32 = arith.constant 0 : i32
    %c0_i32_0 = arith.constant 0 : i32
    %c0_i32_1 = arith.constant 0 : i32
    return %c0_i32, %c0_i32_0 : i32, i32
  }
  func.func @transform_9(%arg0: i32) -> (i32, i32) {
    %c0_i32 = arith.constant 0 : i32
    %c0_i32_0 = arith.constant 0 : i32
    %c0_i32_1 = arith.constant 0 : i32
    return %c0_i32, %c0_i32_0 : i32, i32
  }
  func.func @transform_10(%arg0: i32) -> (i32, i32) {
    %c0_i32 = arith.constant 0 : i32
    %c0_i32_0 = arith.constant 0 : i32
    return %arg0, %c0_i32 : i32, i32
  }
}

</mosaic_0001>

<bundles_post_ra>
// kernel: lstm_forward.1
= control target key start
LH: loop header
LB: loop body
LE: loop exit
PB: predicated region body
PF: predicated region fallthrough
CT: control target
= control target key end

     0   :  { %vm54_vm0 = vcmask 261120   ;;  %vm13873_vm1 = vmmov 0   ;;  %s15515_s2 = inlined_call_operand.vmem [shape: f32[32,128], index: 2, kind: input, shape index: {}]   ;;  %s15516_s0 = inlined_call_operand.vmem [shape: f32[1,64,32], index: 0, kind: input, shape index: {}]   ;;  %s15517_s3 = inlined_call_operand.vmem [shape: f32[32,128], index: 3, kind: input, shape index: {}]   ;;  %s15518_s6 = inlined_call_operand.vmem [shape: f32[32,128], index: 6, kind: input, shape index: {}]   ;;  %s15519_s7 = inlined_call_operand.vmem [shape: f32[32,128], index: 7, kind: input, shape index: {}]   ;;  %s15520_s4 = inlined_call_operand.vmem [shape: f32[1,128], index: 4, kind: input, shape index: {}]   ;;  %s15521_s5 = inlined_call_operand.vmem [shape: f32[1,128], index: 5, kind: input, shape index: {}]   ;;  %s15522_s1 = inlined_call_operand.vmem [shape: s32[8,1], index: 1, kind: input, shape index: {}]   ;;  %s15523_s8 = inlined_call_operand.vmem [shape: f32[64,128], index: 8, kind: input, shape index: {}]   ;;  %s15524_s9 = inlined_call_operand.vmem [shape: f32[1,128], index: 9, kind: input, shape index: {}]   ;;  %s15525_s10 = inlined_call_operand.vmem [shape: f32[8,128], index: 10, kind: output, shape index: {}]  }
   0x1   :  { %v43_v0 = vld [vmem:[%s15515_s2] sm:$0xff]  ;;  %v44_v1 = vld [vmem:[%s15515_s2 + $0x8] sm:$0xff]  ;;  %v45_v2 = vld [vmem:[%s15515_s2 + $0x10] sm:$0xff] }
   0x2   :  { %v80_v3 = vand.u32 4294901760, %v43_v0  ;;  %v83_v4 = vand.u32 4294901760, %v44_v1  ;;  %v13946_v5 = vld [vmem:[%s15515_s2 + $0x18] sm:$0xff]  ;;  %v86_v6 = vand.u32 4294901760, %v45_v2  ;;  %v35_v7 = vld [vmem:[%s15516_s0] sm:$0xff]  ;;  %v36_v8 = vld [vmem:[%s15516_s0 + $0x8] sm:$0xff] }
   0x3   :  { %v89_v9 = vand.u32 4294901760, %v13946_v5  ;;  %v56_v10 = vsel %vm54_vm0, %v35_v7, 0  ;;  %v59_v11 = vsel %vm54_vm0, %v36_v8, 0  ;;  %v37_v12 = vld [vmem:[%s15516_s0 + $0x10] sm:$0xff]  ;;  %v38_v13 = vld [vmem:[%s15516_s0 + $0x18] sm:$0xff]  ;;  %v39_v18 = vld [vmem:[%s15516_s0 + $0x20] sm:$0xff] }
   0x4   :  { %v13963_v14 = vpack.c.bf16 %v83_v4, %v80_v3  ;;  %v13965_v15 = vand.u32 4294901760, %v56_v10  ;;  %v13967_v16 = vand.u32 4294901760, %v59_v11  ;;  %v13969_v17 = vsub.f32 %v43_v0, %v80_v3  ;;  %v40_v19 = vld [vmem:[%s15516_s0 + $0x28] sm:$0xff]  ;;  %v41_v52 = vld [vmem:[%s15516_s0 + $0x30] sm:$0xff]  ;;  %v42_v57 = vld [vmem:[%s15516_s0 + $0x38] sm:$0xff] }
   0x5   :  { %v13977_v20 = vpack.c.bf16 %v89_v9, %v86_v6  ;;  %v13979_v21 = vsub.f32 %v44_v1, %v83_v4  ;;  %v62_v22 = vsel %vm54_vm0, %v37_v12, 0  ;;  %v65_v23 = vsel %vm54_vm0, %v38_v13, 0 }
   0x6   :  { %12725 = vmatprep.subr.bf16.mxu1 %v13963_v14  ;;  %12749 = vmatprep.subr.bf16.mxu0 %v13963_v14  ;;  %v13986_v24 = vsub.f32 %v56_v10, %v13965_v15  ;;  %v13989_v25 = vsub.f32 %v59_v11, %v13967_v16  ;;  %v231_v26 = vand.u32 4294901760, %v13969_v17  ;;  %v13992_v27 = vand.u32 4294901760, %v62_v22 }
   0x7   :  { %12727 = vmatpush3.bf16.msra.mxu1 %v13963_v14  ;;  %12751 = vmatpush3.bf16.msra.mxu0 %v13963_v14  ;;  %v238_v28 = vand.u32 4294901760, %v13979_v21  ;;  %v13997_v29 = vand.u32 4294901760, %v65_v23  ;;  %v68_v30 = vsel %vm54_vm0, %v39_v18, 0  ;;  %v71_v31 = vsel %vm54_vm0, %v40_v19, 0 }
   0x8   :  { %12729 = vmatprep.subr.bf16.mxu1 %v13977_v20  ;;  %12753 = vmatprep.subr.bf16.mxu0 %v13977_v20  ;;  %v14004_v32 = vand.u32 4294901760, %v13986_v24  ;;  %v14007_v33 = vand.u32 4294901760, %v13989_v25  ;;  %v232_v34 = vsub.f32 %v13969_v17, %v231_v26  ;;  %v14011_v35 = vsub.f32 %v62_v22, %v13992_v27 }
   0x9   :  { %v239_v36 = vsub.f32 %v13979_v21, %v238_v28  ;;  %v14015_v37 = vsub.f32 %v65_v23, %v13997_v29  ;;  %v14017_v38 = vand.u32 4294901760, %v68_v30  ;;  %v14019_v39 = vand.u32 4294901760, %v71_v31 }
   0xa   :  { %v151_v40 = vsub.f32 %v13986_v24, %v14004_v32  ;;  %11382 = vmatprep.mubr.f32.mxu0 %v14004_v32  ;;  %v161_v41 = vsub.f32 %v13989_v25, %v14007_v33  ;;  %v233_v42 = vand.u32 4294901760, %v232_v34  ;;  %v14027_v43 = vand.u32 4294901760, %v14011_v35 }
   0xb   :  { %12731 = vmatpush3.bf16.msra.mxu1 %v13977_v20  ;;  %12755 = vmatpush3.bf16.msra.mxu0 %v13977_v20  ;;  %v240_v44 = vand.u32 4294901760, %v239_v36  ;;  %v14032_v45 = vand.u32 4294901760, %v14015_v37  ;;  %v14035_v46 = vsub.f32 %v68_v30, %v14017_v38  ;;  %v14038_v47 = vsub.f32 %v71_v31, %v14019_v39  ;;  %v873_v36 = vld [vmem:[%s15517_s3] sm:$0xff] }
   0xc   :  { %v14040_v48 = vand.u32 4294901760, %v151_v40  ;;  %v14042_v49 = vand.u32 4294901760, %v161_v41  ;;  %v171_v50 = vsub.f32 %v14011_v35, %v14027_v43  ;;  %v14046_v51 = vsub.f32 %v45_v2, %v86_v6  ;;  %v874_v40 = vld [vmem:[%s15517_s3 + $0x8] sm:$0xff] }
   0xd   :  { %v12732_v53 = vpack.c.bf16 %v240_v44, %v233_v42  ;;  %v181_v54 = vsub.f32 %v14015_v37, %v14032_v45  ;;  %v14054_v55 = vand.u32 4294901760, %v14035_v46  ;;  %v14057_v56 = vand.u32 4294901760, %v14038_v47 }
   0xe   :  { %11322 = vmatprep.mubr.f32.mxu1 %v14040_v48  ;;  %11383 = vmatmul.mubr.f32.vlgmr.msra.gmra.mrb[0].mxu0 %v14007_v33  ;;  %v14064_v58 = vand.u32 4294901760, %v171_v50  ;;  %v245_v59 = vand.u32 4294901760, %v14046_v51  ;;  %v251_v60 = vsub.f32 %v13946_v5, %v89_v9  ;;  %v12756_v61 = vpack.c.bf16 %v238_v28, %v231_v26 }
   0xf   :  { %11323 = vmatmul.mubr.f32.vlgmr.msra.gmra.mrb[0].mxu1 %v14042_v49  ;;  %12733 = vmatprep.subr.bf16.mxu1 %v12732_v53  ;;  %v14069_v62 = vand.u32 4294901760, %v181_v54  ;;  %v191_v63 = vsub.f32 %v14035_v46, %v14054_v55  ;;  %v201_v0 = vsub.f32 %v14038_v47, %v14057_v56  ;;  %v74_v1 = vsel %vm54_vm0, %v41_v52, 0  ;;  %v875_v54 = vld [vmem:[%s15517_s3 + $0x10] sm:$0xff] }
  0x10   :  { %12735 = vmatpush3.bf16.msra.mxu1 %v12732_v53  ;;  %11325 = vmatprep.mubr.f32.mxu1 %v14064_v58  ;;  %v246_v2 = vsub.f32 %v14046_v51, %v245_v59  ;;  %v252_v3 = vand.u32 4294901760, %v251_v60  ;;  %v14078_v4 = vand.u32 4294901760, %v74_v1  ;;  %v77_v5 = vsel %vm54_vm0, %v42_v57, 0  ;;  %v876_v57 = vld [vmem:[%s15517_s3 + $0x18] sm:$0xff] }
  0x11   :  { %11385 = vmatprep.mubr.f32.mxu0 %v14027_v43  ;;  %v14082_v6 = vand.u32 4294901760, %v191_v63  ;;  %12757 = vmatprep.subr.bf16.mxu0 %v12756_v61  ;;  %v14084_v7 = vand.u32 4294901760, %v77_v5  ;;  %v14092_v12 = vand.u32 4294901760, %v201_v0  ;;  %v12740_v31 = vpack.c.bf16 %v13979_v21, %v13969_v17  ;;  %v1682_v63 = vld [vmem:[%s15518_s6 + $0x18] sm:$0xff] }
  0x12   :  { %11386 = vmatmul.mubr.f32.gmra.mrb[2].mxu0 %v14032_v45  ;;  %v247_v8 = vand.u32 4294901760, %v246_v2  ;;  %v253_v9 = vsub.f32 %v251_v60, %v252_v3  ;;  %v14088_v10 = vsub.f32 %v74_v1, %v14078_v4  ;;  %v12760_v11 = vpack.c.bf16 %v252_v3, %v245_v59 }
  0x13   :  { %11326 = vmatmul.mubr.f32.gmra.mrb[2].mxu1 %v14069_v62  ;;  %11388 = vmatprep.mubr.f32.mxu0 %v14054_v55  ;;  %v14095_v13 = vsub.f32 %v77_v5, %v14084_v7  ;;  %v12744_v17 = vpack.c.bf16 %v251_v60, %v14046_v51  ;;  %v885_v21 = vand.u32 4294901760, %v873_v36  ;;  %v888_v41 = vand.u32 4294901760, %v874_v40  ;;  %v1680_v51 = vld [vmem:[%s15518_s6 + $0x8] sm:$0xff] }
  0x14   :  { %11328 = vmatprep.mubr.f32.mxu1 %v14082_v6  ;;  %v254_v18 = vand.u32 4294901760, %v253_v9  ;;  %12759 = vmatpush3.bf16.msra.mxu0 %v12756_v61  ;;  %v14099_v19 = vand.u32 4294901760, %v14088_v10  ;;  %v13872_v59 = vmov 0.0|0.0   ;;  %v1700_v60 = vand.u32 4294901760, %v1680_v51  ;;  %v1681_v61 = vld [vmem:[%s15518_s6 + $0x10] sm:$0xff] }
  0x15   :  { %v14102_v22 = vand.u32 4294901760, %v14095_v13  ;;  %12761 = vmatprep.subr.bf16.mxu0 %v12760_v11  ;;  %v14135_v42 = vpack.c.bf16 %v888_v41, %v885_v21  ;;  %v14137_v44 = vsub.f32 %v873_v36, %v885_v21  ;;  %v14139_v50 = vsub.f32 %v874_v40, %v888_v41 }
  0x16   :  { %v12736_v23 = vpack.c.bf16 %v254_v18, %v247_v8  ;;  %11389 = vmatmul.mubr.f32.gmra.mrb[4].mxu0 %v14057_v56  ;;  %v211_v26 = vsub.f32 %v14088_v10, %v14099_v19  ;;  %v891_v0 = vand.u32 4294901760, %v875_v54  ;;  %v894_v1 = vand.u32 4294901760, %v876_v57 }
  0x17   :  { %11329 = vmatmul.mubr.f32.gmra.mrb[4].mxu1 %v14092_v12  ;;  %11391 = vmatprep.mubr.f32.mxu0 %v14099_v19  ;;  %v221_v28 = vsub.f32 %v14095_v13, %v14102_v22  ;;  %v1036_v52 = vand.u32 4294901760, %v14137_v44  ;;  %v15528_v53 = vand.u32 4294901760, %v14139_v50  ;;  %v1703_v5 = vand.u32 4294901760, %v1681_v61 }
  0x18   :  { %12737 = vmatprep.subr.bf16.mxu1 %v12736_v23  ;;  %v14111_v30 = vand.u32 4294901760, %v211_v26  ;;  %12763 = vmatpush3.bf16.msra.mxu0 %v12760_v11  ;;  %v1706_v8 = vand.u32 4294901760, %v1682_v63  ;;  %v14184_v11 = vsub.f32 %v1680_v51, %v1700_v60  ;;  %v14187_v18 = vpack.c.bf16 %v894_v1, %v891_v0 }
  0x19   :  { %12739 = vmatpush3.bf16.msra.mxu1 %v12736_v23  ;;  %v14115_v34 = vand.u32 4294901760, %v221_v28  ;;  %12765 = vmatprep.subr.bf16.mxu0 %v13963_v14  ;;  %v1037_v2 = vsub.f32 %v14137_v44, %v1036_v52  ;;  %v1044_v3 = vsub.f32 %v14139_v50, %v15528_v53  ;;  %v14194_v36 = vsub.f32 %v876_v57, %v894_v1 }
  0x1a   :  { %11331 = vmatprep.mubr.f32.mxu1 %v14111_v30  ;;  %11392 = vmatmul.mubr.f32.gmra.mrb[6].mxu0 %v14102_v22  ;;  %v14200_v21 = vsub.f32 %v1681_v61, %v1703_v5  ;;  %v14202_v41 = vsub.f32 %v1682_v63, %v1706_v8 }
  0x1b   :  { %11332 = vmatmul.mubr.f32.gmra.mrb[6].mxu1 %v14115_v34  ;;  %11402 = vmatprep.mubr.f32.mxu0 %v13965_v15  ;;  %v1038_v26 = vand.u32 4294901760, %v1037_v2  ;;  %v1045_v28 = vand.u32 4294901760, %v1044_v3  ;;  %v15526_v57 = vand.u32 4294901760, %v14194_v36 }
  0x1c   :  { %11342 = vmatprep.mubr.f32.mxu1 %v13965_v15  ;;  %12741 = vmatprep.subr.bf16.mxu1 %v12740_v31  ;;  %v1792_v61 = vand.u32 4294901760, %v14200_v21  ;;  %v1799_v63 = vand.u32 4294901760, %v14202_v41 }
  0x1d   :  { %v12780_v51 = vpack.c.bf16 %v1045_v28, %v1038_v26  ;;  %v1058_v1 = vsub.f32 %v14194_v36, %v15526_v57  ;;  %v13874_v57 = vmov 0.0  }
  0x1e   :  { %11403 = vmatmul.mubr.f32.vlgmr.msra.gmra.mrb[0].mxu0 %v13967_v16 }
  0x1f   :  { %11343 = vmatmul.mubr.f32.vlgmr.msra.gmra.mrb[0].mxu1 %v13967_v16  ;;  %11405 = vmatprep.mubr.f32.mxu0 %v13992_v27  ;;  %v1059_v28 = vand.u32 4294901760, %v1058_v1 }
  0x20   :  { %12743 = vmatpush3.bf16.msra.mxu1 %v12740_v31  ;;  %11345 = vmatprep.mubr.f32.mxu1 %v13992_v27  ;;  %v14192_v31 = vsub.f32 %v875_v54, %v891_v0 }
  0x21   :  { %12745 = vmatprep.subr.bf16.mxu1 %v12744_v17  ;;  %12767 = vmatpush3.bf16.msra.mxu0 %v13963_v14  ;;  %v1679_v14 = vld [vmem:[%s15518_s6] sm:$0xff] }
  0x22   :  { %11406 = vmatmul.mubr.f32.gmra.mrb[2].mxu0 %v13997_v29  ;;  %12769 = vmatprep.subr.bf16.mxu0 %v13977_v20  ;;  %v15527_v54 = vand.u32 4294901760, %v14192_v31 }
  0x23   :  { %11346 = vmatmul.mubr.f32.gmra.mrb[2].mxu1 %v13997_v29  ;;  %11408 = vmatprep.mubr.f32.mxu0 %v14017_v38 }
  0x24   :  { %11348 = vmatprep.mubr.f32.mxu1 %v14017_v38  ;;  %12747 = vmatpush3.bf16.msra.mxu1 %v12744_v17  ;;  %v1785_v17 = vand.u32 4294901760, %v14184_v11  ;;  %v1051_v0 = vsub.f32 %v14192_v31, %v15527_v54 }
  0x25   :  { %12771 = vmatpush3.bf16.msra.mxu0 %v13977_v20  ;;  %12773 = vmatprep.subr.bf16.mxu1 %v14135_v42  ;;  %v1697_v20 = vand.u32 4294901760, %v1679_v14 }
  0x26   :  { %11409 = vmatmul.mubr.f32.gmra.mrb[4].mxu0 %v14019_v39  ;;  %12820 = vmatprep.subr.bf16.mxu0 %v13872_v59  ;;  %v1052_v26 = vand.u32 4294901760, %v1051_v0 }
  0x27   :  { %11349 = vmatmul.mubr.f32.gmra.mrb[4].mxu1 %v14019_v39  ;;  %11411 = vmatprep.mubr.f32.mxu0 %v14078_v4  ;;  %v14182_v9 = vsub.f32 %v1679_v14, %v1697_v20  ;;  %v14189_v23 = vpack.c.bf16 %v1700_v60, %v1697_v20  ;;  %v14208_v14 = vpack.c.bf16 %v1706_v8, %v1703_v5 }
  0x28   :  { %11351 = vmatprep.mubr.f32.mxu1 %v14078_v4  ;;  %v1786_v60 = vsub.f32 %v14184_v11, %v1785_v17  ;;  %v1793_v5 = vsub.f32 %v14200_v21, %v1792_v61  ;;  %v1800_v8 = vsub.f32 %v14202_v41, %v1799_v63  ;;  %v12784_v53 = vpack.c.bf16 %v1059_v28, %v1052_v26 }
  0x29   :  { %v1778_v40 = vand.u32 4294901760, %v14182_v9 }
  0x2a   :  { %11412 = vmatmul.mubr.f32.gmra.mrb[6].mxu0 %v14084_v7  ;;  %v1787_v3 = vand.u32 4294901760, %v1786_v60  ;;  %v1794_v60 = vand.u32 4294901760, %v1793_v5  ;;  %v1801_v54 = vand.u32 4294901760, %v1800_v8 }
  0x2b   :  { %11352 = vmatmul.mubr.f32.gmra.mrb[6].mxu1 %v14084_v7  ;;  %11422 = vmatprep.mubr.f32.mxu0 %v13965_v15  ;;  %v1779_v20 = vsub.f32 %v14182_v9, %v1778_v40 }
  0x2c   :  { %11362 = vmatprep.mubr.f32.mxu1 %v13986_v24  ;;  %v14254_v0 = vpack.c.bf16 %v1801_v54, %v1794_v60 }
  0x2d   :  { %v1780_v2 = vand.u32 4294901760, %v1779_v20 }
  0x2e   :  { %11423 = vmatmul.mubr.f32.vlgmr.msra.gmra.mrb[0].mxu0 %v13967_v16 }
  0x2f   :  { %11363 = vmatmul.mubr.f32.vlgmr.msra.gmra.mrb[0].mxu1 %v13989_v25  ;;  %11425 = vmatprep.mubr.f32.mxu0 %v13992_v27  ;;  %v14248_v20 = vpack.c.bf16 %v1787_v3, %v1780_v2 }
  0x30   :  { %12775 = vmatpush3.bf16.msra.mxu1 %v14135_v42  ;;  %11365 = vmatprep.mubr.f32.mxu1 %v14011_v35 }
  0x31   :  { %12777 = vmatprep.subr.bf16.mxu1 %v14187_v18  ;;  %12822 = vmatpush3.bf16.msra.mxu0 %v14189_v23 }
  0x32   :  { %11426 = vmatmul.mubr.f32.gmra.mrb[2].mxu0 %v13997_v29  ;;  %12823 = vmatprep.subr.bf16.mxu0 %v13872_v59 }
  0x33   :  { %11366 = vmatmul.mubr.f32.gmra.mrb[2].mxu1 %v14015_v37  ;;  %11428 = vmatprep.mubr.f32.mxu0 %v14017_v38 }
  0x34   :  { %11368 = vmatprep.mubr.f32.mxu1 %v14035_v46  ;;  %12779 = vmatpush3.bf16.msra.mxu1 %v14187_v18 }
  0x35   :  { %12825 = vmatpush3.bf16.msra.mxu0 %v14208_v14  ;;  %12781 = vmatprep.subr.bf16.mxu1 %v12780_v51 }
  0x36   :  { %11429 = vmatmul.mubr.f32.gmra.mrb[4].mxu0 %v14019_v39  ;;  %12826 = vmatprep.subr.bf16.mxu0 %v13872_v59 }
  0x37   :  { %11369 = vmatmul.mubr.f32.gmra.mrb[4].mxu1 %v14038_v47  ;;  %11431 = vmatprep.mubr.f32.mxu0 %v14078_v4 }
  0x38   :  { %11371 = vmatprep.mubr.f32.mxu1 %v14088_v10 }
  0x3a   :  { %11432 = vmatmul.mubr.f32.gmra.mrb[6].mxu0 %v14084_v7 }
  0x3b   :  { %11372 = vmatmul.mubr.f32.gmra.mrb[6].mxu1 %v14095_v13  ;;  %11562 = vmatprep.mubr.msk.f32.mxu0 %vm13873_vm1, %v13874_v57 }
  0x3c   :  { %11442 = vmatprep.mubr.f32.mxu1 %v14040_v48  ;;  %v12788_v48 = vpack.c.bf16 %v14139_v50, %v14137_v44 }
  0x3e   :  { %11563 = vmatmul.mubr.f32.vlgmr.msra.gmra.mrb[8].mxu0 %v13874_v57 }
  0x3f   :  { %11443 = vmatmul.mubr.f32.vlgmr.msra.gmra.mrb[8].mxu1 %v14042_v49  ;;  %12828 = vmatpush3.bf16.msra.mxu0 %v14248_v20  ;;  %v14266_v49 = vpack.c.bf16 %v14184_v11, %v14182_v9 }
  0x40   :  { %12783 = vmatpush3.bf16.msra.mxu1 %v12780_v51  ;;  %11445 = vmatprep.mubr.f32.mxu1 %v14064_v58  ;;  %v14275_v58 = vpack.c.bf16 %v14202_v41, %v14200_v21 }
  0x41   :  { %12829 = vmatprep.subr.bf16.mxu0 %v13872_v59  ;;  %11573 = vmatprep.mubr.msk.f32.mxu0 %vm13873_vm1, %v13874_v57 }
  0x42   :  { %12785 = vmatprep.subr.bf16.mxu1 %v12784_v53 }
  0x43   :  { %11446 = vmatmul.mubr.f32.gmra.mrb[10].mxu1 %v14069_v62  ;;  %12831 = vmatpush3.bf16.msra.mxu0 %v14254_v0  ;;  %v12792_v62 = vpack.c.bf16 %v14194_v36, %v14192_v31 }
  0x44   :  { %11448 = vmatprep.mubr.f32.mxu1 %v14082_v6  ;;  %12832 = vmatprep.subr.bf16.mxu0 %v13872_v59  ;;  %v14300_v6 = vpack.c.bf16 %v1785_v17, %v1778_v40  ;;  %v10617_v17 = vld [vmem:[%s15520_s4] ss:$0 sm:$0xff]  ;;  %s13876_s4 = smov 32  }
  0x45   :  { %12787 = vmatpush3.bf16.msra.mxu1 %v12784_v53 }
  0x46   :  { %11574 = vmatmul.mubr.f32.vlgmr.msra.gmra.mrb[8].mxu0 %v13874_v57  ;;  %12789 = vmatprep.subr.bf16.mxu1 %v12788_v48 }
  0x47   :  { %11449 = vmatmul.mubr.f32.gmra.mrb[12].mxu1 %v14092_v12  ;;  %12834 = vmatpush3.bf16.msra.mxu0 %v14266_v49  ;;  %v14312_v12 = vpack.c.bf16 %v1799_v63, %v1792_v61 }
  0x48   :  { %11451 = vmatprep.mubr.f32.mxu1 %v14111_v30  ;;  %12835 = vmatprep.subr.bf16.mxu0 %v13872_v59 }
  0x49   :  { %11584 = vmatprep.mubr.msk.f32.mxu0 %vm13873_vm1, %v13874_v57 }
  0x4b   :  { %11452 = vmatmul.mubr.f32.gmra.mrb[14].mxu1 %v14115_v34  ;;  %12837 = vmatpush3.bf16.msra.mxu0 %v14275_v58 }
  0x4c   :  { %11462 = vmatprep.mubr.f32.mxu1 %v13965_v15  ;;  %12838 = vmatprep.subr.bf16.mxu0 %v13872_v59 }
  0x4e   :  { %11585 = vmatmul.mubr.f32.vlgmr.msra.gmra.mrb[8].mxu0 %v13874_v57 }
  0x4f   :  { %11463 = vmatmul.mubr.f32.vlgmr.msra.gmra.mrb[8].mxu1 %v13967_v16  ;;  %12840 = vmatpush3.bf16.msra.mxu0 %v14189_v23 }
  0x50   :  { %12791 = vmatpush3.bf16.msra.mxu1 %v12788_v48  ;;  %11465 = vmatprep.mubr.f32.mxu1 %v13992_v27 }
  0x51   :  { %12841 = vmatprep.subr.bf16.mxu0 %v13872_v59  ;;  %11595 = vmatprep.mubr.msk.f32.mxu0 %vm13873_vm1, %v13874_v57 }
  0x52   :  { %12793 = vmatprep.subr.bf16.mxu1 %v12792_v62 }
  0x53   :  { %11466 = vmatmul.mubr.f32.gmra.mrb[10].mxu1 %v13997_v29  ;;  %12843 = vmatpush3.bf16.msra.mxu0 %v14208_v14 }
  0x54   :  { %11468 = vmatprep.mubr.f32.mxu1 %v14017_v38  ;;  %12844 = vmatprep.subr.bf16.mxu0 %v13872_v59 }
  0x55   :  { %12795 = vmatpush3.bf16.msra.mxu1 %v12792_v62 }
  0x56   :  { %11596 = vmatmul.mubr.f32.vlgmr.msra.gmra.mrb[8].mxu0 %v13874_v57  ;;  %12797 = vmatprep.subr.bf16.mxu1 %v14135_v42 }
  0x57   :  { %11469 = vmatmul.mubr.f32.gmra.mrb[12].mxu1 %v14019_v39  ;;  %12846 = vmatpush3.bf16.msra.mxu0 %v14300_v6 }
  0x58   :  { %11471 = vmatprep.mubr.f32.mxu1 %v14078_v4  ;;  %12847 = vmatprep.subr.bf16.mxu0 %v13872_v59 }
  0x59   :  { %11606 = vmatprep.mubr.msk.f32.mxu0 %vm13873_vm1, %v13874_v57 }
  0x5b   :  { %11472 = vmatmul.mubr.f32.gmra.mrb[14].mxu1 %v14084_v7  ;;  %12849 = vmatpush3.bf16.msra.mxu0 %v14312_v12 }
  0x5c   :  { %11482 = vmatprep.mubr.f32.mxu1 %v13986_v24  ;;  %12850 = vmatprep.subr.bf16.mxu0 %v13872_v59  ;;  %v15529_v24 = vand.u32 4294901760, %v14139_v50 }
  0x5e   :  { %11607 = vmatmul.mubr.f32.vlgmr.msra.gmra.mrb[8].mxu0 %v13874_v57  ;;  %v12804_v30 = vpack.c.bf16 %v15529_v24, %v1036_v52 }
  0x5f   :  { %11483 = vmatmul.mubr.f32.vlgmr.msra.gmra.mrb[8].mxu1 %v13989_v25  ;;  %12852 = vmatpush3.bf16.msra.mxu0 %v14189_v23  ;;  %v15530_v25 = vand.u32 4294901760, %v14192_v31 }
  0x60   :  { %12799 = vmatpush3.bf16.msra.mxu1 %v14135_v42  ;;  %11485 = vmatprep.mubr.f32.mxu1 %v14011_v35  ;;  %v15531_v35 = vand.u32 4294901760, %v14194_v36 }
  0x61   :  { %12853 = vmatprep.subr.bf16.mxu0 %v13872_v59  ;;  %11617 = vmatprep.mubr.msk.f32.mxu0 %vm13873_vm1, %v13874_v57 }
  0x62   :  { %12801 = vmatprep.subr.bf16.mxu1 %v14187_v18 }
  0x63   :  { %11486 = vmatmul.mubr.f32.gmra.mrb[10].mxu1 %v14015_v37  ;;  %12855 = vmatpush3.bf16.msra.mxu0 %v14208_v14  ;;  %v12808_v37 = vpack.c.bf16 %v15531_v35, %v15530_v25 }
  0x64   :  { %11488 = vmatprep.mubr.f32.mxu1 %v14035_v46  ;;  %12803 = vmatpush3.bf16.msra.mxu1 %v14187_v18  ;;  %v1685_v46 = vld [vmem:[%s15519_s7 + $0x10] sm:$0xff] }
  0x65   :  { %12805 = vmatprep.subr.bf16.mxu1 %v12804_v30  ;;  %12892 = vmatprep.subr.bf16.mxu0 %v13872_v59 }
  0x66   :  { %11618 = vmatmul.mubr.f32.vlgmr.msra.gmra.mrb[8].mxu0 %v13874_v57 }
  0x67   :  { %11489 = vmatmul.mubr.f32.gmra.mrb[12].mxu1 %v14038_v47  ;;  %12894 = vmatpush3.bf16.msra.mxu0 %v14189_v23  ;;  %v1686_v47 = vld [vmem:[%s15519_s7 + $0x18] sm:$0xff] }
  0x68   :  { %11491 = vmatprep.mubr.f32.mxu1 %v14088_v10  ;;  %12895 = vmatprep.subr.bf16.mxu0 %v13872_v59 }
  0x69   :  { %11694 = vmatprep.mubr.msk.f32.mxu0 %vm13873_vm1, %v13874_v57 }
  0x6b   :  { %11492 = vmatmul.mubr.f32.gmra.mrb[14].mxu1 %v14095_v13  ;;  %12897 = vmatpush3.bf16.msra.mxu0 %v14208_v14 }
  0x6c   :  { %11502 = vmatprep.mubr.f32.mxu1 %v14004_v32  ;;  %12898 = vmatprep.subr.bf16.mxu0 %v13872_v59  ;;  %v1683_v32 = vld [vmem:[%s15519_s7] sm:$0xff] }
  0x6f   :  { %11503 = vmatmul.mubr.f32.vlgmr.msra.gmra.mrb[8].mxu1 %v14007_v33  ;;  %v1684_v33 = vld [vmem:[%s15519_s7 + $0x8] sm:$0xff] }
  0x70   :  { %12807 = vmatpush3.bf16.msra.mxu1 %v12804_v30  ;;  %11505 = vmatprep.mubr.f32.mxu1 %v14027_v43  ;;  %v2208_v43 = vand.u32 4294901760, %v1683_v32 }
  0x71   :  { %12809 = vmatprep.subr.bf16.mxu1 %v12808_v37 }
  0x72   :  { %v2288_v13 = vsub.f32 %v1683_v32, %v2208_v43 }
  0x73   :  { %11506 = vmatmul.mubr.f32.gmra.mrb[10].mxu1 %v14032_v45  ;;  %v2211_v45 = vand.u32 4294901760, %v1684_v33 }
  0x74   :  { %11508 = vmatprep.mubr.f32.mxu1 %v14054_v55  ;;  %12811 = vmatpush3.bf16.msra.mxu1 %v12808_v37  ;;  %v2214_v55 = vand.u32 4294901760, %v1685_v46  ;;  %v2289_v34 = vand.u32 4294901760, %v2288_v13 }
  0x75   :  { %12813 = vmatprep.subr.bf16.mxu1 %v14135_v42  ;;  %v14388_v10 = vpack.c.bf16 %v2211_v45, %v2208_v43 }
  0x76   :  { %v2302_v44 = vsub.f32 %v1685_v46, %v2214_v55 }
  0x77   :  { %11509 = vmatmul.mubr.f32.gmra.mrb[12].mxu1 %v14057_v56  ;;  %v2217_v56 = vand.u32 4294901760, %v1686_v47 }
  0x78   :  { %11511 = vmatprep.mubr.f32.mxu1 %v14099_v19  ;;  %v2295_v19 = vsub.f32 %v1684_v33, %v2211_v45  ;;  %v2303_v52 = vand.u32 4294901760, %v2302_v44 }
  0x79   :  { %v2309_v50 = vsub.f32 %v1686_v47, %v2217_v56 }
  0x7a   :  { %v2304_v11 = vsub.f32 %v2302_v44, %v2303_v52 }
  0x7b   :  { %11512 = vmatmul.mubr.f32.gmra.mrb[14].mxu1 %v14102_v22  ;;  %v14391_v22 = vpack.c.bf16 %v2217_v56, %v2214_v55  ;;  %v2310_v53 = vand.u32 4294901760, %v2309_v50 }
  0x7c   :  { %11522 = vmatprep.mubr.f32.mxu1 %v13965_v15 }
  0x7d   :  { %v14438_v40 = vpack.c.bf16 %v2310_v53, %v2303_v52 }
  0x7f   :  { %11523 = vmatmul.mubr.f32.vlgmr.msra.gmra.mrb[8].mxu1 %v13967_v16 }
  0x80   :  { %12815 = vmatpush3.bf16.msra.mxu1 %v14135_v42  ;;  %11525 = vmatprep.mubr.f32.mxu1 %v13992_v27  ;;  %v2296_v42 = vand.u32 4294901760, %v2295_v19 }
  0x81   :  { %12817 = vmatprep.subr.bf16.mxu1 %v14187_v18 }
  0x82   :  { %v14433_v36 = vpack.c.bf16 %v2296_v42, %v2289_v34 }
  0x83   :  { %11526 = vmatmul.mubr.f32.gmra.mrb[10].mxu1 %v13997_v29 }
  0x84   :  { %11528 = vmatprep.mubr.f32.mxu1 %v14017_v38  ;;  %12819 = vmatpush3.bf16.msra.mxu1 %v14187_v18  ;;  %v2311_v18 = vsub.f32 %v2309_v50, %v2310_v53 }
  0x85   :  { %12856 = vmatprep.subr.bf16.mxu1 %v13872_v59 }
  0x86   :  { %v2312_v31 = vand.u32 4294901760, %v2311_v18 }
  0x87   :  { %11529 = vmatmul.mubr.f32.gmra.mrb[12].mxu1 %v14019_v39 }
  0x88   :  { %11531 = vmatprep.mubr.f32.mxu1 %v14078_v4 }
  0x8b   :  { %11532 = vmatmul.mubr.f32.gmra.mrb[14].mxu1 %v14084_v7 }
  0x8c   :  { %11542 = vmatprep.mubr.f32.mxu1 %v13965_v15  ;;  %v2290_v15 = vsub.f32 %v2288_v13, %v2289_v34 }
  0x8f   :  { %11543 = vmatmul.mubr.f32.vlgmr.msra.gmra.mrb[8].mxu1 %v13967_v16  ;;  %v2297_v16 = vsub.f32 %v2295_v19, %v2296_v42 }
  0x90   :  { %12858 = vmatpush3.bf16.msra.mxu1 %v14388_v10  ;;  %11545 = vmatprep.mubr.f32.mxu1 %v13992_v27  ;;  %v2291_v27 = vand.u32 4294901760, %v2290_v15 }
  0x91   :  { %12859 = vmatprep.subr.bf16.mxu1 %v13872_v59  ;;  %v2298_v9 = vand.u32 4294901760, %v2297_v16 }
  0x93   :  { %11546 = vmatmul.mubr.f32.gmra.mrb[10].mxu1 %v13997_v29  ;;  %v14405_v29 = vpack.c.bf16 %v2298_v9, %v2291_v27  ;;  %v1687_v27 = vlaneseq }
  0x94   :  { %11548 = vmatprep.mubr.f32.mxu1 %v14017_v38  ;;  %12861 = vmatpush3.bf16.msra.mxu1 %v14391_v22  ;;  %v2305_v38 = vand.u32 4294901760, %v2304_v11 }
  0x95   :  { %12862 = vmatprep.subr.bf16.mxu1 %v13872_v59  ;;  %v14478_v9 = vand.u32 127, %v1687_v27 }
  0x97   :  { %11549 = vmatmul.mubr.f32.gmra.mrb[12].mxu1 %v14019_v39  ;;  %v14409_v39 = vpack.c.bf16 %v2312_v31, %v2305_v38  ;;  %vm1689_vm2 = vcmp.ge.s32.totalorder %v14478_v9, 96  ;;  %v10618_v31 = vld [vmem:[%s15521_s5] ss:$0 sm:$0xff] }
  0x98   :  { %11551 = vmatprep.mubr.f32.mxu1 %v14078_v4  ;;  %v14415_v4 = vpack.c.bf16 %v2295_v19, %v2288_v13 }
  0x9b   :  { %11552 = vmatmul.mubr.f32.gmra.mrb[14].mxu1 %v14084_v7  ;;  %v14420_v7 = vpack.c.bf16 %v2309_v50, %v2302_v44  ;;  %v13875_v44 = vmov 0  }
  0x9c   :  { %11628 = vmatprep.mubr.msk.f32.mxu1 %vm13873_vm1, %v13874_v57  ;;  %13742 = vset.pattern.permute.xlu0 %v13875_v44 }
  0x9d   :  { %13743 = vset.pattern.permute.xlu1 %v13875_v44 }
  0x9f   :  { %11629 = vmatmul.mubr.f32.vlgmr.msra.gmra.mrb[16].mxu1 %v13874_v57 }
  0xa0   :  { %12864 = vmatpush3.bf16.msra.mxu1 %v14405_v29  ;;  %11639 = vmatprep.mubr.msk.f32.mxu1 %vm13873_vm1, %v13874_v57 }
  0xa1   :  { %12865 = vmatprep.subr.bf16.mxu1 %v13872_v59 }
  0xa4   :  { %12867 = vmatpush3.bf16.msra.mxu1 %v14409_v39 }
  0xa5   :  { %12868 = vmatprep.subr.bf16.mxu1 %v13872_v59 }
  0xa7   :  { %11640 = vmatmul.mubr.f32.vlgmr.msra.gmra.mrb[16].mxu1 %v13874_v57 }
  0xa8   :  { %12870 = vmatpush3.bf16.msra.mxu1 %v14415_v4  ;;  %11650 = vmatprep.mubr.msk.f32.mxu1 %vm13873_vm1, %v13874_v57 }
  0xa9   :  { %12871 = vmatprep.subr.bf16.mxu1 %v13872_v59 }
  0xac   :  { %12873 = vmatpush3.bf16.msra.mxu1 %v14420_v7 }
  0xad   :  { %12874 = vmatprep.subr.bf16.mxu1 %v13872_v59 }
  0xaf   :  { %11651 = vmatmul.mubr.f32.vlgmr.msra.gmra.mrb[16].mxu1 %v13874_v57 }
  0xb0   :  { %12876 = vmatpush3.bf16.msra.mxu1 %v14388_v10  ;;  %11661 = vmatprep.mubr.msk.f32.mxu1 %vm13873_vm1, %v13874_v57 }
  0xb1   :  { %12877 = vmatprep.subr.bf16.mxu1 %v13872_v59 }
  0xb4   :  { %12879 = vmatpush3.bf16.msra.mxu1 %v14391_v22 }
  0xb5   :  { %12880 = vmatprep.subr.bf16.mxu1 %v13872_v59 }
  0xb7   :  { %11662 = vmatmul.mubr.f32.vlgmr.msra.gmra.mrb[16].mxu1 %v13874_v57 }
  0xb8   :  { %12882 = vmatpush3.bf16.msra.mxu1 %v14433_v36  ;;  %11672 = vmatprep.mubr.msk.f32.mxu1 %vm13873_vm1, %v13874_v57 }
  0xb9   :  { %12883 = vmatprep.subr.bf16.mxu1 %v13872_v59 }
  0xbc   :  { %12885 = vmatpush3.bf16.msra.mxu1 %v14438_v40 }
  0xbd   :  { %12886 = vmatprep.subr.bf16.mxu1 %v13872_v59 }
  0xbf   :  { %11673 = vmatmul.mubr.f32.vlgmr.msra.gmra.mrb[16].mxu1 %v13874_v57 }
  0xc0   :  { %12888 = vmatpush3.bf16.msra.mxu1 %v14388_v10  ;;  %11683 = vmatprep.mubr.msk.f32.mxu1 %vm13873_vm1, %v13874_v57 }
  0xc1   :  { %12889 = vmatprep.subr.bf16.mxu1 %v13872_v59 }
  0xc4   :  { %12891 = vmatpush3.bf16.msra.mxu1 %v14391_v22 }
  0xc5   :  { %12928 = vmatprep.subr.bf16.mxu1 %v13872_v59 }
  0xc7   :  { %11684 = vmatmul.mubr.f32.vlgmr.msra.gmra.mrb[16].mxu1 %v13874_v57 }
  0xc8   :  { %12930 = vmatpush3.bf16.msra.mxu1 %v14388_v10  ;;  %11760 = vmatprep.mubr.msk.f32.mxu1 %vm13873_vm1, %v13874_v57 }
  0xc9   :  { %12931 = vmatprep.subr.bf16.mxu1 %v13872_v59 }
  0xcc   :  { %12933 = vmatpush3.bf16.msra.mxu1 %v14391_v22 }
  0xcd   :  { %12934 = vmatprep.subr.bf16.mxu1 %v13872_v59 }
 0x101   :  { %v11424_v21 = vpop.f32.mrb[0].mxu0 }
 0x102   :  { %v11364_v41 = vpop.f32.mrb[0].mxu1  ;;  %v819_v51 = vpop.f32.mrb[1].mxu0 }
 0x103   :  { %v13468_v54 = vadd.f32 %v11364_v41, %v10617_v17  ;;  %v437_v61 = vpop.f32.mrb[1].mxu1 }
 0x104   :  { %v13470_v63 = vadd.f32 %v10617_v17, %v437_v61 }
 0x105   :  { %v14462_v1 = vadd.f32 %v13468_v54, %v11424_v21  ;;  %v11427_v2 = vpop.f32.mrb[2].mxu0 }
 0x106   :  { %v13471_v3 = vadd.f32 %v13470_v63, %v819_v51  ;;  %v11367_v5 = vpop.f32.mrb[2].mxu1  ;;  %v831_v8 = vpop.f32.mrb[3].mxu0 }
 0x107   :  { %v13472_v26 = vadd.f32 %v11367_v5, %v10617_v17  ;;  %v451_v28 = vpop.f32.mrb[3].mxu1 }
 0x108   :  { %v13474_v60 = vadd.f32 %v10617_v17, %v451_v28 }
 0x109   :  { %v14464_v48 = vadd.f32 %v13472_v26, %v11427_v2  ;;  %v11430_v62 = vpop.f32.mrb[4].mxu0 }
 0x10a   :  { %v14466_v24 = vadd.f32 %v13474_v60, %v831_v8  ;;  %v11370_v30 = vpop.f32.mrb[4].mxu1  ;;  %v843_v25 = vpop.f32.mrb[5].mxu0 }
 0x10b   :  { %v13476_v35 = vadd.f32 %v11370_v30, %v10617_v17  ;;  %v465_v37 = vpop.f32.mrb[5].mxu1 }
 0x10c   :  { %v13478_v32 = vadd.f32 %v10617_v17, %v465_v37 }
 0x10d   :  { %v14468_v33 = vadd.f32 %v13476_v35, %v11430_v62  ;;  %v11433_v43 = vpop.f32.mrb[6].mxu0 }
 0x10e   :  { %v14470_v45 = vadd.f32 %v13478_v32, %v843_v25  ;;  %v11373_v46 = vpop.f32.mrb[6].mxu1  ;;  %v855_v47 = vpop.f32.mrb[7].mxu0 }
 0x10f   :  { %v13480_v55 = vadd.f32 %v11373_v46, %v10617_v17  ;;  %v479_v56 = vpop.f32.mrb[7].mxu1 }
 0x110   :  { %v13482_v13 = vadd.f32 %v10617_v17, %v479_v56 }
 0x111   :  { %v14472_v19 = vadd.f32 %v13480_v55, %v11433_v43 }
 0x112   :  { %v14474_v34 = vadd.f32 %v13482_v13, %v855_v47  ;;  %v14507_v47 = vld [vmem:[%s15522_s1] sm:$0xff]  ;;  %s13877_s1 = smov 64  }
 0x113   :  { %vm2718_vm3 = vcmp.gt.s32.totalorder %v14507_v47, 0  ;;  %vm2719_vm4 = vcmp.gt.s32.totalorder %v14507_v47, 7  ;;  %vm3770_vm7 = vcmp.gt.s32.totalorder %v14507_v47, 1  ;;  %vm3771_vm8 = vcmp.gt.s32.totalorder %v14507_v47, 6 }
 0x114   :  { %vm4822_vm11 = vcmp.gt.s32.totalorder %v14507_v47, 2  ;;  %vm4823_vm12 = vcmp.gt.s32.totalorder %v14507_v47, 5  ;;  %vm5874_vm15 = vcmp.gt.s32.totalorder %v14507_v47, 3 }
 0x139   :  { %v2177_v42 = vpop.f32.mrb[8].mxu0 }
 0x13a   :  { %v2181_v50 = vadd.f32 %v13471_v3, %v2177_v42  ;;  %v11619_v15 = vpop.f32.mrb[9].mxu0  ;;  %v2720_v42 = vsel %vm2718_vm3, 1, %v13875_v44  ;;  %vm5875_vm3 = vcmp.gt.s32.totalorder %v14507_v47, 4 }
 0x13c   :  { %v10619_v16 = vmul.f32 -1.442695, %v2181_v50 }
 0x13e   :  { %13744 = vpow2.f32 %v10619_v16 }
 0x13f   :  { %13746 = vtanh.f32 %v2181_v50 }
 0x148   :  { %v13745_v52 = vpop.eup %13744 }
 0x149   :  { %v2186_v53 = vadd.f32 1.0, %v13745_v52  ;;  %v13747_v11 = vpop.eup %13746 }
 0x14b   :  { %13748 = vrcp.f32 %v2186_v53  ;;  %v2727_v53 = vsel %vm2719_vm4, 1, %v13875_v44 }
 0x155   :  { %v13749_v18 = vpop.eup %13748 }
 0x156   :  { %v14483_v38 = vsel %vm1689_vm2, %v13747_v11, %v13749_v18 }
 0x157   :  { %2192 = vrot.lane.b32.xlu0 %v14483_v38, %s13876_s4  ;;  %v2190_v27 = vmul.f32 0.0, %v14483_v38 }
 0x162   :  { %v11544_v17 = vpop.f32.mrb[8].mxu1 }
 0x163   :  { %v14490_v21 = vadd.f32 %v11544_v17, %v10618_v31  ;;  %v1624_v41 = vpop.f32.mrb[9].mxu1 }
 0x164   :  { %v14492_v51 = vadd.f32 %v10618_v31, %v1624_v41 }
 0x166   :  { %v11547_v54 = vpop.f32.mrb[10].mxu1 }
 0x167   :  { %v14494_v61 = vadd.f32 %v11547_v54, %v10618_v31  ;;  %v1636_v63 = vpop.f32.mrb[11].mxu1 }
 0x168   :  { %v14496_v2 = vadd.f32 %v10618_v31, %v1636_v63 }
 0x16a   :  { %v11550_v3 = vpop.f32.mrb[12].mxu1 }
 0x16b   :  { %v14498_v5 = vadd.f32 %v11550_v3, %v10618_v31  ;;  %v1648_v8 = vpop.f32.mrb[13].mxu1 }
 0x16c   :  { %v14500_v26 = vadd.f32 %v10618_v31, %v1648_v8 }
 0x16e   :  { %v11553_v28 = vpop.f32.mrb[14].mxu1 }
 0x16f   :  { %v1660_v60 = vpop.f32.mrb[15].mxu1  ;;  %v13490_v30 = vadd.f32 %v11553_v28, %v10618_v31 }
 0x170   :  { %v14502_v62 = vadd.f32 %v10618_v31, %v1660_v60 }
 0x19a   :  { %v2688_v25 = vpop.f32.mrb[16].mxu1 }
 0x19b   :  { %v2692_v35 = vadd.f32 %v13490_v30, %v2688_v25  ;;  %v11685_v37 = vpop.f32.mrb[17].mxu1 }
 0x19d   :  { %v10620_v32 = vmul.f32 -1.442695, %v2692_v35 }
 0x19f   :  { %13750 = vpow2.f32 %v10620_v32 }
 0x1a0   :  { %13752 = vtanh.f32 %v2692_v35 }
 0x1a9   :  { %v13751_v43 = vpop.eup %13750 }
 0x1aa   :  { %v2697_v46 = vadd.f32 1.0, %v13751_v43  ;;  %v13753_v55 = vpop.eup %13752 }
 0x1ac   :  { %13754 = vrcp.f32 %v2697_v46 }
 0x1b6   :  { %v13755_v56 = vpop.eup %13754 }
 0x1b7   :  { %v2700_v13 = vsel %vm1689_vm2, %v13753_v55, %v13755_v56 }
 0x1b8   :  { %2703 = vrot.lane.b32.xlu0 %v2700_v13, %s13876_s4  ;;  %v2701_v17 = vmul.f32 0.0, %v2700_v13 }
 0x1bc   :  { %2722 = vperm.xlu0 %13742, %v2720_v42  }
 0x1c9   :  { %v2193_v50 = vpop.permute.xlu0 %2192 }
 0x1ca   :  { %v2195_v15 = vmul.f32 %v2193_v50, %v14483_v38 }
 0x1cc   :  { %2197 = vrot.lane.b32.xlu1 %v2195_v15, %s13876_s4 }
 0x22a   :  { %v2704_v16 = vpop.permute.xlu0 %2703 }
 0x22b   :  { %v2706_v52 = vmul.f32 %v2704_v16, %v2700_v13 }
 0x22d   :  { %2708 = vrot.lane.b32.xlu1 %v2706_v52, %s13876_s4 }
 0x231   :  { %2729 = vperm.xlu1 %13743, %v2727_v53  }
 0x23b   :  { %v14530_v8 = vpop.permute.xlu0 %2722 }
 0x23c   :  { %vm2724_vm5 = vcmp.eq.s32.totalorder %v14530_v8, 1 }
 0x23e   :  { %v2198_v11 = vpop.permute.xlu1 %2197 }
 0x23f   :  { %v14520_v18 = vadd.f32 %v2198_v11, %v2190_v27 }
 0x241   :  { %13756 = vtanh.f32 %v14520_v18 }
 0x24b   :  { %v13757_v31 = vpop.eup %13756 }
 0x24c   :  { %2203 = vrot.lane.b32.xlu1 %v13757_v31, %s13876_s4 }
 0x29f   :  { %v2709_v41 = vpop.permute.xlu1 %2708 }
 0x2a0   :  { %v14524_v54 = vadd.f32 %v2709_v41, %v2701_v17 }
 0x2a2   :  { %13758 = vtanh.f32 %v14524_v54 }
 0x2ac   :  { %v13759_v63 = vpop.eup %13758 }
 0x2ad   :  { %2714 = vrot.lane.b32.xlu0 %v13759_v63, %s13876_s4 }
 0x2b0   :  { %v14528_v3 = vpop.permute.xlu1 %2729 }
 0x2b1   :  { %vm2731_vm6 = vcmp.eq.s32.totalorder %v14528_v3, 1  ;;  %v10061_v3 = vld [vmem:[%s15523_s8 + $0x28] sm:$0xff] }
 0x2be   :  { %v2204_v28 = vpop.permute.xlu1 %2203 }
 0x2bf   :  { %v2206_v60 = vmul.f32 %v2204_v28, %v14483_v38 }
 0x2c1   :  { %v14536_v30 = vsel %vm2724_vm5, %v2206_v60, 0.0 }
 0x2c2   :  { %2739 = vrot.lane.b32.xlu1 %v14536_v30, %s13877_s1 }
 0x31f   :  { %v2715_v25 = vpop.permute.xlu0 %2714 }
 0x320   :  { %v2717_v35 = vmul.f32 %v2715_v25, %v2700_v13 }
 0x322   :  { %v14543_v37 = vsel %vm2731_vm6, %v2717_v35, 0.0 }
 0x323   :  { %3255 = vrot.lane.b32.xlu0 %v14543_v37, %s13877_s1 }
 0x334   :  { %v2740_v38 = vpop.permute.xlu1 %2739 }
 0x335   :  { %v2741_v32 = vsel %vm54_vm0, %v2740_v38, 0 }
 0x336   :  { %v2812_v43 = vand.u32 4294901760, %v2741_v32 }
 0x338   :  { %v2813_v46 = vsub.f32 %v2741_v32, %v2812_v43 }
 0x33a   :  { %v2814_v55 = vand.u32 4294901760, %v2813_v46 }
 0x33c   :  { %v2815_v56 = vsub.f32 %v2813_v46, %v2814_v55 }
 0x33e   :  { %v2816_v42 = vand.u32 4294901760, %v2815_v56 }
 0x340   :  { %11695 = vmatmul.mubr.f32.vlgmr.msra.gmra.mrb[10].mxu0 %v2816_v42 }
 0x341   :  { %12900 = vmatpush3.bf16.msra.mxu0 %v14248_v20  ;;  %11705 = vmatprep.mubr.msk.f32.mxu0 %vm13873_vm1, %v13874_v57 }
 0x342   :  { %12901 = vmatprep.subr.bf16.mxu0 %v13872_v59 }
 0x345   :  { %12903 = vmatpush3.bf16.msra.mxu0 %v14254_v0 }
 0x346   :  { %12904 = vmatprep.subr.bf16.mxu0 %v13872_v59 }
 0x348   :  { %11706 = vmatmul.mubr.f32.vlgmr.msra.gmra.mrb[10].mxu0 %v2812_v43 }
 0x349   :  { %12906 = vmatpush3.bf16.msra.mxu0 %v14266_v49  ;;  %11716 = vmatprep.mubr.msk.f32.mxu0 %vm13873_vm1, %v13874_v57 }
 0x34a   :  { %12907 = vmatprep.subr.bf16.mxu0 %v13872_v59 }
 0x34d   :  { %12909 = vmatpush3.bf16.msra.mxu0 %v14275_v58 }
 0x34e   :  { %12910 = vmatprep.subr.bf16.mxu0 %v13872_v59 }
 0x350   :  { %11717 = vmatmul.mubr.f32.vlgmr.msra.gmra.mrb[10].mxu0 %v2813_v46 }
 0x351   :  { %12912 = vmatpush3.bf16.msra.mxu0 %v14189_v23  ;;  %11727 = vmatprep.mubr.msk.f32.mxu0 %vm13873_vm1, %v13874_v57 }
 0x352   :  { %12913 = vmatprep.subr.bf16.mxu0 %v13872_v59 }
 0x355   :  { %12915 = vmatpush3.bf16.msra.mxu0 %v14208_v14 }
 0x356   :  { %12916 = vmatprep.subr.bf16.mxu0 %v13872_v59 }
 0x358   :  { %11728 = vmatmul.mubr.f32.vlgmr.msra.gmra.mrb[10].mxu0 %v2814_v55 }
 0x359   :  { %12918 = vmatpush3.bf16.msra.mxu0 %v14300_v6  ;;  %11738 = vmatprep.mubr.msk.f32.mxu0 %vm13873_vm1, %v13874_v57 }
 0x35a   :  { %12919 = vmatprep.subr.bf16.mxu0 %v13872_v59 }
 0x35d   :  { %12921 = vmatpush3.bf16.msra.mxu0 %v14312_v12 }
 0x35e   :  { %12922 = vmatprep.subr.bf16.mxu0 %v13872_v59 }
 0x360   :  { %11739 = vmatmul.mubr.f32.vlgmr.msra.gmra.mrb[10].mxu0 %v2812_v43 }
 0x361   :  { %12924 = vmatpush3.bf16.msra.mxu0 %v14189_v23  ;;  %11749 = vmatprep.mubr.msk.f32.mxu0 %vm13873_vm1, %v13874_v57 }
 0x362   :  { %12925 = vmatprep.subr.bf16.mxu0 %v13872_v59 }
 0x365   :  { %12927 = vmatpush3.bf16.msra.mxu0 %v14208_v14 }
 0x366   :  { %12964 = vmatprep.subr.bf16.mxu0 %v13872_v59 }
 0x368   :  { %11750 = vmatmul.mubr.f32.vlgmr.msra.gmra.mrb[10].mxu0 %v2812_v43 }
 0x369   :  { %12966 = vmatpush3.bf16.msra.mxu0 %v14189_v23  ;;  %11826 = vmatprep.mubr.msk.f32.mxu0 %vm13873_vm1, %v13874_v57 }
 0x36a   :  { %12967 = vmatprep.subr.bf16.mxu0 %v13872_v59 }
 0x36d   :  { %12969 = vmatpush3.bf16.msra.mxu0 %v14208_v14 }
 0x36e   :  { %12970 = vmatprep.subr.bf16.mxu0 %v13872_v59 }
 0x395   :  { %v3256_v13 = vpop.permute.xlu0 %3255 }
 0x396   :  { %v3257_v50 = vsel %vm54_vm0, %v3256_v13, 0 }
 0x397   :  { %v3328_v15 = vand.u32 4294901760, %v3257_v50 }
 0x399   :  { %v3329_v16 = vsub.f32 %v3257_v50, %v3328_v15 }
 0x39b   :  { %v3330_v52 = vand.u32 4294901760, %v3329_v16 }
 0x39d   :  { %v3331_v53 = vsub.f32 %v3329_v16, %v3330_v52 }
 0x39f   :  { %v3332_v27 = vand.u32 4294901760, %v3331_v53  ;;  %v3779_v53 = vsel %vm3771_vm8, 1, %v13875_v44 }
 0x3a1   :  { %11761 = vmatmul.mubr.f32.vlgmr.msra.gmra.mrb[18].mxu1 %v3332_v27  ;;  %v14638_v27 = vsel %vm2724_vm5, %v14520_v18, 0.0 }
 0x3a2   :  { %12936 = vmatpush3.bf16.msra.mxu1 %v14405_v29  ;;  %11771 = vmatprep.mubr.msk.f32.mxu1 %vm13873_vm1, %v13874_v57 }
 0x3a3   :  { %12937 = vmatprep.subr.bf16.mxu1 %v13872_v59 }
 0x3a6   :  { %12939 = vmatpush3.bf16.msra.mxu1 %v14409_v39 }
 0x3a7   :  { %12940 = vmatprep.subr.bf16.mxu1 %v13872_v59 }
 0x3a9   :  { %11772 = vmatmul.mubr.f32.vlgmr.msra.gmra.mrb[18].mxu1 %v3328_v15 }
 0x3aa   :  { %12942 = vmatpush3.bf16.msra.mxu1 %v14415_v4  ;;  %11782 = vmatprep.mubr.msk.f32.mxu1 %vm13873_vm1, %v13874_v57 }
 0x3ab   :  { %12943 = vmatprep.subr.bf16.mxu1 %v13872_v59 }
 0x3ae   :  { %12945 = vmatpush3.bf16.msra.mxu1 %v14420_v7 }
 0x3af   :  { %12946 = vmatprep.subr.bf16.mxu1 %v13872_v59 }
 0x3b1   :  { %11783 = vmatmul.mubr.f32.vlgmr.msra.gmra.mrb[18].mxu1 %v3329_v16 }
 0x3b2   :  { %12948 = vmatpush3.bf16.msra.mxu1 %v14388_v10  ;;  %11793 = vmatprep.mubr.msk.f32.mxu1 %vm13873_vm1, %v13874_v57 }
 0x3b3   :  { %12949 = vmatprep.subr.bf16.mxu1 %v13872_v59 }
 0x3b6   :  { %12951 = vmatpush3.bf16.msra.mxu1 %v14391_v22 }
 0x3b7   :  { %12952 = vmatprep.subr.bf16.mxu1 %v13872_v59 }
 0x3b9   :  { %11794 = vmatmul.mubr.f32.vlgmr.msra.gmra.mrb[18].mxu1 %v3330_v52 }
 0x3ba   :  { %12954 = vmatpush3.bf16.msra.mxu1 %v14433_v36  ;;  %11804 = vmatprep.mubr.msk.f32.mxu1 %vm13873_vm1, %v13874_v57 }
 0x3bb   :  { %12955 = vmatprep.subr.bf16.mxu1 %v13872_v59 }
 0x3be   :  { %12957 = vmatpush3.bf16.msra.mxu1 %v14438_v40 }
 0x3bf   :  { %12958 = vmatprep.subr.bf16.mxu1 %v13872_v59 }
 0x3c1   :  { %11805 = vmatmul.mubr.f32.vlgmr.msra.gmra.mrb[18].mxu1 %v3328_v15 }
 0x3c2   :  { %12960 = vmatpush3.bf16.msra.mxu1 %v14388_v10  ;;  %11815 = vmatprep.mubr.msk.f32.mxu1 %vm13873_vm1, %v13874_v57 }
 0x3c3   :  { %12961 = vmatprep.subr.bf16.mxu1 %v13872_v59 }
 0x3c6   :  { %12963 = vmatpush3.bf16.msra.mxu1 %v14391_v22 }
 0x3c7   :  { %13000 = vmatprep.subr.bf16.mxu1 %v13872_v59 }
 0x3c9   :  { %11816 = vmatmul.mubr.f32.vlgmr.msra.gmra.mrb[18].mxu1 %v3328_v15 }
 0x3ca   :  { %13002 = vmatpush3.bf16.msra.mxu1 %v14388_v10  ;;  %11892 = vmatprep.mubr.msk.f32.mxu1 %vm13873_vm1, %v13874_v57 }
 0x3cb   :  { %13003 = vmatprep.subr.bf16.mxu1 %v13872_v59 }
 0x3ce   :  { %13005 = vmatpush3.bf16.msra.mxu1 %v14391_v22 }
 0x3cf   :  { %13006 = vmatprep.subr.bf16.mxu1 %v13872_v59 }
 0x43b   :  { %v3224_v11 = vpop.f32.mrb[10].mxu0 }
 0x43c   :  { %v3228_v31 = vadd.f32 %v14462_v1, %v3224_v11  ;;  %v11751_v17 = vpop.f32.mrb[11].mxu0 }
 0x43e   :  { %v10621_v41 = vmul.f32 -1.442695, %v3228_v31 }
 0x440   :  { %13760 = vpow2.f32 %v10621_v41 }
 0x441   :  { %13762 = vtanh.f32 %v3228_v31 }
 0x44a   :  { %v13761_v63 = vpop.eup %13760 }
 0x44b   :  { %v3233_v28 = vadd.f32 1.0, %v13761_v63  ;;  %v13763_v60 = vpop.eup %13762  ;;  %v14648_v63 = vsel %vm2731_vm6, %v14524_v54, 0.0 }
 0x44d   :  { %13764 = vrcp.f32 %v3233_v28 }
 0x457   :  { %v13765_v25 = vpop.eup %13764 }
 0x458   :  { %v3236_v35 = vsel %vm1689_vm2, %v13763_v60, %v13765_v25 }
 0x459   :  { %3239 = vrot.lane.b32.xlu1 %v3236_v35, %s13876_s4  ;;  %v3237_v11 = vmul.f32 %v3236_v35, %v14638_v27 }
 0x49c   :  { %v3740_v38 = vpop.f32.mrb[18].mxu1 }
 0x49d   :  { %v3744_v32 = vadd.f32 %v14502_v62, %v3740_v38  ;;  %v11817_v43 = vpop.f32.mrb[19].mxu1  ;;  %v3772_v62 = vsel %vm3770_vm7, 1, %v13875_v44 }
 0x49f   :  { %v10622_v46 = vmul.f32 -1.442695, %v3744_v32 }
 0x4a1   :  { %13766 = vpow2.f32 %v10622_v46 }
 0x4a2   :  { %13768 = vtanh.f32 %v3744_v32 }
 0x4ab   :  { %v13767_v1 = vpop.eup %13766 }
 0x4ac   :  { %v3749_v55 = vadd.f32 1.0, %v13767_v1  ;;  %v13769_v56 = vpop.eup %13768 }
 0x4ae   :  { %13770 = vrcp.f32 %v3749_v55 }
 0x4b8   :  { %v13771_v42 = vpop.eup %13770 }
 0x4b9   :  { %v3752_v13 = vsel %vm1689_vm2, %v13769_v56, %v13771_v42 }
 0x4ba   :  { %3755 = vrot.lane.b32.xlu0 %v3752_v13, %s13876_s4  ;;  %v3753_v28 = vmul.f32 %v3752_v13, %v14648_v63 }
 0x4cb   :  { %v3240_v50 = vpop.permute.xlu1 %3239 }
 0x4cc   :  { %v3242_v15 = vmul.f32 %v3240_v50, %v3236_v35 }
 0x4ce   :  { %3244 = vrot.lane.b32.xlu1 %v3242_v15, %s13876_s4 }
 0x4d2   :  { %3774 = vperm.xlu1 %13743, %v3772_v62  }
 0x52c   :  { %v3756_v16 = vpop.permute.xlu0 %3755 }
 0x52d   :  { %v3758_v52 = vmul.f32 %v3756_v16, %v3752_v13 }
 0x52f   :  { %3760 = vrot.lane.b32.xlu0 %v3758_v52, %s13876_s4 }
 0x533   :  { %3781 = vperm.xlu0 %13742, %v3779_v53  }
 0x540   :  { %v3245_v31 = vpop.permute.xlu1 %3244 }
 0x541   :  { %v14641_v17 = vadd.f32 %v3245_v31, %v3237_v11 }
 0x543   :  { %13772 = vtanh.f32 %v14641_v17 }
 0x54d   :  { %v13773_v41 = vpop.eup %13772 }
 0x54e   :  { %3250 = vrot.lane.b32.xlu1 %v13773_v41, %s13876_s4 }
 0x551   :  { %v14655_v38 = vpop.permute.xlu1 %3774 }
 0x552   :  { %vm3776_vm9 = vcmp.eq.s32.totalorder %v14655_v38, 1 }
 0x5a1   :  { %v3761_v60 = vpop.permute.xlu0 %3760 }
 0x5a2   :  { %v14651_v18 = vadd.f32 %v3761_v60, %v3753_v28 }
 0x5a4   :  { %13774 = vtanh.f32 %v14651_v18 }
 0x5ae   :  { %v13775_v25 = vpop.eup %13774 }
 0x5af   :  { %3766 = vrot.lane.b32.xlu0 %v13775_v25, %s13876_s4 }
 0x5b2   :  { %v14665_v46 = vpop.permute.xlu0 %3781 }
 0x5b3   :  { %vm3783_vm10 = vcmp.eq.s32.totalorder %v14665_v46, 1  ;;  %v10056_v46 = vld [vmem:[%s15523_s8] sm:$0xff] }
 0x5c0   :  { %v3251_v32 = vpop.permute.xlu1 %3250 }
 0x5c1   :  { %v3253_v43 = vmul.f32 %v3251_v32, %v3236_v35 }
 0x5c3   :  { %v14661_v54 = vsel %vm3776_vm9, %v3253_v43, %v14536_v30 }
 0x5c4   :  { %3791 = vrot.lane.b32.xlu1 %v14661_v54, %s13877_s1 }
 0x621   :  { %v3767_v1 = vpop.permute.xlu0 %3766 }
 0x622   :  { %v3769_v55 = vmul.f32 %v3767_v1, %v3752_v13 }
 0x624   :  { %v14671_v35 = vsel %vm3783_vm10, %v3769_v55, %v14543_v37 }
 0x625   :  { %4307 = vrot.lane.b32.xlu0 %v14671_v35, %s13877_s1 }
 0x636   :  { %v3792_v56 = vpop.permute.xlu1 %3791 }
 0x637   :  { %v3793_v30 = vsel %vm54_vm0, %v3792_v56, 0 }
 0x638   :  { %v3864_v42 = vand.u32 4294901760, %v3793_v30 }
 0x63a   :  { %v3865_v50 = vsub.f32 %v3793_v30, %v3864_v42 }
 0x63c   :  { %v3866_v15 = vand.u32 4294901760, %v3865_v50 }
 0x63e   :  { %v3867_v62 = vsub.f32 %v3865_v50, %v3866_v15 }
 0x640   :  { %v3868_v16 = vand.u32 4294901760, %v3867_v62 }
 0x642   :  { %11827 = vmatmul.mubr.f32.vlgmr.msra.gmra.mrb[12].mxu0 %v3868_v16 }
 0x643   :  { %12972 = vmatpush3.bf16.msra.mxu0 %v14248_v20  ;;  %11837 = vmatprep.mubr.msk.f32.mxu0 %vm13873_vm1, %v13874_v57 }
 0x644   :  { %12973 = vmatprep.subr.bf16.mxu0 %v13872_v59 }
 0x647   :  { %12975 = vmatpush3.bf16.msra.mxu0 %v14254_v0 }
 0x648   :  { %12976 = vmatprep.subr.bf16.mxu0 %v13872_v59 }
 0x64a   :  { %11838 = vmatmul.mubr.f32.vlgmr.msra.gmra.mrb[12].mxu0 %v3864_v42 }
 0x64b   :  { %12978 = vmatpush3.bf16.msra.mxu0 %v14266_v49  ;;  %11848 = vmatprep.mubr.msk.f32.mxu0 %vm13873_vm1, %v13874_v57 }
 0x64c   :  { %12979 = vmatprep.subr.bf16.mxu0 %v13872_v59 }
 0x64f   :  { %12981 = vmatpush3.bf16.msra.mxu0 %v14275_v58 }
 0x650   :  { %12982 = vmatprep.subr.bf16.mxu0 %v13872_v59 }
 0x652   :  { %11849 = vmatmul.mubr.f32.vlgmr.msra.gmra.mrb[12].mxu0 %v3865_v50 }
 0x653   :  { %12984 = vmatpush3.bf16.msra.mxu0 %v14189_v23  ;;  %11859 = vmatprep.mubr.msk.f32.mxu0 %vm13873_vm1, %v13874_v57 }
 0x654   :  { %12985 = vmatprep.subr.bf16.mxu0 %v13872_v59 }
 0x657   :  { %12987 = vmatpush3.bf16.msra.mxu0 %v14208_v14 }
 0x658   :  { %12988 = vmatprep.subr.bf16.mxu0 %v13872_v59 }
 0x65a   :  { %11860 = vmatmul.mubr.f32.vlgmr.msra.gmra.mrb[12].mxu0 %v3866_v15 }
 0x65b   :  { %12990 = vmatpush3.bf16.msra.mxu0 %v14300_v6  ;;  %11870 = vmatprep.mubr.msk.f32.mxu0 %vm13873_vm1, %v13874_v57 }
 0x65c   :  { %12991 = vmatprep.subr.bf16.mxu0 %v13872_v59 }
 0x65f   :  { %12993 = vmatpush3.bf16.msra.mxu0 %v14312_v12 }
 0x660   :  { %12994 = vmatprep.subr.bf16.mxu0 %v13872_v59 }
 0x662   :  { %11871 = vmatmul.mubr.f32.vlgmr.msra.gmra.mrb[12].mxu0 %v3864_v42 }
 0x663   :  { %12996 = vmatpush3.bf16.msra.mxu0 %v14189_v23  ;;  %11881 = vmatprep.mubr.msk.f32.mxu0 %vm13873_vm1, %v13874_v57 }
 0x664   :  { %12997 = vmatprep.subr.bf16.mxu0 %v13872_v59 }
 0x667   :  { %12999 = vmatpush3.bf16.msra.mxu0 %v14208_v14 }
 0x668   :  { %13036 = vmatprep.subr.bf16.mxu0 %v13872_v59 }
 0x66a   :  { %11882 = vmatmul.mubr.f32.vlgmr.msra.gmra.mrb[12].mxu0 %v3864_v42 }
 0x66b   :  { %13038 = vmatpush3.bf16.msra.mxu0 %v14189_v23  ;;  %11958 = vmatprep.mubr.msk.f32.mxu0 %vm13873_vm1, %v13874_v57 }
 0x66c   :  { %13039 = vmatprep.subr.bf16.mxu0 %v13872_v59 }
 0x66f   :  { %13041 = vmatpush3.bf16.msra.mxu0 %v14208_v14 }
 0x670   :  { %13042 = vmatprep.subr.bf16.mxu0 %v13872_v59 }
 0x697   :  { %v4308_v37 = vpop.permute.xlu0 %4307 }
 0x698   :  { %v4309_v13 = vsel %vm54_vm0, %v4308_v37, 0 }
 0x699   :  { %v4380_v52 = vand.u32 4294901760, %v4309_v13 }
 0x69b   :  { %v4381_v53 = vsub.f32 %v4309_v13, %v4380_v52 }
 0x69d   :  { %v4382_v11 = vand.u32 4294901760, %v4381_v53 }
 0x69f   :  { %v4383_v31 = vsub.f32 %v4381_v53, %v4382_v11 }
 0x6a1   :  { %v4384_v41 = vand.u32 4294901760, %v4383_v31 }
 0x6a3   :  { %11893 = vmatmul.mubr.f32.vlgmr.msra.gmra.mrb[20].mxu1 %v4384_v41 }
 0x6a4   :  { %13008 = vmatpush3.bf16.msra.mxu1 %v14405_v29  ;;  %11903 = vmatprep.mubr.msk.f32.mxu1 %vm13873_vm1, %v13874_v57 }
 0x6a5   :  { %13009 = vmatprep.subr.bf16.mxu1 %v13872_v59 }
 0x6a8   :  { %13011 = vmatpush3.bf16.msra.mxu1 %v14409_v39 }
 0x6a9   :  { %13012 = vmatprep.subr.bf16.mxu1 %v13872_v59 }
 0x6ab   :  { %11904 = vmatmul.mubr.f32.vlgmr.msra.gmra.mrb[20].mxu1 %v4380_v52 }
 0x6ac   :  { %13014 = vmatpush3.bf16.msra.mxu1 %v14415_v4  ;;  %11914 = vmatprep.mubr.msk.f32.mxu1 %vm13873_vm1, %v13874_v57 }
 0x6ad   :  { %13015 = vmatprep.subr.bf16.mxu1 %v13872_v59 }
 0x6b0   :  { %13017 = vmatpush3.bf16.msra.mxu1 %v14420_v7 }
 0x6b1   :  { %13018 = vmatprep.subr.bf16.mxu1 %v13872_v59 }
 0x6b3   :  { %11915 = vmatmul.mubr.f32.vlgmr.msra.gmra.mrb[20].mxu1 %v4381_v53 }
 0x6b4   :  { %13020 = vmatpush3.bf16.msra.mxu1 %v14388_v10  ;;  %11925 = vmatprep.mubr.msk.f32.mxu1 %vm13873_vm1, %v13874_v57 }
 0x6b5   :  { %13021 = vmatprep.subr.bf16.mxu1 %v13872_v59 }
 0x6b8   :  { %13023 = vmatpush3.bf16.msra.mxu1 %v14391_v22 }
 0x6b9   :  { %13024 = vmatprep.subr.bf16.mxu1 %v13872_v59 }
 0x6bb   :  { %11926 = vmatmul.mubr.f32.vlgmr.msra.gmra.mrb[20].mxu1 %v4382_v11 }
 0x6bc   :  { %13026 = vmatpush3.bf16.msra.mxu1 %v14433_v36  ;;  %11936 = vmatprep.mubr.msk.f32.mxu1 %vm13873_vm1, %v13874_v57 }
 0x6bd   :  { %13027 = vmatprep.subr.bf16.mxu1 %v13872_v59 }
 0x6c0   :  { %13029 = vmatpush3.bf16.msra.mxu1 %v14438_v40 }
 0x6c1   :  { %13030 = vmatprep.subr.bf16.mxu1 %v13872_v59 }
 0x6c3   :  { %11937 = vmatmul.mubr.f32.vlgmr.msra.gmra.mrb[20].mxu1 %v4380_v52 }
 0x6c4   :  { %13032 = vmatpush3.bf16.msra.mxu1 %v14388_v10  ;;  %11947 = vmatprep.mubr.msk.f32.mxu1 %vm13873_vm1, %v13874_v57 }
 0x6c5   :  { %13033 = vmatprep.subr.bf16.mxu1 %v13872_v59 }
 0x6c8   :  { %13035 = vmatpush3.bf16.msra.mxu1 %v14391_v22 }
 0x6c9   :  { %13072 = vmatprep.subr.bf16.mxu1 %v13872_v59 }
 0x6cb   :  { %11948 = vmatmul.mubr.f32.vlgmr.msra.gmra.mrb[20].mxu1 %v4380_v52 }
 0x6cc   :  { %13074 = vmatpush3.bf16.msra.mxu1 %v14388_v10  ;;  %12024 = vmatprep.mubr.msk.f32.mxu1 %vm13873_vm1, %v13874_v57 }
 0x6cd   :  { %13075 = vmatprep.subr.bf16.mxu1 %v13872_v59 }
 0x6d0   :  { %13077 = vmatpush3.bf16.msra.mxu1 %v14391_v22 }
 0x6d1   :  { %13078 = vmatprep.subr.bf16.mxu1 %v13872_v59 }
 0x73d   :  { %v4276_v28 = vpop.f32.mrb[12].mxu0 }
 0x73e   :  { %v4280_v60 = vadd.f32 %v14466_v24, %v4276_v28  ;;  %v11883_v25 = vpop.f32.mrb[13].mxu0  ;;  %v4831_v28 = vsel %vm4823_vm12, 1, %v13875_v44 }
 0x740   :  { %v10623_v32 = vmul.f32 -1.442695, %v4280_v60 }
 0x742   :  { %13776 = vpow2.f32 %v10623_v32 }
 0x743   :  { %13778 = vtanh.f32 %v4280_v60  ;;  %v14767_v60 = vsel %vm3776_vm9, %v14641_v17, %v14638_v27 }
 0x74c   :  { %v13777_v43 = vpop.eup %13776 }
 0x74d   :  { %v4285_v1 = vadd.f32 1.0, %v13777_v43  ;;  %v13779_v55 = vpop.eup %13778 }
 0x74f   :  { %13780 = vrcp.f32 %v4285_v1 }
 0x759   :  { %v13781_v56 = vpop.eup %13780 }
 0x75a   :  { %v4288_v30 = vsel %vm1689_vm2, %v13779_v55, %v13781_v56  ;;  %v14778_v55 = vsel %vm3783_vm10, %v14651_v18, %v14648_v63 }
 0x75b   :  { %4291 = vrot.lane.b32.xlu1 %v4288_v30, %s13876_s4  ;;  %v4289_v25 = vmul.f32 %v4288_v30, %v14767_v60 }
 0x79e   :  { %v4792_v42 = vpop.f32.mrb[20].mxu1 }
 0x79f   :  { %v4796_v50 = vadd.f32 %v14498_v5, %v4792_v42  ;;  %v11949_v15 = vpop.f32.mrb[21].mxu1  ;;  %v4824_v5 = vsel %vm4822_vm11, 1, %v13875_v44 }
 0x7a1   :  { %v10624_v62 = vmul.f32 -1.442695, %v4796_v50 }
 0x7a3   :  { %13782 = vpow2.f32 %v10624_v62 }
 0x7a4   :  { %13784 = vtanh.f32 %v4796_v50 }
 0x7ad   :  { %v13783_v24 = vpop.eup %13782 }
 0x7ae   :  { %v4801_v16 = vadd.f32 1.0, %v13783_v24  ;;  %v13785_v37 = vpop.eup %13784 }
 0x7b0   :  { %13786 = vrcp.f32 %v4801_v16 }
 0x7ba   :  { %v13787_v13 = vpop.eup %13786 }
 0x7bb   :  { %v4804_v52 = vsel %vm1689_vm2, %v13785_v37, %v13787_v13 }
 0x7bc   :  { %4807 = vrot.lane.b32.xlu0 %v4804_v52, %s13876_s4  ;;  %v4805_v56 = vmul.f32 %v4804_v52, %v14778_v55 }
 0x7cd   :  { %v4292_v53 = vpop.permute.xlu1 %4291 }
 0x7ce   :  { %v4294_v11 = vmul.f32 %v4292_v53, %v4288_v30 }
 0x7d0   :  { %4296 = vrot.lane.b32.xlu1 %v4294_v11, %s13876_s4 }
 0x7d4   :  { %4826 = vperm.xlu1 %13743, %v4824_v5  }
 0x82e   :  { %v4808_v31 = vpop.permute.xlu0 %4807 }
 0x82f   :  { %v4810_v41 = vmul.f32 %v4808_v31, %v4804_v52 }
 0x831   :  { %4812 = vrot.lane.b32.xlu0 %v4810_v41, %s13876_s4 }
 0x835   :  { %4833 = vperm.xlu0 %13742, %v4831_v28  }
 0x842   :  { %v4297_v32 = vpop.permute.xlu1 %4296 }
 0x843   :  { %v14770_v43 = vadd.f32 %v4297_v32, %v4289_v25 }
 0x845   :  { %13788 = vtanh.f32 %v14770_v43 }
 0x84f   :  { %v13789_v1 = vpop.eup %13788 }
 0x850   :  { %4302 = vrot.lane.b32.xlu1 %v13789_v1, %s13876_s4 }
 0x853   :  { %v14785_v50 = vpop.permute.xlu1 %4826 }
 0x854   :  { %vm4828_vm13 = vcmp.eq.s32.totalorder %v14785_v50, 1 }
 0x8a3   :  { %v4813_v27 = vpop.permute.xlu0 %4812 }
 0x8a4   :  { %v14781_v17 = vadd.f32 %v4813_v27, %v4805_v56 }
 0x8a6   :  { %13790 = vtanh.f32 %v14781_v17 }
 0x8b0   :  { %v13791_v42 = vpop.eup %13790 }
 0x8b1   :  { %4818 = vrot.lane.b32.xlu0 %v13791_v42, %s13876_s4 }
 0x8b4   :  { %v14795_v18 = vpop.permute.xlu0 %4833 }
 0x8b5   :  { %vm4835_vm14 = vcmp.eq.s32.totalorder %v14795_v18, 1 }
 0x8c2   :  { %v4303_v15 = vpop.permute.xlu1 %4302 }
 0x8c3   :  { %v4305_v62 = vmul.f32 %v4303_v15, %v4288_v30 }
 0x8c5   :  { %v14791_v63 = vsel %vm4828_vm13, %v4305_v62, %v14661_v54 }
 0x8c6   :  { %4843 = vrot.lane.b32.xlu1 %v14791_v63, %s13877_s1 }
 0x923   :  { %v4819_v24 = vpop.permute.xlu0 %4818 }
 0x924   :  { %v4821_v16 = vmul.f32 %v4819_v24, %v4804_v52 }
 0x926   :  { %v14801_v30 = vsel %vm4835_vm14, %v4821_v16, %v14671_v35 }
 0x927   :  { %5359 = vrot.lane.b32.xlu0 %v14801_v30, %s13877_s1 }
 0x938   :  { %v4844_v37 = vpop.permute.xlu1 %4843 }
 0x939   :  { %v4845_v54 = vsel %vm54_vm0, %v4844_v37, 0 }
 0x93a   :  { %v4916_v13 = vand.u32 4294901760, %v4845_v54 }
 0x93c   :  { %v4917_v53 = vsub.f32 %v4845_v54, %v4916_v13 }
 0x93e   :  { %v4918_v11 = vand.u32 4294901760, %v4917_v53 }
 0x940   :  { %v4919_v5 = vsub.f32 %v4917_v53, %v4918_v11 }
 0x942   :  { %v4920_v31 = vand.u32 4294901760, %v4919_v5 }
 0x944   :  { %11959 = vmatmul.mubr.f32.vlgmr.msra.gmra.mrb[14].mxu0 %v4920_v31 }
 0x945   :  { %13044 = vmatpush3.bf16.msra.mxu0 %v14248_v20  ;;  %11969 = vmatprep.mubr.msk.f32.mxu0 %vm13873_vm1, %v13874_v57 }
 0x946   :  { %13045 = vmatprep.subr.bf16.mxu0 %v13872_v59 }
 0x949   :  { %13047 = vmatpush3.bf16.msra.mxu0 %v14254_v0 }
 0x94a   :  { %13048 = vmatprep.subr.bf16.mxu0 %v13872_v59 }
 0x94c   :  { %11970 = vmatmul.mubr.f32.vlgmr.msra.gmra.mrb[14].mxu0 %v4916_v13 }
 0x94d   :  { %13050 = vmatpush3.bf16.msra.mxu0 %v14266_v49  ;;  %11980 = vmatprep.mubr.msk.f32.mxu0 %vm13873_vm1, %v13874_v57 }
 0x94e   :  { %13051 = vmatprep.subr.bf16.mxu0 %v13872_v59 }
 0x951   :  { %13053 = vmatpush3.bf16.msra.mxu0 %v14275_v58 }
 0x952   :  { %13054 = vmatprep.subr.bf16.mxu0 %v13872_v59 }
 0x954   :  { %11981 = vmatmul.mubr.f32.vlgmr.msra.gmra.mrb[14].mxu0 %v4917_v53 }
 0x955   :  { %13056 = vmatpush3.bf16.msra.mxu0 %v14189_v23  ;;  %11991 = vmatprep.mubr.msk.f32.mxu0 %vm13873_vm1, %v13874_v57 }
 0x956   :  { %13057 = vmatprep.subr.bf16.mxu0 %v13872_v59 }
 0x959   :  { %13059 = vmatpush3.bf16.msra.mxu0 %v14208_v14 }
 0x95a   :  { %13060 = vmatprep.subr.bf16.mxu0 %v13872_v59 }
 0x95c   :  { %11992 = vmatmul.mubr.f32.vlgmr.msra.gmra.mrb[14].mxu0 %v4918_v11 }
 0x95d   :  { %13062 = vmatpush3.bf16.msra.mxu0 %v14300_v6  ;;  %12002 = vmatprep.mubr.msk.f32.mxu0 %vm13873_vm1, %v13874_v57 }
 0x95e   :  { %13063 = vmatprep.subr.bf16.mxu0 %v13872_v59 }
 0x961   :  { %13065 = vmatpush3.bf16.msra.mxu0 %v14312_v12 }
 0x962   :  { %13066 = vmatprep.subr.bf16.mxu0 %v13872_v59 }
 0x964   :  { %12003 = vmatmul.mubr.f32.vlgmr.msra.gmra.mrb[14].mxu0 %v4916_v13 }
 0x965   :  { %13068 = vmatpush3.bf16.msra.mxu0 %v14189_v23  ;;  %12013 = vmatprep.mubr.msk.f32.mxu0 %vm13873_vm1, %v13874_v57 }
 0x966   :  { %13069 = vmatprep.subr.bf16.mxu0 %v13872_v59 }
 0x969   :  { %13071 = vmatpush3.bf16.msra.mxu0 %v14208_v14 }
 0x96a   :  { %13108 = vmatprep.subr.bf16.mxu0 %v13872_v59 }
 0x96c   :  { %12014 = vmatmul.mubr.f32.vlgmr.msra.gmra.mrb[14].mxu0 %v4916_v13 }
 0x96d   :  { %13110 = vmatpush3.bf16.msra.mxu0 %v14189_v23  ;;  %12090 = vmatprep.mubr.msk.f32.mxu0 %vm13873_vm1, %v13874_v57 }
 0x96e   :  { %13111 = vmatprep.subr.bf16.mxu0 %v13872_v59 }
 0x971   :  { %13113 = vmatpush3.bf16.msra.mxu0 %v14208_v14 }
 0x972   :  { %13114 = vmatprep.subr.bf16.mxu0 %v13872_v59 }
 0x999   :  { %v5360_v35 = vpop.permute.xlu0 %5359 }
 0x99a   :  { %v5361_v52 = vsel %vm54_vm0, %v5360_v35, 0 }
 0x99b   :  { %v5432_v41 = vand.u32 4294901760, %v5361_v52 }
 0x99d   :  { %v5433_v28 = vsub.f32 %v5361_v52, %v5432_v41 }
 0x99f   :  { %v5434_v25 = vand.u32 4294901760, %v5433_v28 }
 0x9a1   :  { %v5435_v32 = vsub.f32 %v5433_v28, %v5434_v25 }
 0x9a3   :  { %v5436_v1 = vand.u32 4294901760, %v5435_v32 }
 0x9a5   :  { %12025 = vmatmul.mubr.f32.vlgmr.msra.gmra.mrb[22].mxu1 %v5436_v1 }
 0x9a6   :  { %13080 = vmatpush3.bf16.msra.mxu1 %v14405_v29  ;;  %12035 = vmatprep.mubr.msk.f32.mxu1 %vm13873_vm1, %v13874_v57 }
 0x9a7   :  { %13081 = vmatprep.subr.bf16.mxu1 %v13872_v59 }
 0x9aa   :  { %13083 = vmatpush3.bf16.msra.mxu1 %v14409_v39 }
 0x9ab   :  { %13084 = vmatprep.subr.bf16.mxu1 %v13872_v59 }
 0x9ad   :  { %12036 = vmatmul.mubr.f32.vlgmr.msra.gmra.mrb[22].mxu1 %v5432_v41 }
 0x9ae   :  { %13086 = vmatpush3.bf16.msra.mxu1 %v14415_v4  ;;  %12046 = vmatprep.mubr.msk.f32.mxu1 %vm13873_vm1, %v13874_v57 }
 0x9af   :  { %13087 = vmatprep.subr.bf16.mxu1 %v13872_v59 }
 0x9b2   :  { %13089 = vmatpush3.bf16.msra.mxu1 %v14420_v7 }
 0x9b3   :  { %13090 = vmatprep.subr.bf16.mxu1 %v13872_v59 }
 0x9b5   :  { %12047 = vmatmul.mubr.f32.vlgmr.msra.gmra.mrb[22].mxu1 %v5433_v28 }
 0x9b6   :  { %13092 = vmatpush3.bf16.msra.mxu1 %v14388_v10  ;;  %12057 = vmatprep.mubr.msk.f32.mxu1 %vm13873_vm1, %v13874_v57 }
 0x9b7   :  { %13093 = vmatprep.subr.bf16.mxu1 %v13872_v59 }
 0x9ba   :  { %13095 = vmatpush3.bf16.msra.mxu1 %v14391_v22 }
 0x9bb   :  { %13096 = vmatprep.subr.bf16.mxu1 %v13872_v59 }
 0x9bd   :  { %12058 = vmatmul.mubr.f32.vlgmr.msra.gmra.mrb[22].mxu1 %v5434_v25 }
 0x9be   :  { %13098 = vmatpush3.bf16.msra.mxu1 %v14433_v36  ;;  %12068 = vmatprep.mubr.msk.f32.mxu1 %vm13873_vm1, %v13874_v57 }
 0x9bf   :  { %13099 = vmatprep.subr.bf16.mxu1 %v13872_v59 }
 0x9c2   :  { %13101 = vmatpush3.bf16.msra.mxu1 %v14438_v40 }
 0x9c3   :  { %13102 = vmatprep.subr.bf16.mxu1 %v13872_v59 }
 0x9c5   :  { %12069 = vmatmul.mubr.f32.vlgmr.msra.gmra.mrb[22].mxu1 %v5432_v41 }
 0x9c6   :  { %13104 = vmatpush3.bf16.msra.mxu1 %v14388_v10  ;;  %12079 = vmatprep.mubr.msk.f32.mxu1 %vm13873_vm1, %v13874_v57 }
 0x9c7   :  { %13105 = vmatprep.subr.bf16.mxu1 %v13872_v59 }
 0x9ca   :  { %13107 = vmatpush3.bf16.msra.mxu1 %v14391_v22 }
 0x9cb   :  { %13144 = vmatprep.subr.bf16.mxu1 %v13872_v59 }
 0x9cd   :  { %12080 = vmatmul.mubr.f32.vlgmr.msra.gmra.mrb[22].mxu1 %v5432_v41 }
 0x9ce   :  { %13146 = vmatpush3.bf16.msra.mxu1 %v14388_v10  ;;  %12156 = vmatprep.mubr.msk.f32.mxu1 %vm13873_vm1, %v13874_v57 }
 0x9cf   :  { %13147 = vmatprep.subr.bf16.mxu1 %v13872_v59 }
 0x9d2   :  { %13149 = vmatpush3.bf16.msra.mxu1 %v14391_v22 }
 0x9d3   :  { %13150 = vmatprep.subr.bf16.mxu1 %v13872_v59 }
 0xa3f   :  { %v5328_v56 = vpop.f32.mrb[14].mxu0 }
 0xa40   :  { %v5332_v27 = vadd.f32 %v14464_v48, %v5328_v56  ;;  %v12015_v42 = vpop.f32.mrb[15].mxu0  ;;  %v5883_v56 = vsel %vm5875_vm3, 1, %v13875_v44 }
 0xa42   :  { %v10625_v15 = vmul.f32 -1.442695, %v5332_v27 }
 0xa44   :  { %13792 = vpow2.f32 %v10625_v15 }
 0xa45   :  { %13794 = vtanh.f32 %v5332_v27  ;;  %v14897_v27 = vsel %vm4828_vm13, %v14770_v43, %v14767_v60 }
 0xa4e   :  { %v13793_v62 = vpop.eup %13792 }
 0xa4f   :  { %v5337_v24 = vadd.f32 1.0, %v13793_v62  ;;  %v13795_v16 = vpop.eup %13794 }
 0xa51   :  { %13796 = vrcp.f32 %v5337_v24 }
 0xa5b   :  { %v13797_v37 = vpop.eup %13796 }
 0xa5c   :  { %v5340_v54 = vsel %vm1689_vm2, %v13795_v16, %v13797_v37 }
 0xa5d   :  { %5343 = vrot.lane.b32.xlu1 %v5340_v54, %s13876_s4  ;;  %v5341_v42 = vmul.f32 %v5340_v54, %v14897_v27 }
 0xaa0   :  { %v5844_v13 = vpop.f32.mrb[22].mxu1 }
 0xaa1   :  { %v5848_v53 = vadd.f32 %v14500_v26, %v5844_v13  ;;  %v12081_v11 = vpop.f32.mrb[23].mxu1  ;;  %v5876_v26 = vsel %vm5874_vm15, 1, %v13875_v44  ;;  %v14908_v44 = vsel %vm4835_vm14, %v14781_v17, %v14778_v55 }
 0xaa3   :  { %v10626_v5 = vmul.f32 -1.442695, %v5848_v53 }
 0xaa5   :  { %13798 = vpow2.f32 %v10626_v5 }
 0xaa6   :  { %13800 = vtanh.f32 %v5848_v53 }
 0xaaf   :  { %v13799_v48 = vpop.eup %13798 }
 0xab0   :  { %v5853_v31 = vadd.f32 1.0, %v13799_v48  ;;  %v13801_v35 = vpop.eup %13800 }
 0xab2   :  { %13802 = vrcp.f32 %v5853_v31 }
 0xabc   :  { %v13803_v52 = vpop.eup %13802 }
 0xabd   :  { %v5856_v41 = vsel %vm1689_vm2, %v13801_v35, %v13803_v52 }
 0xabe   :  { %5859 = vrot.lane.b32.xlu0 %v5856_v41, %s13876_s4  ;;  %v5857_v47 = vmul.f32 %v5856_v41, %v14908_v44 }
 0xacf   :  { %v5344_v28 = vpop.permute.xlu1 %5343 }
 0xad0   :  { %v5346_v25 = vmul.f32 %v5344_v28, %v5340_v54 }
 0xad2   :  { %5348 = vrot.lane.b32.xlu1 %v5346_v25, %s13876_s4 }
 0xad6   :  { %5878 = vperm.xlu1 %13743, %v5876_v26  }
 0xb30   :  { %v5860_v32 = vpop.permute.xlu0 %5859 }
 0xb31   :  { %v5862_v1 = vmul.f32 %v5860_v32, %v5856_v41 }
 0xb33   :  { %5864 = vrot.lane.b32.xlu0 %v5862_v1, %s13876_s4 }
 0xb37   :  { %5885 = vperm.xlu0 %13742, %v5883_v56  }
 0xb44   :  { %v5349_v15 = vpop.permute.xlu1 %5348 }
 0xb45   :  { %v14900_v62 = vadd.f32 %v5349_v15, %v5341_v42 }
 0xb47   :  { %13804 = vtanh.f32 %v14900_v62 }
 0xb51   :  { %v13805_v24 = vpop.eup %13804 }
 0xb52   :  { %5354 = vrot.lane.b32.xlu1 %v13805_v24, %s13876_s4 }
 0xb55   :  { %v14915_v37 = vpop.permute.xlu1 %5878 }
 0xb56   :  { %vm5880_vm4 = vcmp.eq.s32.totalorder %v14915_v37, 1 }
 0xba5   :  { %v5865_v60 = vpop.permute.xlu0 %5864 }
 0xba6   :  { %v14911_v43 = vadd.f32 %v5865_v60, %v5857_v47 }
 0xba8   :  { %13806 = vtanh.f32 %v14911_v43 }
 0xbb2   :  { %v13807_v16 = vpop.eup %13806 }
 0xbb3   :  { %5870 = vrot.lane.b32.xlu0 %v13807_v16, %s13876_s4 }
 0xbb6   :  { %v14925_v17 = vpop.permute.xlu0 %5885 }
 0xbb7   :  { %vm5887_vm7 = vcmp.eq.s32.totalorder %v14925_v17, 1 }
 0xbc4   :  { %v5355_v13 = vpop.permute.xlu1 %5354 }
 0xbc5   :  { %v5357_v53 = vmul.f32 %v5355_v13, %v5340_v54 }
 0xbc7   :  { %v14921_v55 = vsel %vm5880_vm4, %v5357_v53, %v14791_v63 }
 0xbc8   :  { %5895 = vrot.lane.b32.xlu1 %v14921_v55, %s13877_s1 }
 0xc25   :  { %v5871_v11 = vpop.permute.xlu0 %5870 }
 0xc26   :  { %v5873_v5 = vmul.f32 %v5871_v11, %v5856_v41 }
 0xc28   :  { %v14931_v54 = vsel %vm5887_vm7, %v5873_v5, %v14801_v30 }
 0xc29   :  { %6411 = vrot.lane.b32.xlu0 %v14931_v54, %s13877_s1 }
 0xc3a   :  { %v5896_v48 = vpop.permute.xlu1 %5895 }
 0xc3b   :  { %v5897_v63 = vsel %vm54_vm0, %v5896_v48, 0 }
 0xc3c   :  { %v5968_v31 = vand.u32 4294901760, %v5897_v63 }
 0xc3e   :  { %v5969_v35 = vsub.f32 %v5897_v63, %v5968_v31 }
 0xc40   :  { %v5970_v52 = vand.u32 4294901760, %v5969_v35 }
 0xc42   :  { %v5971_v28 = vsub.f32 %v5969_v35, %v5970_v52 }
 0xc44   :  { %v5972_v25 = vand.u32 4294901760, %v5971_v28 }
 0xc46   :  { %12091 = vmatmul.mubr.f32.vlgmr.msra.gmra.mrb[16].mxu0 %v5972_v25 }
 0xc47   :  { %13116 = vmatpush3.bf16.msra.mxu0 %v14248_v20  ;;  %12101 = vmatprep.mubr.msk.f32.mxu0 %vm13873_vm1, %v13874_v57 }
 0xc48   :  { %13117 = vmatprep.subr.bf16.mxu0 %v13872_v59 }
 0xc4b   :  { %13119 = vmatpush3.bf16.msra.mxu0 %v14254_v0 }
 0xc4c   :  { %13120 = vmatprep.subr.bf16.mxu0 %v13872_v59 }
 0xc4e   :  { %12102 = vmatmul.mubr.f32.vlgmr.msra.gmra.mrb[16].mxu0 %v5968_v31 }
 0xc4f   :  { %13122 = vmatpush3.bf16.msra.mxu0 %v14266_v49  ;;  %12112 = vmatprep.mubr.msk.f32.mxu0 %vm13873_vm1, %v13874_v57 }
 0xc50   :  { %13123 = vmatprep.subr.bf16.mxu0 %v13872_v59 }
 0xc53   :  { %13125 = vmatpush3.bf16.msra.mxu0 %v14275_v58 }
 0xc54   :  { %13126 = vmatprep.subr.bf16.mxu0 %v13872_v59 }
 0xc56   :  { %12113 = vmatmul.mubr.f32.vlgmr.msra.gmra.mrb[16].mxu0 %v5969_v35 }
 0xc57   :  { %13128 = vmatpush3.bf16.msra.mxu0 %v14189_v23  ;;  %12123 = vmatprep.mubr.msk.f32.mxu0 %vm13873_vm1, %v13874_v57 }
 0xc58   :  { %13129 = vmatprep.subr.bf16.mxu0 %v13872_v59 }
 0xc5b   :  { %13131 = vmatpush3.bf16.msra.mxu0 %v14208_v14 }
 0xc5c   :  { %13132 = vmatprep.subr.bf16.mxu0 %v13872_v59 }
 0xc5e   :  { %12124 = vmatmul.mubr.f32.vlgmr.msra.gmra.mrb[16].mxu0 %v5970_v52 }
 0xc5f   :  { %13134 = vmatpush3.bf16.msra.mxu0 %v14300_v6  ;;  %12134 = vmatprep.mubr.msk.f32.mxu0 %vm13873_vm1, %v13874_v57 }
 0xc60   :  { %13135 = vmatprep.subr.bf16.mxu0 %v13872_v59 }
 0xc63   :  { %13137 = vmatpush3.bf16.msra.mxu0 %v14312_v12 }
 0xc64   :  { %13138 = vmatprep.subr.bf16.mxu0 %v13872_v59 }
 0xc66   :  { %12135 = vmatmul.mubr.f32.vlgmr.msra.gmra.mrb[16].mxu0 %v5968_v31 }
 0xc67   :  { %13140 = vmatpush3.bf16.msra.mxu0 %v14189_v23  ;;  %12145 = vmatprep.mubr.msk.f32.mxu0 %vm13873_vm1, %v13874_v57 }
 0xc68   :  { %13141 = vmatprep.subr.bf16.mxu0 %v13872_v59 }
 0xc6b   :  { %13143 = vmatpush3.bf16.msra.mxu0 %v14208_v14 }
 0xc6c   :  { %13180 = vmatprep.subr.bf16.mxu0 %v13872_v59 }
 0xc6e   :  { %12146 = vmatmul.mubr.f32.vlgmr.msra.gmra.mrb[16].mxu0 %v5968_v31 }
 0xc6f   :  { %13182 = vmatpush3.bf16.msra.mxu0 %v14189_v23  ;;  %12222 = vmatprep.mubr.msk.f32.mxu0 %vm13873_vm1, %v13874_v57 }
 0xc70   :  { %13183 = vmatprep.subr.bf16.mxu0 %v13872_v59 }
 0xc73   :  { %13185 = vmatpush3.bf16.msra.mxu0 %v14208_v14 }
 0xc74   :  { %13186 = vmatprep.subr.bf16.mxu0 %v13872_v59 }
 0xc9b   :  { %v6412_v30 = vpop.permute.xlu0 %6411 }
 0xc9c   :  { %v6413_v41 = vsel %vm54_vm0, %v6412_v30, 0 }
 0xc9d   :  { %v6484_v26 = vand.u32 4294901760, %v6413_v41 }
 0xc9f   :  { %v6485_v32 = vsub.f32 %v6413_v41, %v6484_v26 }
 0xca1   :  { %v6486_v1 = vand.u32 4294901760, %v6485_v32 }
 0xca3   :  { %v6487_v56 = vsub.f32 %v6485_v32, %v6486_v1 }
 0xca5   :  { %v6488_v42 = vand.u32 4294901760, %v6487_v56 }
 0xca7   :  { %12157 = vmatmul.mubr.f32.vlgmr.msra.gmra.mrb[24].mxu1 %v6488_v42 }
 0xca8   :  { %13152 = vmatpush3.bf16.msra.mxu1 %v14405_v29  ;;  %12167 = vmatprep.mubr.msk.f32.mxu1 %vm13873_vm1, %v13874_v57 }
 0xca9   :  { %13153 = vmatprep.subr.bf16.mxu1 %v13872_v59 }
 0xcac   :  { %13155 = vmatpush3.bf16.msra.mxu1 %v14409_v39 }
 0xcad   :  { %13156 = vmatprep.subr.bf16.mxu1 %v13872_v59 }
 0xcaf   :  { %12168 = vmatmul.mubr.f32.vlgmr.msra.gmra.mrb[24].mxu1 %v6484_v26 }
 0xcb0   :  { %13158 = vmatpush3.bf16.msra.mxu1 %v14415_v4  ;;  %12178 = vmatprep.mubr.msk.f32.mxu1 %vm13873_vm1, %v13874_v57 }
 0xcb1   :  { %13159 = vmatprep.subr.bf16.mxu1 %v13872_v59 }
 0xcb4   :  { %13161 = vmatpush3.bf16.msra.mxu1 %v14420_v7 }
 0xcb5   :  { %13162 = vmatprep.subr.bf16.mxu1 %v13872_v59 }
 0xcb7   :  { %12179 = vmatmul.mubr.f32.vlgmr.msra.gmra.mrb[24].mxu1 %v6485_v32 }
 0xcb8   :  { %13164 = vmatpush3.bf16.msra.mxu1 %v14388_v10  ;;  %12189 = vmatprep.mubr.msk.f32.mxu1 %vm13873_vm1, %v13874_v57 }
 0xcb9   :  { %13165 = vmatprep.subr.bf16.mxu1 %v13872_v59 }
 0xcbc   :  { %13167 = vmatpush3.bf16.msra.mxu1 %v14391_v22 }
 0xcbd   :  { %13168 = vmatprep.subr.bf16.mxu1 %v13872_v59 }
 0xcbf   :  { %12190 = vmatmul.mubr.f32.vlgmr.msra.gmra.mrb[24].mxu1 %v6486_v1  ;;  %v15023_v1 = vsel %vm5880_vm4, %v14900_v62, %v14897_v27 }
 0xcc0   :  { %13170 = vmatpush3.bf16.msra.mxu1 %v14433_v36  ;;  %12200 = vmatprep.mubr.msk.f32.mxu1 %vm13873_vm1, %v13874_v57 }
 0xcc1   :  { %13171 = vmatprep.subr.bf16.mxu1 %v13872_v59 }
 0xcc4   :  { %13173 = vmatpush3.bf16.msra.mxu1 %v14438_v40 }
 0xcc5   :  { %13174 = vmatprep.subr.bf16.mxu1 %v13872_v59 }
 0xcc7   :  { %12201 = vmatmul.mubr.f32.vlgmr.msra.gmra.mrb[24].mxu1 %v6484_v26 }
 0xcc8   :  { %13176 = vmatpush3.bf16.msra.mxu1 %v14388_v10  ;;  %12211 = vmatprep.mubr.msk.f32.mxu1 %vm13873_vm1, %v13874_v57 }
 0xcc9   :  { %13177 = vmatprep.subr.bf16.mxu1 %v13872_v59 }
 0xccc   :  { %13179 = vmatpush3.bf16.msra.mxu1 %v14391_v22 }
 0xccd   :  { %13216 = vmatprep.subr.bf16.mxu1 %v13872_v59 }
 0xccf   :  { %12212 = vmatmul.mubr.f32.vlgmr.msra.gmra.mrb[24].mxu1 %v6484_v26 }
 0xcd0   :  { %13218 = vmatpush3.bf16.msra.mxu1 %v14388_v10  ;;  %12288 = vmatprep.mubr.msk.f32.mxu1 %vm13873_vm1, %v13874_v57 }
 0xcd1   :  { %13219 = vmatprep.subr.bf16.mxu1 %v13872_v59 }
 0xcd4   :  { %13221 = vmatpush3.bf16.msra.mxu1 %v14391_v22 }
 0xcd5   :  { %13222 = vmatprep.subr.bf16.mxu1 %v13872_v59 }
 0xd41   :  { %v6380_v15 = vpop.f32.mrb[16].mxu0 }
 0xd42   :  { %v6384_v24 = vadd.f32 %v14470_v45, %v6380_v15  ;;  %v12147_v47 = vpop.f32.mrb[17].mxu0 }
 0xd43   :  { %v15034_v47 = vsel %vm5887_vm7, %v14911_v43, %v14908_v44 }
 0xd44   :  { %v10627_v60 = vmul.f32 -1.442695, %v6384_v24 }
 0xd46   :  { %13808 = vpow2.f32 %v10627_v60 }
 0xd47   :  { %13810 = vtanh.f32 %v6384_v24 }
 0xd50   :  { %v13809_v16 = vpop.eup %13808 }
 0xd51   :  { %v6389_v13 = vadd.f32 1.0, %v13809_v16  ;;  %v13811_v53 = vpop.eup %13810 }
 0xd53   :  { %13812 = vrcp.f32 %v6389_v13 }
 0xd5d   :  { %v13813_v11 = vpop.eup %13812 }
 0xd5e   :  { %v6392_v5 = vsel %vm1689_vm2, %v13811_v53, %v13813_v11 }
 0xd5f   :  { %6395 = vrot.lane.b32.xlu1 %v6392_v5, %s13876_s4  ;;  %v6393_v56 = vmul.f32 %v6392_v5, %v15023_v1 }
 0xda2   :  { %v6896_v48 = vpop.f32.mrb[24].mxu1 }
 0xda3   :  { %v6900_v63 = vadd.f32 %v14494_v61, %v6896_v48  ;;  %v12213_v31 = vpop.f32.mrb[25].mxu1 }
 0xda5   :  { %v10628_v35 = vmul.f32 -1.442695, %v6900_v63 }
 0xda7   :  { %13814 = vpow2.f32 %v10628_v35 }
 0xda8   :  { %13816 = vtanh.f32 %v6900_v63 }
 0xdb1   :  { %v13815_v45 = vpop.eup %13814 }
 0xdb2   :  { %v6905_v52 = vadd.f32 1.0, %v13815_v45  ;;  %v13817_v28 = vpop.eup %13816 }
 0xdb4   :  { %13818 = vrcp.f32 %v6905_v52 }
 0xdbe   :  { %v13819_v25 = vpop.eup %13818 }
 0xdbf   :  { %v6908_v30 = vsel %vm1689_vm2, %v13817_v28, %v13819_v25 }
 0xdc0   :  { %6911 = vrot.lane.b32.xlu0 %v6908_v30, %s13876_s4  ;;  %v6909_v60 = vmul.f32 %v6908_v30, %v15034_v47 }
 0xdd1   :  { %v6396_v41 = vpop.permute.xlu1 %6395 }
 0xdd2   :  { %v6398_v26 = vmul.f32 %v6396_v41, %v6392_v5 }
 0xdd4   :  { %6400 = vrot.lane.b32.xlu1 %v6398_v26, %s13876_s4 }
 0xe32   :  { %v6912_v32 = vpop.permute.xlu0 %6911 }
 0xe33   :  { %v6914_v61 = vmul.f32 %v6912_v32, %v6908_v30 }
 0xe35   :  { %6916 = vrot.lane.b32.xlu0 %v6914_v61, %s13876_s4 }
 0xe46   :  { %v6401_v42 = vpop.permute.xlu1 %6400 }
 0xe47   :  { %v15026_v15 = vadd.f32 %v6401_v42, %v6393_v56 }
 0xe49   :  { %13820 = vtanh.f32 %v15026_v15 }
 0xe53   :  { %v13821_v24 = vpop.eup %13820 }
 0xe54   :  { %6406 = vrot.lane.b32.xlu1 %v13821_v24, %s13876_s4 }
 0xea7   :  { %v6917_v27 = vpop.permute.xlu0 %6916 }
 0xea8   :  { %v15037_v62 = vadd.f32 %v6917_v27, %v6909_v60 }
 0xeaa   :  { %13822 = vtanh.f32 %v15037_v62 }
 0xeb4   :  { %v13823_v16 = vpop.eup %13822 }
 0xeb5   :  { %6922 = vrot.lane.b32.xlu0 %v13823_v16, %s13876_s4 }
 0xec6   :  { %v6407_v13 = vpop.permute.xlu1 %6406 }
 0xec7   :  { %v6409_v53 = vmul.f32 %v6407_v13, %v6392_v5 }
 0xec9   :  { %v15044_v11 = vsel %vm5887_vm7, %v6409_v53, %v14921_v55 }
 0xeca   :  { %6935 = vrot.lane.b32.xlu1 %v15044_v11, %s13877_s1 }
 0xf27   :  { %v6923_v44 = vpop.permute.xlu0 %6922 }
 0xf28   :  { %v6925_v43 = vmul.f32 %v6923_v44, %v6908_v30 }
 0xf2a   :  { %v15051_v48 = vsel %vm5880_vm4, %v6925_v43, %v14931_v54 }
 0xf2b   :  { %7451 = vrot.lane.b32.xlu0 %v15051_v48, %s13877_s1 }
 0xf3c   :  { %v6936_v63 = vpop.permute.xlu1 %6935 }
 0xf3d   :  { %v6937_v5 = vsel %vm54_vm0, %v6936_v63, 0 }
 0xf3e   :  { %v7008_v31 = vand.u32 4294901760, %v6937_v5 }
 0xf40   :  { %v7009_v35 = vsub.f32 %v6937_v5, %v7008_v31 }
 0xf42   :  { %v7010_v55 = vand.u32 4294901760, %v7009_v35 }
 0xf44   :  { %v7011_v45 = vsub.f32 %v7009_v35, %v7010_v55 }
 0xf46   :  { %v7012_v52 = vand.u32 4294901760, %v7011_v45 }
 0xf48   :  { %12223 = vmatmul.mubr.f32.vlgmr.msra.gmra.mrb[18].mxu0 %v7012_v52 }
 0xf49   :  { %13188 = vmatpush3.bf16.msra.mxu0 %v14248_v20  ;;  %12233 = vmatprep.mubr.msk.f32.mxu0 %vm13873_vm1, %v13874_v57 }
 0xf4a   :  { %13189 = vmatprep.subr.bf16.mxu0 %v13872_v59 }
 0xf4d   :  { %13191 = vmatpush3.bf16.msra.mxu0 %v14254_v0 }
 0xf4e   :  { %13192 = vmatprep.subr.bf16.mxu0 %v13872_v59 }
 0xf50   :  { %12234 = vmatmul.mubr.f32.vlgmr.msra.gmra.mrb[18].mxu0 %v7008_v31 }
 0xf51   :  { %13194 = vmatpush3.bf16.msra.mxu0 %v14266_v49  ;;  %12244 = vmatprep.mubr.msk.f32.mxu0 %vm13873_vm1, %v13874_v57 }
 0xf52   :  { %13195 = vmatprep.subr.bf16.mxu0 %v13872_v59 }
 0xf55   :  { %13197 = vmatpush3.bf16.msra.mxu0 %v14275_v58 }
 0xf56   :  { %13198 = vmatprep.subr.bf16.mxu0 %v13872_v59 }
 0xf58   :  { %12245 = vmatmul.mubr.f32.vlgmr.msra.gmra.mrb[18].mxu0 %v7009_v35 }
 0xf59   :  { %13200 = vmatpush3.bf16.msra.mxu0 %v14189_v23  ;;  %12255 = vmatprep.mubr.msk.f32.mxu0 %vm13873_vm1, %v13874_v57 }
 0xf5a   :  { %13201 = vmatprep.subr.bf16.mxu0 %v13872_v59 }
 0xf5d   :  { %13203 = vmatpush3.bf16.msra.mxu0 %v14208_v14 }
 0xf5e   :  { %13204 = vmatprep.subr.bf16.mxu0 %v13872_v59 }
 0xf60   :  { %12256 = vmatmul.mubr.f32.vlgmr.msra.gmra.mrb[18].mxu0 %v7010_v55 }
 0xf61   :  { %13206 = vmatpush3.bf16.msra.mxu0 %v14300_v6  ;;  %12266 = vmatprep.mubr.msk.f32.mxu0 %vm13873_vm1, %v13874_v57 }
 0xf62   :  { %13207 = vmatprep.subr.bf16.mxu0 %v13872_v59 }
 0xf65   :  { %13209 = vmatpush3.bf16.msra.mxu0 %v14312_v12 }
 0xf66   :  { %13210 = vmatprep.subr.bf16.mxu0 %v13872_v59 }
 0xf68   :  { %12267 = vmatmul.mubr.f32.vlgmr.msra.gmra.mrb[18].mxu0 %v7008_v31 }
 0xf69   :  { %13212 = vmatpush3.bf16.msra.mxu0 %v14189_v23  ;;  %12277 = vmatprep.mubr.msk.f32.mxu0 %vm13873_vm1, %v13874_v57 }
 0xf6a   :  { %13213 = vmatprep.subr.bf16.mxu0 %v13872_v59 }
 0xf6d   :  { %13215 = vmatpush3.bf16.msra.mxu0 %v14208_v14 }
 0xf6e   :  { %13252 = vmatprep.subr.bf16.mxu0 %v13872_v59 }
 0xf70   :  { %12278 = vmatmul.mubr.f32.vlgmr.msra.gmra.mrb[18].mxu0 %v7008_v31 }
 0xf71   :  { %13254 = vmatpush3.bf16.msra.mxu0 %v14189_v23  ;;  %12354 = vmatprep.mubr.msk.f32.mxu0 %vm13873_vm1, %v13874_v57 }
 0xf72   :  { %13255 = vmatprep.subr.bf16.mxu0 %v13872_v59 }
 0xf75   :  { %13257 = vmatpush3.bf16.msra.mxu0 %v14208_v14 }
 0xf76   :  { %13258 = vmatprep.subr.bf16.mxu0 %v13872_v59 }
 0xf9d   :  { %v7452_v54 = vpop.permute.xlu0 %7451 }
 0xf9e   :  { %v7453_v28 = vsel %vm54_vm0, %v7452_v54, 0 }
 0xf9f   :  { %v7524_v25 = vand.u32 4294901760, %v7453_v28 }
 0xfa1   :  { %v7525_v30 = vsub.f32 %v7453_v28, %v7524_v25 }
 0xfa3   :  { %v7526_v41 = vand.u32 4294901760, %v7525_v30 }
 0xfa5   :  { %v7527_v26 = vsub.f32 %v7525_v30, %v7526_v41 }
 0xfa7   :  { %v7528_v32 = vand.u32 4294901760, %v7527_v26 }
 0xfa9   :  { %12289 = vmatmul.mubr.f32.vlgmr.msra.gmra.mrb[26].mxu1 %v7528_v32 }
 0xfaa   :  { %13224 = vmatpush3.bf16.msra.mxu1 %v14405_v29  ;;  %12299 = vmatprep.mubr.msk.f32.mxu1 %vm13873_vm1, %v13874_v57 }
 0xfab   :  { %13225 = vmatprep.subr.bf16.mxu1 %v13872_v59 }
 0xfae   :  { %13227 = vmatpush3.bf16.msra.mxu1 %v14409_v39 }
 0xfaf   :  { %13228 = vmatprep.subr.bf16.mxu1 %v13872_v59 }
 0xfb1   :  { %12300 = vmatmul.mubr.f32.vlgmr.msra.gmra.mrb[26].mxu1 %v7524_v25 }
 0xfb2   :  { %13230 = vmatpush3.bf16.msra.mxu1 %v14415_v4  ;;  %12310 = vmatprep.mubr.msk.f32.mxu1 %vm13873_vm1, %v13874_v57 }
 0xfb3   :  { %13231 = vmatprep.subr.bf16.mxu1 %v13872_v59 }
 0xfb6   :  { %13233 = vmatpush3.bf16.msra.mxu1 %v14420_v7 }
 0xfb7   :  { %13234 = vmatprep.subr.bf16.mxu1 %v13872_v59 }
 0xfb9   :  { %12311 = vmatmul.mubr.f32.vlgmr.msra.gmra.mrb[26].mxu1 %v7525_v30 }
 0xfba   :  { %13236 = vmatpush3.bf16.msra.mxu1 %v14388_v10  ;;  %12321 = vmatprep.mubr.msk.f32.mxu1 %vm13873_vm1, %v13874_v57 }
 0xfbb   :  { %13237 = vmatprep.subr.bf16.mxu1 %v13872_v59 }
 0xfbe   :  { %13239 = vmatpush3.bf16.msra.mxu1 %v14391_v22 }
 0xfbf   :  { %13240 = vmatprep.subr.bf16.mxu1 %v13872_v59 }
 0xfc1   :  { %12322 = vmatmul.mubr.f32.vlgmr.msra.gmra.mrb[26].mxu1 %v7526_v41 }
 0xfc2   :  { %13242 = vmatpush3.bf16.msra.mxu1 %v14433_v36  ;;  %12332 = vmatprep.mubr.msk.f32.mxu1 %vm13873_vm1, %v13874_v57 }
 0xfc3   :  { %13243 = vmatprep.subr.bf16.mxu1 %v13872_v59 }
 0xfc6   :  { %13245 = vmatpush3.bf16.msra.mxu1 %v14438_v40 }
 0xfc7   :  { %13246 = vmatprep.subr.bf16.mxu1 %v13872_v59 }
 0xfc9   :  { %12333 = vmatmul.mubr.f32.vlgmr.msra.gmra.mrb[26].mxu1 %v7524_v25 }
 0xfca   :  { %13248 = vmatpush3.bf16.msra.mxu1 %v14388_v10  ;;  %12343 = vmatprep.mubr.msk.f32.mxu1 %vm13873_vm1, %v13874_v57 }
 0xfcb   :  { %13249 = vmatprep.subr.bf16.mxu1 %v13872_v59 }
 0xfce   :  { %13251 = vmatpush3.bf16.msra.mxu1 %v14391_v22 }
 0xfcf   :  { %13288 = vmatprep.subr.bf16.mxu1 %v13872_v59 }
 0xfd1   :  { %12344 = vmatmul.mubr.f32.vlgmr.msra.gmra.mrb[26].mxu1 %v7524_v25  ;;  %v15143_v25 = vsel %vm5887_vm7, %v15026_v15, %v15023_v1 }
 0xfd2   :  { %13290 = vmatpush3.bf16.msra.mxu1 %v14388_v10  ;;  %12420 = vmatprep.mubr.msk.f32.mxu1 %vm13873_vm1, %v13874_v57 }
 0xfd3   :  { %13291 = vmatprep.subr.bf16.mxu1 %v13872_v59 }
 0xfd6   :  { %13293 = vmatpush3.bf16.msra.mxu1 %v14391_v22 }
 0xfd7   :  { %13294 = vmatprep.subr.bf16.mxu1 %v13872_v59 }
0x1043   :  { %v7420_v61 = vpop.f32.mrb[18].mxu0 }
0x1044   :  { %v7424_v56 = vadd.f32 %v14468_v33, %v7420_v61  ;;  %v12279_v42 = vpop.f32.mrb[19].mxu0  ;;  %v15154_v61 = vsel %vm5880_vm4, %v15037_v62, %v15034_v47 }
0x1046   :  { %v10629_v24 = vmul.f32 -1.442695, %v7424_v56 }
0x1048   :  { %13824 = vpow2.f32 %v10629_v24 }
0x1049   :  { %13826 = vtanh.f32 %v7424_v56 }
0x1052   :  { %v13825_v60 = vpop.eup %13824 }
0x1053   :  { %v7429_v27 = vadd.f32 1.0, %v13825_v60  ;;  %v13827_v16 = vpop.eup %13826 }
0x1055   :  { %13828 = vrcp.f32 %v7429_v27 }
0x105f   :  { %v13829_v13 = vpop.eup %13828 }
0x1060   :  { %v7432_v53 = vsel %vm1689_vm2, %v13827_v16, %v13829_v13 }
0x1061   :  { %7435 = vrot.lane.b32.xlu1 %v7432_v53, %s13876_s4  ;;  %v7433_v30 = vmul.f32 %v7432_v53, %v15143_v25 }
0x10a4   :  { %v7936_v44 = vpop.f32.mrb[26].mxu1 }
0x10a5   :  { %v7940_v43 = vadd.f32 %v14496_v2, %v7936_v44  ;;  %v12345_v63 = vpop.f32.mrb[27].mxu1 }
0x10a7   :  { %v10630_v5 = vmul.f32 -1.442695, %v7940_v43 }
0x10a9   :  { %13830 = vpow2.f32 %v10630_v5 }
0x10aa   :  { %13832 = vtanh.f32 %v7940_v43 }
0x10b3   :  { %v13831_v33 = vpop.eup %13830 }
0x10b4   :  { %v7945_v31 = vadd.f32 1.0, %v13831_v33  ;;  %v13833_v35 = vpop.eup %13832 }
0x10b6   :  { %13834 = vrcp.f32 %v7945_v31 }
0x10c0   :  { %v13835_v55 = vpop.eup %13834 }
0x10c1   :  { %v7948_v45 = vsel %vm1689_vm2, %v13833_v35, %v13835_v55 }
0x10c2   :  { %7951 = vrot.lane.b32.xlu0 %v7948_v45, %s13876_s4  ;;  %v7949_v17 = vmul.f32 %v7948_v45, %v15154_v61 }
0x10d3   :  { %v7436_v52 = vpop.permute.xlu1 %7435 }
0x10d4   :  { %v7438_v54 = vmul.f32 %v7436_v52, %v7432_v53 }
0x10d6   :  { %7440 = vrot.lane.b32.xlu1 %v7438_v54, %s13876_s4 }
0x1134   :  { %v7952_v28 = vpop.permute.xlu0 %7951 }
0x1135   :  { %v7954_v2 = vmul.f32 %v7952_v28, %v7948_v45 }
0x1137   :  { %7956 = vrot.lane.b32.xlu0 %v7954_v2, %s13876_s4 }
0x1148   :  { %v7441_v41 = vpop.permute.xlu1 %7440 }
0x1149   :  { %v15146_v26 = vadd.f32 %v7441_v41, %v7433_v30 }
0x114b   :  { %13836 = vtanh.f32 %v15146_v26 }
0x1155   :  { %v13837_v32 = vpop.eup %13836 }
0x1156   :  { %7446 = vrot.lane.b32.xlu1 %v13837_v32, %s13876_s4 }
0x11a9   :  { %v7957_v1 = vpop.permute.xlu0 %7956 }
0x11aa   :  { %v15157_v15 = vadd.f32 %v7957_v1, %v7949_v17 }
0x11ac   :  { %13838 = vtanh.f32 %v15157_v15 }
0x11b6   :  { %v13839_v56 = vpop.eup %13838 }
0x11b7   :  { %7962 = vrot.lane.b32.xlu0 %v13839_v56, %s13876_s4 }
0x11c8   :  { %v7447_v42 = vpop.permute.xlu1 %7446 }
0x11c9   :  { %v7449_v24 = vmul.f32 %v7447_v42, %v7432_v53 }
0x11cb   :  { %v15164_v60 = vsel %vm4835_vm14, %v7449_v24, %v15044_v11 }
0x11cc   :  { %7975 = vrot.lane.b32.xlu1 %v15164_v60, %s13877_s1 }
0x1229   :  { %v7963_v37 = vpop.permute.xlu0 %7962 }
0x122a   :  { %v7965_v47 = vmul.f32 %v7963_v37, %v7948_v45 }
0x122c   :  { %v15171_v62 = vsel %vm4828_vm13, %v7965_v47, %v15051_v48 }
0x122d   :  { %8491 = vrot.lane.b32.xlu0 %v15171_v62, %s13877_s1 }
0x123e   :  { %v7976_v27 = vpop.permute.xlu1 %7975 }
0x123f   :  { %v7977_v16 = vsel %vm54_vm0, %v7976_v27, 0 }
0x1240   :  { %v8048_v13 = vand.u32 4294901760, %v7977_v16 }
0x1242   :  { %v8049_v53 = vsub.f32 %v7977_v16, %v8048_v13 }
0x1244   :  { %v8050_v11 = vand.u32 4294901760, %v8049_v53 }
0x1246   :  { %v8051_v44 = vsub.f32 %v8049_v53, %v8050_v11 }
0x1248   :  { %v8052_v43 = vand.u32 4294901760, %v8051_v44  ;;  %v15263_v44 = vsel %vm4835_vm14, %v15146_v26, %v15143_v25 }
0x124a   :  { %12355 = vmatmul.mubr.f32.vlgmr.msra.gmra.mrb[20].mxu0 %v8052_v43 }
0x124b   :  { %13260 = vmatpush3.bf16.msra.mxu0 %v14248_v20  ;;  %12365 = vmatprep.mubr.msk.f32.mxu0 %vm13873_vm1, %v13874_v57 }
0x124c   :  { %13261 = vmatprep.subr.bf16.mxu0 %v13872_v59 }
0x124f   :  { %13263 = vmatpush3.bf16.msra.mxu0 %v14254_v0 }
0x1250   :  { %13264 = vmatprep.subr.bf16.mxu0 %v13872_v59 }
0x1252   :  { %12366 = vmatmul.mubr.f32.vlgmr.msra.gmra.mrb[20].mxu0 %v8048_v13 }
0x1253   :  { %13266 = vmatpush3.bf16.msra.mxu0 %v14266_v49  ;;  %12376 = vmatprep.mubr.msk.f32.mxu0 %vm13873_vm1, %v13874_v57 }
0x1254   :  { %13267 = vmatprep.subr.bf16.mxu0 %v13872_v59 }
0x1257   :  { %13269 = vmatpush3.bf16.msra.mxu0 %v14275_v58 }
0x1258   :  { %13270 = vmatprep.subr.bf16.mxu0 %v13872_v59 }
0x125a   :  { %12377 = vmatmul.mubr.f32.vlgmr.msra.gmra.mrb[20].mxu0 %v8049_v53 }
0x125b   :  { %13272 = vmatpush3.bf16.msra.mxu0 %v14189_v23  ;;  %12387 = vmatprep.mubr.msk.f32.mxu0 %vm13873_vm1, %v13874_v57 }
0x125c   :  { %13273 = vmatprep.subr.bf16.mxu0 %v13872_v59 }
0x125f   :  { %13275 = vmatpush3.bf16.msra.mxu0 %v14208_v14 }
0x1260   :  { %13276 = vmatprep.subr.bf16.mxu0 %v13872_v59 }
0x1262   :  { %12388 = vmatmul.mubr.f32.vlgmr.msra.gmra.mrb[20].mxu0 %v8050_v11 }
0x1263   :  { %13278 = vmatpush3.bf16.msra.mxu0 %v14300_v6  ;;  %12398 = vmatprep.mubr.msk.f32.mxu0 %vm13873_vm1, %v13874_v57 }
0x1264   :  { %13279 = vmatprep.subr.bf16.mxu0 %v13872_v59 }
0x1267   :  { %13281 = vmatpush3.bf16.msra.mxu0 %v14312_v12 }
0x1268   :  { %13282 = vmatprep.subr.bf16.mxu0 %v13872_v59 }
0x126a   :  { %12399 = vmatmul.mubr.f32.vlgmr.msra.gmra.mrb[20].mxu0 %v8048_v13 }
0x126b   :  { %13284 = vmatpush3.bf16.msra.mxu0 %v14189_v23  ;;  %12409 = vmatprep.mubr.msk.f32.mxu0 %vm13873_vm1, %v13874_v57 }
0x126c   :  { %13285 = vmatprep.subr.bf16.mxu0 %v13872_v59 }
0x126f   :  { %13287 = vmatpush3.bf16.msra.mxu0 %v14208_v14 }
0x1270   :  { %13324 = vmatprep.subr.bf16.mxu0 %v13872_v59 }
0x1272   :  { %12410 = vmatmul.mubr.f32.vlgmr.msra.gmra.mrb[20].mxu0 %v8048_v13 }
0x1273   :  { %13326 = vmatpush3.bf16.msra.mxu0 %v14189_v23  ;;  %12486 = vmatprep.mubr.msk.f32.mxu0 %vm13873_vm1, %v13874_v57 }
0x1274   :  { %13327 = vmatprep.subr.bf16.mxu0 %v13872_v59 }
0x1277   :  { %13329 = vmatpush3.bf16.msra.mxu0 %v14208_v14 }
0x1278   :  { %13330 = vmatprep.subr.bf16.mxu0 %v13872_v59 }
0x129f   :  { %v8492_v48 = vpop.permute.xlu0 %8491 }
0x12a0   :  { %v8493_v63 = vsel %vm54_vm0, %v8492_v48, 0 }
0x12a1   :  { %v8564_v5 = vand.u32 4294901760, %v8493_v63 }
0x12a3   :  { %v8565_v33 = vsub.f32 %v8493_v63, %v8564_v5 }
0x12a5   :  { %v8566_v31 = vand.u32 4294901760, %v8565_v33 }
0x12a7   :  { %v8567_v35 = vsub.f32 %v8565_v33, %v8566_v31 }
0x12a9   :  { %v8568_v55 = vand.u32 4294901760, %v8567_v35 }
0x12ab   :  { %12421 = vmatmul.mubr.f32.vlgmr.msra.gmra.mrb[28].mxu1 %v8568_v55 }
0x12ac   :  { %13296 = vmatpush3.bf16.msra.mxu1 %v14405_v29  ;;  %12431 = vmatprep.mubr.msk.f32.mxu1 %vm13873_vm1, %v13874_v57 }
0x12ad   :  { %13297 = vmatprep.subr.bf16.mxu1 %v13872_v59 }
0x12b0   :  { %13299 = vmatpush3.bf16.msra.mxu1 %v14409_v39 }
0x12b1   :  { %13300 = vmatprep.subr.bf16.mxu1 %v13872_v59 }
0x12b3   :  { %12432 = vmatmul.mubr.f32.vlgmr.msra.gmra.mrb[28].mxu1 %v8564_v5 }
0x12b4   :  { %13302 = vmatpush3.bf16.msra.mxu1 %v14415_v4  ;;  %12442 = vmatprep.mubr.msk.f32.mxu1 %vm13873_vm1, %v13874_v57 }
0x12b5   :  { %13303 = vmatprep.subr.bf16.mxu1 %v13872_v59 }
0x12b8   :  { %13305 = vmatpush3.bf16.msra.mxu1 %v14420_v7 }
0x12b9   :  { %13306 = vmatprep.subr.bf16.mxu1 %v13872_v59 }
0x12bb   :  { %12443 = vmatmul.mubr.f32.vlgmr.msra.gmra.mrb[28].mxu1 %v8565_v33  ;;  %v15274_v33 = vsel %vm4828_vm13, %v15157_v15, %v15154_v61 }
0x12bc   :  { %13308 = vmatpush3.bf16.msra.mxu1 %v14388_v10  ;;  %12453 = vmatprep.mubr.msk.f32.mxu1 %vm13873_vm1, %v13874_v57 }
0x12bd   :  { %13309 = vmatprep.subr.bf16.mxu1 %v13872_v59 }
0x12c0   :  { %13311 = vmatpush3.bf16.msra.mxu1 %v14391_v22 }
0x12c1   :  { %13312 = vmatprep.subr.bf16.mxu1 %v13872_v59 }
0x12c3   :  { %12454 = vmatmul.mubr.f32.vlgmr.msra.gmra.mrb[28].mxu1 %v8566_v31 }
0x12c4   :  { %13314 = vmatpush3.bf16.msra.mxu1 %v14433_v36  ;;  %12464 = vmatprep.mubr.msk.f32.mxu1 %vm13873_vm1, %v13874_v57 }
0x12c5   :  { %13315 = vmatprep.subr.bf16.mxu1 %v13872_v59 }
0x12c8   :  { %13317 = vmatpush3.bf16.msra.mxu1 %v14438_v40 }
0x12c9   :  { %13318 = vmatprep.subr.bf16.mxu1 %v13872_v59 }
0x12cb   :  { %12465 = vmatmul.mubr.f32.vlgmr.msra.gmra.mrb[28].mxu1 %v8564_v5 }
0x12cc   :  { %13320 = vmatpush3.bf16.msra.mxu1 %v14388_v10  ;;  %12475 = vmatprep.mubr.msk.f32.mxu1 %vm13873_vm1, %v13874_v57 }
0x12cd   :  { %13321 = vmatprep.subr.bf16.mxu1 %v13872_v59 }
0x12d0   :  { %13323 = vmatpush3.bf16.msra.mxu1 %v14391_v22 }
0x12d1   :  { %13360 = vmatprep.subr.bf16.mxu1 %v13872_v59 }
0x12d3   :  { %12476 = vmatmul.mubr.f32.vlgmr.msra.gmra.mrb[28].mxu1 %v8564_v5 }
0x12d4   :  { %13362 = vmatpush3.bf16.msra.mxu1 %v14388_v10  ;;  %12552 = vmatprep.mubr.msk.f32.mxu1 %vm13873_vm1, %v13874_v57 }
0x12d5   :  { %13363 = vmatprep.subr.bf16.mxu1 %v13872_v59 }
0x12d8   :  { %13365 = vmatpush3.bf16.msra.mxu1 %v14391_v22 }
0x12d9   :  { %13366 = vmatprep.subr.bf16.mxu1 %v13872_v59 }
0x1345   :  { %v8460_v45 = vpop.f32.mrb[20].mxu0 }
0x1346   :  { %v8464_v52 = vadd.f32 %v14474_v34, %v8460_v45  ;;  %v12411_v54 = vpop.f32.mrb[21].mxu0 }
0x1348   :  { %v10631_v28 = vmul.f32 -1.442695, %v8464_v52 }
0x134a   :  { %13840 = vpow2.f32 %v10631_v28 }
0x134b   :  { %13842 = vtanh.f32 %v8464_v52 }
0x1354   :  { %v13841_v2 = vpop.eup %13840 }
0x1355   :  { %v8469_v30 = vadd.f32 1.0, %v13841_v2  ;;  %v13843_v41 = vpop.eup %13842 }
0x1357   :  { %13844 = vrcp.f32 %v8469_v30 }
0x1361   :  { %v13845_v32 = vpop.eup %13844 }
0x1362   :  { %v8472_v17 = vsel %vm1689_vm2, %v13843_v41, %v13845_v32 }
0x1363   :  { %8475 = vrot.lane.b32.xlu1 %v8472_v17, %s13876_s4  ;;  %v8473_v43 = vmul.f32 %v8472_v17, %v15263_v44 }
0x13a6   :  { %v8976_v1 = vpop.f32.mrb[28].mxu1 }
0x13a7   :  { %v8980_v56 = vadd.f32 %v14490_v21, %v8976_v1  ;;  %v12477_v42 = vpop.f32.mrb[29].mxu1 }
0x13a9   :  { %v10632_v24 = vmul.f32 -1.442695, %v8980_v56 }
0x13ab   :  { %13846 = vpow2.f32 %v10632_v24 }
0x13ac   :  { %13848 = vtanh.f32 %v8980_v56 }
0x13b5   :  { %v13847_v34 = vpop.eup %13846 }
0x13b6   :  { %v8985_v37 = vadd.f32 1.0, %v13847_v34  ;;  %v13849_v47 = vpop.eup %13848 }
0x13b8   :  { %13850 = vrcp.f32 %v8985_v37 }
0x13c2   :  { %v13851_v27 = vpop.eup %13850 }
0x13c3   :  { %v8988_v16 = vsel %vm1689_vm2, %v13849_v47, %v13851_v27 }
0x13c4   :  { %8991 = vrot.lane.b32.xlu0 %v8988_v16, %s13876_s4  ;;  %v8989_v18 = vmul.f32 %v8988_v16, %v15274_v33 }
0x13d5   :  { %v8476_v13 = vpop.permute.xlu1 %8475 }
0x13d6   :  { %v8478_v53 = vmul.f32 %v8476_v13, %v8472_v17 }
0x13d8   :  { %8480 = vrot.lane.b32.xlu1 %v8478_v53, %s13876_s4 }
0x1436   :  { %v8992_v11 = vpop.permute.xlu0 %8991 }
0x1437   :  { %v8994_v21 = vmul.f32 %v8992_v11, %v8988_v16 }
0x1439   :  { %8996 = vrot.lane.b32.xlu0 %v8994_v21, %s13876_s4 }
0x144a   :  { %v8481_v48 = vpop.permute.xlu1 %8480 }
0x144b   :  { %v15266_v63 = vadd.f32 %v8481_v48, %v8473_v43 }
0x144d   :  { %13852 = vtanh.f32 %v15266_v63 }
0x1457   :  { %v13853_v5 = vpop.eup %13852 }
0x1458   :  { %8486 = vrot.lane.b32.xlu1 %v13853_v5, %s13876_s4 }
0x14ab   :  { %v8997_v25 = vpop.permute.xlu0 %8996 }
0x14ac   :  { %v15277_v26 = vadd.f32 %v8997_v25, %v8989_v18 }
0x14ae   :  { %13854 = vtanh.f32 %v15277_v26  ;;  %v9009_v21 = vsel %vm3776_vm9, %v15277_v26, %v15274_v33 }
0x14b8   :  { %v13855_v31 = vpop.eup %13854 }
0x14b9   :  { %9002 = vrot.lane.b32.xlu0 %v13855_v31, %s13876_s4 }
0x14ca   :  { %v8487_v35 = vpop.permute.xlu1 %8486 }
0x14cb   :  { %v8489_v55 = vmul.f32 %v8487_v35, %v8472_v17 }
0x14cd   :  { %v15284_v45 = vsel %vm3783_vm10, %v8489_v55, %v15164_v60 }
0x14ce   :  { %9014 = vrot.lane.b32.xlu1 %v15284_v45, %s13877_s1 }
0x152b   :  { %v9003_v50 = vpop.permute.xlu0 %9002 }
0x152c   :  { %v9005_v61 = vmul.f32 %v9003_v50, %v8988_v16  ;;  %v9007_v16 = vsel %vm3783_vm10, %v15266_v63, %v15263_v44  ;;  %v10057_v44 = vld [vmem:[%s15523_s8 + $0x8] sm:$0xff]  ;;  %v10076_v63 = vand.u32 4294901760, %v10056_v46  ;;  %v10058_v50 = vld [vmem:[%s15523_s8 + $0x10] sm:$0xff] }
0x152d   :  { %v10079_v25 = vand.u32 4294901760, %v10057_v44 }
0x152e   :  { %v15291_v15 = vsel %vm3776_vm9, %v9005_v61, %v15171_v62  ;;  %v15391_v33 = vsub.f32 %v10056_v46, %v10076_v63  ;;  %v10059_v61 = vld [vmem:[%s15523_s8 + $0x18] sm:$0xff] }
0x152f   :  { %9530 = vrot.lane.b32.xlu0 %v15291_v15, %s13877_s1  ;;  %v15389_v38 = vpack.c.bf16 %v10079_v25, %v10076_v63  ;;  %v15393_v26 = vsub.f32 %v10057_v44, %v10079_v25 }
0x1531   :  { %v13421_v46 = vpack.c.bf16 %v15393_v26, %v15391_v33 }
0x1540   :  { %v9015_v52 = vpop.permute.xlu1 %9014 }
0x1541   :  { %v9016_v54 = vsel %vm54_vm0, %v9015_v52, 0  ;;  %v10082_v52 = vand.u32 4294901760, %v10058_v50 }
0x1542   :  { %v9087_v28 = vand.u32 4294901760, %v9016_v54 }
0x1544   :  { %v9088_v2 = vsub.f32 %v9016_v54, %v9087_v28  ;;  %v10085_v54 = vand.u32 4294901760, %v10059_v61 }
0x1546   :  { %v9089_v60 = vand.u32 4294901760, %v9088_v2 }
0x1548   :  { %v9090_v30 = vsub.f32 %v9088_v2, %v9089_v60 }
0x154a   :  { %v9091_v41 = vand.u32 4294901760, %v9090_v30 }
0x154c   :  { %12487 = vmatmul.mubr.f32.vlgmr.msra.gmra.mrb[22].mxu0 %v9091_v41  ;;  %v10062_v41 = vld [vmem:[%s15523_s8 + $0x30] sm:$0xff] }
0x154d   :  { %13332 = vmatpush3.bf16.msra.mxu0 %v14248_v20  ;;  %12497 = vmatprep.mubr.msk.f32.mxu0 %vm13873_vm1, %v13874_v57 }
0x154e   :  { %13333 = vmatprep.subr.bf16.mxu0 %v13872_v59 }
0x1551   :  { %13335 = vmatpush3.bf16.msra.mxu0 %v14254_v0 }
0x1552   :  { %13336 = vmatprep.subr.bf16.mxu0 %v13872_v59 }
0x1554   :  { %12498 = vmatmul.mubr.f32.vlgmr.msra.gmra.mrb[22].mxu0 %v9087_v28 }
0x1555   :  { %13338 = vmatpush3.bf16.msra.mxu0 %v14266_v49  ;;  %12508 = vmatprep.mubr.msk.f32.mxu0 %vm13873_vm1, %v13874_v57 }
0x1556   :  { %13339 = vmatprep.subr.bf16.mxu0 %v13872_v59 }
0x1559   :  { %13341 = vmatpush3.bf16.msra.mxu0 %v14275_v58 }
0x155a   :  { %13342 = vmatprep.subr.bf16.mxu0 %v13872_v59 }
0x155c   :  { %12509 = vmatmul.mubr.f32.vlgmr.msra.gmra.mrb[22].mxu0 %v9088_v2  ;;  %v10060_v2 = vld [vmem:[%s15523_s8 + $0x20] sm:$0xff] }
0x155d   :  { %13344 = vmatpush3.bf16.msra.mxu0 %v14189_v23  ;;  %12519 = vmatprep.mubr.msk.f32.mxu0 %vm13873_vm1, %v13874_v57 }
0x155e   :  { %13345 = vmatprep.subr.bf16.mxu0 %v13872_v59 }
0x1561   :  { %13347 = vmatpush3.bf16.msra.mxu0 %v14208_v14 }
0x1562   :  { %13348 = vmatprep.subr.bf16.mxu0 %v13872_v59 }
0x1564   :  { %12520 = vmatmul.mubr.f32.vlgmr.msra.gmra.mrb[22].mxu0 %v9089_v60  ;;  %v10091_v60 = vand.u32 4294901760, %v10061_v3 }
0x1565   :  { %13350 = vmatpush3.bf16.msra.mxu0 %v14300_v6  ;;  %12530 = vmatprep.mubr.msk.f32.mxu0 %vm13873_vm1, %v13874_v57 }
0x1566   :  { %13351 = vmatprep.subr.bf16.mxu0 %v13872_v59 }
0x1569   :  { %13353 = vmatpush3.bf16.msra.mxu0 %v14312_v12 }
0x156a   :  { %13354 = vmatprep.subr.bf16.mxu0 %v13872_v59 }
0x156c   :  { %12531 = vmatmul.mubr.f32.vlgmr.msra.gmra.mrb[22].mxu0 %v9087_v28 }
0x156d   :  { %13356 = vmatpush3.bf16.msra.mxu0 %v14189_v23  ;;  %12541 = vmatprep.mubr.msk.f32.mxu0 %vm13873_vm1, %v13874_v57 }
0x156e   :  { %13357 = vmatprep.subr.bf16.mxu0 %v13872_v59 }
0x1571   :  { %13359 = vmatpush3.bf16.msra.mxu0 %v14208_v14 }
0x1572   :  { %13396 = vmatprep.subr.bf16.mxu0 %v13872_v59 }
0x1574   :  { %12542 = vmatmul.mubr.f32.vlgmr.msra.gmra.mrb[22].mxu0 %v9087_v28  ;;  %v15407_v28 = vpack.c.bf16 %v10085_v54, %v10082_v52 }
0x1575   :  { %12626 = vmatprep.mubr.msk.f32.mxu0 %vm13873_vm1, %v13874_v57  ;;  %13398 = vmatpush3.bf16.msra.mxu0 %v15389_v38 }
0x1576   :  { %13399 = vmatprep.subr.bf16.mxu0 %v13872_v59 }
0x1579   :  { %13401 = vmatpush3.bf16.msra.mxu0 %v15407_v28 }
0x157a   :  { %13402 = vmatprep.subr.bf16.mxu0 %v13872_v59 }
0x15a1   :  { %v9531_v20 = vpop.permute.xlu0 %9530 }
0x15a2   :  { %v9532_v0 = vsel %vm54_vm0, %v9531_v20, 0  ;;  %v10063_v20 = vld [vmem:[%s15523_s8 + $0x38] sm:$0xff]  ;;  %s13878_s8 = smov 96  }
0x15a3   :  { %v9603_v49 = vand.u32 4294901760, %v9532_v0 }
0x15a5   :  { %v9604_v58 = vsub.f32 %v9532_v0, %v9603_v49  ;;  %v10094_v0 = vand.u32 4294901760, %v10062_v41 }
0x15a7   :  { %v9605_v6 = vand.u32 4294901760, %v9604_v58 }
0x15a9   :  { %v9606_v23 = vsub.f32 %v9604_v58, %v9605_v6 }
0x15ab   :  { %v9607_v12 = vand.u32 4294901760, %v9606_v23  ;;  %v15429_v23 = vsub.f32 %v10058_v50, %v10082_v52 }
0x15ad   :  { %12553 = vmatmul.mubr.f32.vlgmr.msra.gmra.mrb[30].mxu1 %v9607_v12  ;;  %v15431_v12 = vsub.f32 %v10059_v61, %v10085_v54 }
0x15ae   :  { %13368 = vmatpush3.bf16.msra.mxu1 %v14405_v29  ;;  %12563 = vmatprep.mubr.msk.f32.mxu1 %vm13873_vm1, %v13874_v57 }
0x15af   :  { %13369 = vmatprep.subr.bf16.mxu1 %v13872_v59  ;;  %v13424_v44 = vpack.c.bf16 %v15431_v12, %v15429_v23 }
0x15b2   :  { %13371 = vmatpush3.bf16.msra.mxu1 %v14409_v39 }
0x15b3   :  { %13372 = vmatprep.subr.bf16.mxu1 %v13872_v59 }
0x15b5   :  { %12564 = vmatmul.mubr.f32.vlgmr.msra.gmra.mrb[30].mxu1 %v9603_v49 }
0x15b6   :  { %13374 = vmatpush3.bf16.msra.mxu1 %v14415_v4  ;;  %12574 = vmatprep.mubr.msk.f32.mxu1 %vm13873_vm1, %v13874_v57 }
0x15b7   :  { %13375 = vmatprep.subr.bf16.mxu1 %v13872_v59 }
0x15ba   :  { %13377 = vmatpush3.bf16.msra.mxu1 %v14420_v7 }
0x15bb   :  { %13378 = vmatprep.subr.bf16.mxu1 %v13872_v59 }
0x15bd   :  { %12575 = vmatmul.mubr.f32.vlgmr.msra.gmra.mrb[30].mxu1 %v9604_v58  ;;  %v10161_v58 = vand.u32 4294901760, %v15391_v33 }
0x15be   :  { %13380 = vmatpush3.bf16.msra.mxu1 %v14388_v10  ;;  %12585 = vmatprep.mubr.msk.f32.mxu1 %vm13873_vm1, %v13874_v57 }
0x15bf   :  { %13381 = vmatprep.subr.bf16.mxu1 %v13872_v59 }
0x15c2   :  { %13383 = vmatpush3.bf16.msra.mxu1 %v14391_v22 }
0x15c3   :  { %13384 = vmatprep.subr.bf16.mxu1 %v13872_v59 }
0x15c5   :  { %12586 = vmatmul.mubr.f32.vlgmr.msra.gmra.mrb[30].mxu1 %v9605_v6  ;;  %v10168_v6 = vand.u32 4294901760, %v15393_v26 }
0x15c6   :  { %13386 = vmatpush3.bf16.msra.mxu1 %v14433_v36  ;;  %12596 = vmatprep.mubr.msk.f32.mxu1 %vm13873_vm1, %v13874_v57 }
0x15c7   :  { %13387 = vmatprep.subr.bf16.mxu1 %v13872_v59 }
0x15ca   :  { %13389 = vmatpush3.bf16.msra.mxu1 %v14438_v40 }
0x15cb   :  { %13390 = vmatprep.subr.bf16.mxu1 %v13872_v59 }
0x15cd   :  { %12597 = vmatmul.mubr.f32.vlgmr.msra.gmra.mrb[30].mxu1 %v9603_v49 }
0x15ce   :  { %13392 = vmatpush3.bf16.msra.mxu1 %v14388_v10  ;;  %12607 = vmatprep.mubr.msk.f32.mxu1 %vm13873_vm1, %v13874_v57 }
0x15cf   :  { %13393 = vmatprep.subr.bf16.mxu1 %v13872_v59 }
0x15d2   :  { %13395 = vmatpush3.bf16.msra.mxu1 %v14391_v22 }
0x15d5   :  { %12608 = vmatmul.mubr.f32.vlgmr.msra.gmra.mrb[30].mxu1 %v9603_v49  ;;  %v10097_v49 = vand.u32 4294901760, %v10063_v20 }
0x1647   :  { %v9499_v14 = vpop.f32.mrb[22].mxu0 }
0x1648   :  { %v9503_v29 = vadd.f32 %v14472_v19, %v9499_v14  ;;  %v12543_v39 = vpop.f32.mrb[23].mxu0 }
0x1649   :  { %v15437_v39 = vpack.c.bf16 %v10097_v49, %v10094_v0 }
0x164a   :  { %v10633_v4 = vmul.f32 -1.442695, %v9503_v29 }
0x164c   :  { %13856 = vpow2.f32 %v10633_v4  ;;  %v15439_v4 = vsub.f32 %v10062_v41, %v10094_v0 }
0x164d   :  { %13858 = vtanh.f32 %v9503_v29  ;;  %v15435_v29 = vsub.f32 %v10061_v3, %v10091_v60 }
0x1656   :  { %v13857_v7 = vpop.eup %13856 }
0x1657   :  { %v9508_v36 = vadd.f32 1.0, %v13857_v7  ;;  %v13859_v40 = vpop.eup %13858  ;;  %v15441_v7 = vsub.f32 %v10063_v20, %v10097_v49 }
0x1659   :  { %13860 = vrcp.f32 %v9508_v36  ;;  %v10162_v36 = vsub.f32 %v15391_v33, %v10161_v58  ;;  %v10210_v8 = vand.u32 4294901760, %v15441_v7  ;;  %v13430_v25 = vpack.c.bf16 %v15441_v7, %v15439_v4 }
0x1663   :  { %v13861_v10 = vpop.eup %13860 }
0x1664   :  { %v9511_v62 = vsel %vm1689_vm2, %v13859_v40, %v13861_v10  ;;  %v10169_v40 = vsub.f32 %v15393_v26, %v10168_v6 }
0x1665   :  { %9514 = vrot.lane.b32.xlu1 %v9511_v62, %s13876_s4  ;;  %v9512_v9 = vmul.f32 %v9511_v62, %v9007_v16 }
0x16a8   :  { %v10015_v32 = vpop.f32.mrb[30].mxu1 }
0x16a9   :  { %v10019_v22 = vadd.f32 %v14492_v51, %v10015_v32  ;;  %v12609_v17 = vpop.f32.mrb[31].mxu1  ;;  %v10175_v32 = vand.u32 4294901760, %v15429_v23 }
0x16ab   :  { %v10634_v1 = vmul.f32 -1.442695, %v10019_v22 }
0x16ad   :  { %13862 = vpow2.f32 %v10634_v1  ;;  %v10170_v1 = vand.u32 4294901760, %v10169_v40 }
0x16ae   :  { %13864 = vtanh.f32 %v10019_v22  ;;  %v10182_v22 = vand.u32 4294901760, %v15431_v12 }
0x16b7   :  { %v13863_v19 = vpop.eup %13862 }
0x16b8   :  { %v10024_v56 = vadd.f32 1.0, %v13863_v19  ;;  %v13865_v42 = vpop.eup %13864  ;;  %v10176_v19 = vsub.f32 %v15429_v23, %v10175_v32 }
0x16ba   :  { %13866 = vrcp.f32 %v10024_v56  ;;  %v10183_v56 = vsub.f32 %v15431_v12, %v10182_v22 }
0x16c4   :  { %v13867_v24 = vpop.eup %13866 }
0x16c5   :  { %v15365_v34 = vsel %vm1689_vm2, %v13865_v42, %v13867_v24  ;;  %vm10071_vm2 = vcmask 523264  }
0x16c6   :  { %10030 = vrot.lane.b32.xlu0 %v15365_v34, %s13876_s4  ;;  %v10028_v43 = vmul.f32 %v15365_v34, %v9009_v21 }
0x16d7   :  { %v9515_v37 = vpop.permute.xlu1 %9514 }
0x16d8   :  { %v9517_v47 = vmul.f32 %v9515_v37, %v9511_v62  ;;  %v10177_v37 = vand.u32 4294901760, %v10176_v19 }
0x16da   :  { %9519 = vrot.lane.b32.xlu1 %v9517_v47, %s13876_s4  ;;  %v10184_v47 = vand.u32 4294901760, %v10183_v56 }
0x1738   :  { %v10031_v51 = vpop.permute.xlu0 %10030 }
0x1739   :  { %v10033_v27 = vmul.f32 %v10031_v51, %v15365_v34 }
0x173b   :  { %10035 = vrot.lane.b32.xlu0 %v10033_v27, %s13876_s4  ;;  %v13412_v27 = vpack.c.bf16 %v10184_v47, %v10177_v37 }
0x174c   :  { %v9520_v13 = vpop.permute.xlu1 %9519 }
0x174d   :  { %v9522_v53 = vadd.f32 %v9520_v13, %v9512_v9 }
0x174f   :  { %13868 = vtanh.f32 %v9522_v53 }
0x1759   :  { %v13869_v11 = vpop.eup %13868 }
0x175a   :  { %9525 = vrot.lane.b32.xlu1 %v13869_v11, %s13876_s4  ;;  %v10203_v11 = vand.u32 4294901760, %v15439_v4 }
0x175c   :  { %v10204_v21 = vsub.f32 %v15439_v4, %v10203_v11  ;;  %v13454_v50 = vpack.c.bf16 %v10210_v8, %v10203_v11 }
0x17ad   :  { %v10036_v48 = vpop.permute.xlu0 %10035 }
0x17ae   :  { %v10038_v5 = vadd.f32 %v10036_v48, %v10028_v43  ;;  %v10211_v43 = vsub.f32 %v15441_v7, %v10210_v8  ;;  %v10205_v48 = vand.u32 4294901760, %v10204_v21 }
0x17b0   :  { %13870 = vtanh.f32 %v10038_v5  ;;  %v10212_v5 = vand.u32 4294901760, %v10211_v43 }
0x17ba   :  { %v13871_v18 = vpop.eup %13870 }
0x17bb   :  { %10041 = vrot.lane.b32.xlu0 %v13871_v18, %s13876_s4  ;;  %v13418_v18 = vpack.c.bf16 %v10212_v5, %v10205_v48 }
0x17cc   :  { %v9526_v31 = vpop.permute.xlu1 %9525 }
0x17cd   :  { %v9528_v35 = vmul.f32 %v9526_v31, %v9511_v62  ;;  %v10163_v62 = vand.u32 4294901760, %v10162_v36  ;;  %v13445_v31 = vpack.c.bf16 %v10168_v6, %v10161_v58 }
0x17cf   :  { %v10045_v55 = vsel %vm2731_vm6, %v9528_v35, %v15284_v45  ;;  %v10088_v45 = vand.u32 4294901760, %v10060_v2  ;;  %v13409_v24 = vpack.c.bf16 %v10170_v1, %v10163_v62  ;;  %v13448_v35 = vpack.c.bf16 %v10182_v22, %v10175_v32 }
0x17d0   :  { %10048 = vrot.lane.b32.xlu1 %v10045_v55, %s13877_s1 }
0x17d1   :  { %v15417_v30 = vpack.c.bf16 %v10091_v60, %v10088_v45  ;;  %v15433_v14 = vsub.f32 %v10060_v2, %v10088_v45 }
0x17d3   :  { %13404 = vmatpush3.bf16.msra.mxu0 %v15417_v30  ;;  %v10189_v51 = vand.u32 4294901760, %v15433_v14  ;;  %v13427_v63 = vpack.c.bf16 %v15435_v29, %v15433_v14 }
0x17d4   :  { %13405 = vmatprep.subr.bf16.mxu0 %v13872_v59 }
0x17d5   :  { %v10190_v16 = vsub.f32 %v15433_v14, %v10189_v51 }
0x17d7   :  { %13407 = vmatpush3.bf16.msra.mxu0 %v15437_v39  ;;  %v10191_v13 = vand.u32 4294901760, %v10190_v16 }
0x17d8   :  { %13408 = vmatprep.subr.bf16.mxu0 %v13872_v59 }
0x182d   :  { %v10042_v10 = vpop.permute.xlu0 %10041 }
0x182e   :  { %v10044_v17 = vmul.f32 %v10042_v10, %v15365_v34  ;;  %v10196_v34 = vand.u32 4294901760, %v15435_v29 }
0x1830   :  { %v10046_v42 = vsel %vm2724_vm5, %v10044_v17, %v15291_v15  ;;  %v10197_v9 = vsub.f32 %v15435_v29, %v10196_v34  ;;  %v13451_v55 = vpack.c.bf16 %v10196_v34, %v10189_v51 }
0x1831   :  { %10052 = vrot.lane.b32.xlu0 %v10046_v42, %s13878_s8 }
0x1832   :  { %v10198_v53 = vand.u32 4294901760, %v10197_v9 }
0x1834   :  { %v13415_v15 = vpack.c.bf16 %v10198_v53, %v10191_v13 }
0x1842   :  { %v10049_v61 = vpop.permute.xlu1 %10048 }
0x18a3   :  { %v10053_v52 = vpop.permute.xlu0 %10052 }
0x18a4   :  { %v10055_v54 = vsel %vm54_vm0, %v10049_v61, %v10053_v52 }
0x18a5   :  { %v10073_v2 = vsel %vm10071_vm2, %v10055_v54, 0 }
0x18a6   :  { %v10148_v33 = vand.u32 4294901760, %v10073_v2 }
0x18a8   :  { %v10149_v26 = vsub.f32 %v10073_v2, %v10148_v33 }
0x18aa   :  { %v10150_v3 = vand.u32 4294901760, %v10149_v26 }
0x18ac   :  { %v10151_v45 = vsub.f32 %v10149_v26, %v10150_v3 }
0x18ae   :  { %v10152_v60 = vand.u32 4294901760, %v10151_v45 }
0x18b0   :  { %12627 = vmatmul.mubr.f32.vlgmr.msra.gmra.mrb[24].mxu0 %v10152_v60 }
0x18b1   :  { %13410 = vmatpush3.bf16.msra.mxu0 %v13409_v24  ;;  %12645 = vmatprep.mubr.msk.f32.mxu0 %vm13873_vm1, %v13874_v57 }
0x18b2   :  { %13411 = vmatprep.subr.bf16.mxu0 %v13872_v59 }
0x18b5   :  { %13413 = vmatpush3.bf16.msra.mxu0 %v13412_v27 }
0x18b6   :  { %13414 = vmatprep.subr.bf16.mxu0 %v13872_v59 }
0x18b9   :  { %13416 = vmatpush3.bf16.msra.mxu0 %v13415_v15 }
0x18ba   :  { %13417 = vmatprep.subr.bf16.mxu0 %v13872_v59 }
0x18bd   :  { %13419 = vmatpush3.bf16.msra.mxu0 %v13418_v18 }
0x18be   :  { %13420 = vmatprep.subr.bf16.mxu0 %v13872_v59 }
0x18c0   :  { %12646 = vmatmul.mubr.f32.vlgmr.msra.gmra.mrb[24].mxu0 %v10148_v33 }
0x18c1   :  { %13422 = vmatpush3.bf16.msra.mxu0 %v13421_v46  ;;  %12664 = vmatprep.mubr.msk.f32.mxu0 %vm13873_vm1, %v13874_v57 }
0x18c2   :  { %13423 = vmatprep.subr.bf16.mxu0 %v13872_v59 }
0x18c5   :  { %13425 = vmatpush3.bf16.msra.mxu0 %v13424_v44 }
0x18c6   :  { %13426 = vmatprep.subr.bf16.mxu0 %v13872_v59 }
0x18c9   :  { %13428 = vmatpush3.bf16.msra.mxu0 %v13427_v63 }
0x18ca   :  { %13429 = vmatprep.subr.bf16.mxu0 %v13872_v59 }
0x18cd   :  { %13431 = vmatpush3.bf16.msra.mxu0 %v13430_v25 }
0x18ce   :  { %13432 = vmatprep.subr.bf16.mxu0 %v13872_v59 }
0x18d0   :  { %12665 = vmatmul.mubr.f32.vlgmr.msra.gmra.mrb[24].mxu0 %v10149_v26 }
0x18d1   :  { %13434 = vmatpush3.bf16.msra.mxu0 %v15389_v38  ;;  %12683 = vmatprep.mubr.msk.f32.mxu0 %vm13873_vm1, %v13874_v57 }
0x18d2   :  { %13435 = vmatprep.subr.bf16.mxu0 %v13872_v59 }
0x18d5   :  { %13437 = vmatpush3.bf16.msra.mxu0 %v15407_v28 }
0x18d6   :  { %13438 = vmatprep.subr.bf16.mxu0 %v13872_v59 }
0x18d9   :  { %13440 = vmatpush3.bf16.msra.mxu0 %v15417_v30 }
0x18da   :  { %13441 = vmatprep.subr.bf16.mxu0 %v13872_v59 }
0x18dd   :  { %13443 = vmatpush3.bf16.msra.mxu0 %v15437_v39 }
0x18de   :  { %13444 = vmatprep.subr.bf16.mxu0 %v13872_v59 }
0x18e0   :  { %12684 = vmatmul.mubr.f32.vlgmr.msra.gmra.mrb[24].mxu0 %v10150_v3 }
0x18e1   :  { %13446 = vmatpush3.bf16.msra.mxu0 %v13445_v31  ;;  %12702 = vmatprep.mubr.msk.f32.mxu0 %vm13873_vm1, %v13874_v57 }
0x18e2   :  { %13447 = vmatprep.subr.bf16.mxu0 %v13872_v59 }
0x18e5   :  { %13449 = vmatpush3.bf16.msra.mxu0 %v13448_v35 }
0x18e6   :  { %13450 = vmatprep.subr.bf16.mxu0 %v13872_v59 }
0x18e9   :  { %13452 = vmatpush3.bf16.msra.mxu0 %v13451_v55 }
0x18ea   :  { %13453 = vmatprep.subr.bf16.mxu0 %v13872_v59 }
0x18ed   :  { %13455 = vmatpush3.bf16.msra.mxu0 %v13454_v50 }
0x18ee   :  { %13456 = vmatprep.subr.bf16.mxu0 %v13872_v59 }
0x18f0   :  { %12703 = vmatmul.mubr.f32.vlgmr.msra.gmra.mrb[24].mxu0 %v10148_v33 }
0x18f1   :  { %13458 = vmatpush3.bf16.msra.mxu0 %v15389_v38  ;;  %12721 = vmatprep.mubr.msk.f32.mxu0 %vm13873_vm1, %v13874_v57  ;;  %v10635_v38 = vld [vmem:[%s15524_s9] ss:$0 sm:$0xff] }
0x18f2   :  { %13459 = vmatprep.subr.bf16.mxu0 %v13872_v59 }
0x18f5   :  { %13461 = vmatpush3.bf16.msra.mxu0 %v15407_v28 }
0x18f6   :  { %13462 = vmatprep.subr.bf16.mxu0 %v13872_v59 }
0x18f9   :  { %13464 = vmatpush3.bf16.msra.mxu0 %v15417_v30 }
0x18fa   :  { %13465 = vmatprep.subr.bf16.mxu0 %v13872_v59 }
0x18fd   :  { %13467 = vmatpush3.bf16.msra.mxu0 %v15437_v39 }
0x1900   :  { %12722 = vmatmul.mubr.f32.vlgmr.msra.gmra.mrb[24].mxu0 %v10148_v33 }
0x19d3   :  { %v10608_v41 = vpop.f32.mrb[24].mxu0 }
0x19d4   :  { %v13492_v20 = vadd.f32 %v10635_v38, %v10608_v41  ;;  %v12723_v57 = vpop.f32.mrb[25].mxu0 }
0x19d6   :  { %10612 = vst [vmem:[%s15525_s10] sm:$0xff] %v13492_v20 }

</bundles_post_ra>
